<compile_context>
chip_gen: v7x
topology: tpu7x:2x2x1
jax: 0.10.0
libtpu: 0.0.40
codegen_flags: <defaults>
</compile_context>

<pallas_src>
import jax
import jax.numpy as jnp
import numpy as np
from jax.experimental import pallas as pl
from jax.experimental.pallas import tpu as pltpu


def _unet_up_kernel(x_ref, w_ref, o_ref, acc_ref):
    """One (batch element, Cout tile) grid step.

    x_ref:   (1, H+2, W+2, Cin)  bf16 zero-padded NHWC input
    w_ref:   (4, 4*Cin, TC)      bf16 per-phase tap-fused ConvT weights
    o_ref:   (1, 4, H*W, TC)     output phases (p = pi*2 + pj), normalized+ReLU
    acc_ref: (4, H*W, TC) f32    VMEM scratch: raw conv result per phase
    """
    H = x_ref.shape[1] - 2
    W = x_ref.shape[2] - 2
    cin = x_ref.shape[3]
    HW = H * W
    tc = o_ref.shape[-1]

    sum_c = jnp.zeros((1, tc), jnp.float32)
    sumsq_c = jnp.zeros((1, tc), jnp.float32)

    # ConvTranspose2d(k=4, s=2, p=1) phase decomposition: output pixel
    # (2m+pi, 2n+pj) is a 2x2 "valid" conv of the padded input window starting
    # at (pi, pj); tap (dy, dx) uses kernel element (3-pi-2dy, 3-pj-2dx).
    # The 4 taps are stacked along K so each phase is ONE
    # (HW, 4*Cin) @ (4*Cin, TC) bf16 MXU matmul (review: tap fusion).
    for pi in range(2):
        for pj in range(2):
            p = pi * 2 + pj
            taps = [
                x_ref[0, pl.ds(pi + dy, H), pl.ds(pj + dx, W), :]
                for dy in range(2) for dx in range(2)
            ]                                              # 4 x (H, W, Cin) bf16
            lhs = jnp.concatenate(taps, axis=-1).reshape(HW, 4 * cin)
            acc = jnp.dot(lhs, w_ref[p],
                          preferred_element_type=jnp.float32)  # (HW, TC) f32
            acc_ref[p] = acc
            sum_c = sum_c + jnp.sum(acc, axis=0, keepdims=True)
            sumsq_c = sumsq_c + jnp.sum(acc * acc, axis=0, keepdims=True)

    # InstanceNorm2d (affine=False, eps=1e-5, biased var over all 2H*2W pixels)
    # fused with ReLU: one multiply-add per element, broadcasts hoisted.
    cnt = jnp.float32(4 * HW)
    mean = sum_c / cnt
    var = jnp.maximum(sumsq_c / cnt - mean * mean, 0.0)
    scale = jax.lax.rsqrt(var + 1e-5)
    shift = -mean * scale
    scale_b = jnp.broadcast_to(scale, (HW, tc))
    shift_b = jnp.broadcast_to(shift, (HW, tc))

    for p in range(4):
        y = jnp.maximum(acc_ref[p] * scale_b + shift_b, 0.0)
        o_ref[0, p] = y.astype(o_ref.dtype)


def _fuse_weight(weight):
    """(Cin, Cout, 4, 4) PyTorch ConvTranspose2d weight -> (4, 4*Cin, Cout),
    phase-major / tap-major / Cin-minor, matching the kernel's K stacking."""
    w_k = jnp.transpose(weight, (2, 3, 0, 1))  # (kh, kw, Cin, Cout)
    phases = []
    for pi in range(2):
        for pj in range(2):
            blocks = [w_k[3 - pi - 2 * dy, 3 - pj - 2 * dx]
                      for dy in range(2) for dx in range(2)]  # 4 x (Cin, Cout)
            phases.append(jnp.concatenate(blocks, axis=0))    # (4*Cin, Cout)
    return jnp.stack(phases, axis=0)                          # (4, 4*Cin, Cout)


def unet_up(x, skip, weight):
    """x: (N,Cin,H,W), skip: (N,Cskip,2H,2W), weight: (Cin,Cout,4,4)
    -> (N, Cout+Cskip, 2H, 2W)  (NCHW, matching the PyTorch module)."""
    N, Cin, H, W = x.shape
    Cout = weight.shape[1]
    out_dtype = x.dtype
    HW = H * W

    # Cout tile: 128 lanes (dense, unmasked stores) whenever possible.
    TC = 128 if Cout % 128 == 0 else Cout
    n_ct = Cout // TC

    # Glue in: NCHW -> padded NHWC, bf16 for the MXU (single pass over small x).
    x_pad = jnp.pad(jnp.transpose(x, (0, 2, 3, 1)),
                    ((0, 0), (1, 1), (1, 1), (0, 0))).astype(jnp.bfloat16)
    w_fused = _fuse_weight(weight).astype(jnp.bfloat16)

    # VMEM budget: double-buffered in/out/weight blocks + f32 scratch.
    out_isz = jnp.dtype(out_dtype).itemsize
    est = (2 * (H + 2) * (W + 2) * Cin * 2      # x block (bf16), double-buffered
           + 2 * 4 * 4 * Cin * TC * 2           # fused weight block (bf16)
           + 2 * 4 * HW * TC * out_isz          # output block
           + 4 * HW * TC * 4)                   # f32 accumulator scratch
    vmem_limit = int(min(64 * 2**20, max(32 * 2**20, 2 * est)))

    out = pl.pallas_call(
        _unet_up_kernel,
        out_shape=jax.ShapeDtypeStruct((N, 4, HW, Cout), out_dtype),
        grid=(N, n_ct),
        in_specs=[
            pl.BlockSpec((1, H + 2, W + 2, Cin), lambda n, j: (n, 0, 0, 0)),
            pl.BlockSpec((4, 4 * Cin, TC), lambda n, j: (0, 0, j)),
        ],
        out_specs=pl.BlockSpec((1, 4, HW, TC), lambda n, j: (n, 0, 0, j)),
        scratch_shapes=[pltpu.VMEM((4, HW, TC), jnp.float32)],
        compiler_params=pltpu.CompilerParams(
            dimension_semantics=("parallel", "parallel"),
            vmem_limit_bytes=vmem_limit),
    )(x_pad, w_fused)

    # Glue out: phase interleave + NHWC->NCHW is ONE fused XLA transpose.
    # TODO(synk): in an end-to-end NHWC pipeline, emit (N, H, 2, W, 2, C)
    # directly and write into a preallocated concat buffer
    # (input_output_aliases) to drop the remaining transpose/concat HBM passes;
    # kept here only to preserve the PyTorch NCHW interface.
    y = out.reshape(N, 2, 2, H, W, Cout)
    y = jnp.transpose(y, (0, 5, 3, 1, 4, 2)).reshape(N, Cout, 2 * H, 2 * W)
    # TODO(synk): nn.Dropout (dropout > 0) not implemented; the module default
    # (dropout=0.0) has no dropout layer.
    return jnp.concatenate([y, skip], axis=1)


def _reference(x, skip, weight):
    """Pure-numpy ConvTranspose2d(4,2,1,bias=False) + InstanceNorm2d + ReLU + concat."""
    x = np.asarray(x, np.float32)
    w = np.asarray(weight, np.float32)
    skip = np.asarray(skip, np.float32)
    N, Cin, H, W = x.shape
    Cout = w.shape[1]
    full = np.zeros((N, Cout, 2 * H + 2, 2 * W + 2), np.float32)
    for kh in range(4):
        for kw in range(4):
            contrib = np.einsum('nihw,io->nohw', x, w[:, :, kh, kw])
            full[:, :, kh:kh + 2 * H:2, kw:kw + 2 * W:2] += contrib
    y = full[:, :, 1:1 + 2 * H, 1:1 + 2 * W]
    mean = y.mean(axis=(2, 3), keepdims=True)
    var = y.var(axis=(2, 3), keepdims=True)
    y = np.maximum((y - mean) / np.sqrt(var + 1e-5), 0.0)
    return np.concatenate([y, skip], axis=1)


def _run_case(key, N, Cin, Cout, H, W):
    k1, k2, k3 = jax.random.split(key, 3)
    x = jax.random.normal(k1, (N, Cin, H, W), dtype=jnp.float32)
    skip = jax.random.normal(k2, (N, Cout, 2 * H, 2 * W), dtype=jnp.float32)
    weight = 0.1 * jax.random.normal(k3, (Cin, Cout, 4, 4), dtype=jnp.float32)

    out = jax.block_until_ready(unet_up(x, skip, weight))
    assert out.shape == (N, 2 * Cout, 2 * H, 2 * W), out.shape
    assert bool(jnp.all(jnp.isfinite(out)))

    # Compare against a reference fed the same bf16-rounded operands, so the
    # check isolates kernel correctness from the (intentional) bf16 MXU cast.
    x_r = np.asarray(x.astype(jnp.bfloat16)).astype(np.float32)
    w_r = np.asarray(weight.astype(jnp.bfloat16)).astype(np.float32)
    ref = _reference(x_r, skip, w_r)
    err = float(np.max(np.abs(np.asarray(out, np.float32) - ref)))
    assert err < 5e-3, f"max abs err {err}"


if __name__ == "__main__":
    key = jax.random.PRNGKey(0)
    # Single Cout tile (TC == Cout): exercises the small-channel path.
    _run_case(jax.random.fold_in(key, 0), N=2, Cin=128, Cout=64, H=8, W=8)
    # Cout-tiled path: TC = 128, two Cout tiles, fully lane-dense 128-lane stores.
    _run_case(jax.random.fold_in(key, 1), N=2, Cin=128, Cout=256, H=8, W=8)
    print("KERNEL_OK")
</pallas_src>

<mosaic_0001>
module attributes {stable_mosaic.version = 11 : i64} {
  func.func @_unet_up_kernel(%arg0: i32, %arg1: i32, %arg2: memref<1x10x10x128xbf16, #tpu.memory_space<vmem>>, %arg3: memref<4x512x64xbf16, #tpu.memory_space<vmem>>, %arg4: memref<1x4x64x64xf32, #tpu.memory_space<vmem>>, %arg5: memref<4x64x64xf32, #tpu.memory_space<vmem>>) attributes {dimension_semantics = [#tpu.dimension_semantics<parallel>, #tpu.dimension_semantics<parallel>], iteration_bounds = array<i64: 2, 1>, scalar_prefetch = 0 : i64, scratch_operands = 1 : i64, tpu.core_type = #tpu.core_type<tc>, window_params = [{transform_indices = @transform_0, window_bounds = array<i64: 1, 10, 10, 128>}, {transform_indices = @transform_1, window_bounds = array<i64: 4, 512, 64>}, {transform_indices = @transform_2, window_bounds = array<i64: 1, 4, 64, 64>}]} {
    %cst = arith.constant 0.000000e+00 : f32
    %0 = vector.broadcast %cst : f32 to vector<1x64xf32>
    %cst_0 = arith.constant 0.000000e+00 : f32
    %1 = vector.broadcast %cst_0 : f32 to vector<1x64xf32>
    %c0 = arith.constant 0 : index
    %c0_1 = arith.constant 0 : index
    %c0_2 = arith.constant 0 : index
    %c0_3 = arith.constant 0 : index
    %2 = vector.load %arg2[%c0, %c0_1, %c0_2, %c0_3] : memref<1x10x10x128xbf16, #tpu.memory_space<vmem>>, vector<1x8x8x128xbf16>
    %3 = vector.shape_cast %2 : vector<1x8x8x128xbf16> to vector<8x8x128xbf16>
    %c0_4 = arith.constant 0 : index
    %c0_5 = arith.constant 0 : index
    %c1 = arith.constant 1 : index
    %c0_6 = arith.constant 0 : index
    %4 = vector.load %arg2[%c0_4, %c0_5, %c1, %c0_6] : memref<1x10x10x128xbf16, #tpu.memory_space<vmem>>, vector<1x8x8x128xbf16>
    %5 = vector.shape_cast %4 : vector<1x8x8x128xbf16> to vector<8x8x128xbf16>
    %c0_7 = arith.constant 0 : index
    %c1_8 = arith.constant 1 : index
    %c0_9 = arith.constant 0 : index
    %c0_10 = arith.constant 0 : index
    %6 = vector.load %arg2[%c0_7, %c1_8, %c0_9, %c0_10] : memref<1x10x10x128xbf16, #tpu.memory_space<vmem>>, vector<1x8x8x128xbf16>
    %7 = vector.shape_cast %6 : vector<1x8x8x128xbf16> to vector<8x8x128xbf16>
    %c0_11 = arith.constant 0 : index
    %c1_12 = arith.constant 1 : index
    %c1_13 = arith.constant 1 : index
    %c0_14 = arith.constant 0 : index
    %8 = vector.load %arg2[%c0_11, %c1_12, %c1_13, %c0_14] : memref<1x10x10x128xbf16, #tpu.memory_space<vmem>>, vector<1x8x8x128xbf16>
    %9 = vector.shape_cast %8 : vector<1x8x8x128xbf16> to vector<8x8x128xbf16>
    %10 = tpu.concatenate %3, %5, %7, %9 in 2 : vector<8x8x128xbf16>, vector<8x8x128xbf16>, vector<8x8x128xbf16>, vector<8x8x128xbf16> -> vector<8x8x512xbf16>
    %11 = vector.shape_cast %10 : vector<8x8x512xbf16> to vector<64x512xbf16>
    %c0_15 = arith.constant 0 : index
    %c0_16 = arith.constant 0 : index
    %c0_17 = arith.constant 0 : index
    %12 = vector.load %arg3[%c0_15, %c0_16, %c0_17] : memref<4x512x64xbf16, #tpu.memory_space<vmem>>, vector<1x512x64xbf16>
    %13 = vector.shape_cast %12 : vector<1x512x64xbf16> to vector<512x64xbf16>
    %cst_18 = arith.constant dense<0.000000e+00> : vector<64x64xf32>
    %14 = tpu.matmul %11, %13, %cst_18 {dimension_numbers = #tpu.dot_dimension_numbers<[1], [0], [0], [1], [0, 0, 1, 1], [], []>} : vector<64x512xbf16>, vector<512x64xbf16>, vector<64x64xf32> -> vector<64x64xf32>
    %c0_19 = arith.constant 0 : index
    %c0_20 = arith.constant 0 : index
    %c0_21 = arith.constant 0 : index
    %15 = vector.load %arg5[%c0_19, %c0_20, %c0_21] : memref<4x64x64xf32, #tpu.memory_space<vmem>>, vector<1x64x64xf32>
    %16 = vector.shape_cast %15 : vector<1x64x64xf32> to vector<64x64xf32>
    %17 = vector.shape_cast %14 : vector<64x64xf32> to vector<1x64x64xf32>
    tpu.vector_store %arg5[%c0_19, %c0_20, %c0_21], %17 {strides = array<i32>} : memref<4x64x64xf32, #tpu.memory_space<vmem>>, vector<1x64x64xf32>,
    %cst_22 = arith.constant dense<0.000000e+00> : vector<64xf32>
    %18 = vector.multi_reduction <add>, %14, %cst_22 [0] : vector<64x64xf32> to vector<64xf32>
    %19 = vector.shape_cast %18 : vector<64xf32> to vector<1x64xf32>
    %20 = arith.addf %0, %19 : vector<1x64xf32>
    %21 = arith.mulf %14, %14 : vector<64x64xf32>
    %cst_23 = arith.constant dense<0.000000e+00> : vector<64xf32>
    %22 = vector.multi_reduction <add>, %21, %cst_23 [0] : vector<64x64xf32> to vector<64xf32>
    %23 = vector.shape_cast %22 : vector<64xf32> to vector<1x64xf32>
    %24 = arith.addf %1, %23 : vector<1x64xf32>
    %c0_24 = arith.constant 0 : index
    %c0_25 = arith.constant 0 : index
    %c1_26 = arith.constant 1 : index
    %c0_27 = arith.constant 0 : index
    %25 = vector.load %arg2[%c0_24, %c0_25, %c1_26, %c0_27] : memref<1x10x10x128xbf16, #tpu.memory_space<vmem>>, vector<1x8x8x128xbf16>
    %26 = vector.shape_cast %25 : vector<1x8x8x128xbf16> to vector<8x8x128xbf16>
    %c0_28 = arith.constant 0 : index
    %c0_29 = arith.constant 0 : index
    %c2 = arith.constant 2 : index
    %c0_30 = arith.constant 0 : index
    %27 = vector.load %arg2[%c0_28, %c0_29, %c2, %c0_30] : memref<1x10x10x128xbf16, #tpu.memory_space<vmem>>, vector<1x8x8x128xbf16>
    %28 = vector.shape_cast %27 : vector<1x8x8x128xbf16> to vector<8x8x128xbf16>
    %c0_31 = arith.constant 0 : index
    %c1_32 = arith.constant 1 : index
    %c1_33 = arith.constant 1 : index
    %c0_34 = arith.constant 0 : index
    %29 = vector.load %arg2[%c0_31, %c1_32, %c1_33, %c0_34] : memref<1x10x10x128xbf16, #tpu.memory_space<vmem>>, vector<1x8x8x128xbf16>
    %30 = vector.shape_cast %29 : vector<1x8x8x128xbf16> to vector<8x8x128xbf16>
    %c0_35 = arith.constant 0 : index
    %c1_36 = arith.constant 1 : index
    %c2_37 = arith.constant 2 : index
    %c0_38 = arith.constant 0 : index
    %31 = vector.load %arg2[%c0_35, %c1_36, %c2_37, %c0_38] : memref<1x10x10x128xbf16, #tpu.memory_space<vmem>>, vector<1x8x8x128xbf16>
    %32 = vector.shape_cast %31 : vector<1x8x8x128xbf16> to vector<8x8x128xbf16>
    %33 = tpu.concatenate %26, %28, %30, %32 in 2 : vector<8x8x128xbf16>, vector<8x8x128xbf16>, vector<8x8x128xbf16>, vector<8x8x128xbf16> -> vector<8x8x512xbf16>
    %34 = vector.shape_cast %33 : vector<8x8x512xbf16> to vector<64x512xbf16>
    %c1_39 = arith.constant 1 : index
    %c0_40 = arith.constant 0 : index
    %c0_41 = arith.constant 0 : index
    %35 = vector.load %arg3[%c1_39, %c0_40, %c0_41] : memref<4x512x64xbf16, #tpu.memory_space<vmem>>, vector<1x512x64xbf16>
    %36 = vector.shape_cast %35 : vector<1x512x64xbf16> to vector<512x64xbf16>
    %cst_42 = arith.constant dense<0.000000e+00> : vector<64x64xf32>
    %37 = tpu.matmul %34, %36, %cst_42 {dimension_numbers = #tpu.dot_dimension_numbers<[1], [0], [0], [1], [0, 0, 1, 1], [], []>} : vector<64x512xbf16>, vector<512x64xbf16>, vector<64x64xf32> -> vector<64x64xf32>
    %c1_43 = arith.constant 1 : index
    %c0_44 = arith.constant 0 : index
    %c0_45 = arith.constant 0 : index
    %38 = vector.load %arg5[%c1_43, %c0_44, %c0_45] : memref<4x64x64xf32, #tpu.memory_space<vmem>>, vector<1x64x64xf32>
    %39 = vector.shape_cast %38 : vector<1x64x64xf32> to vector<64x64xf32>
    %40 = vector.shape_cast %37 : vector<64x64xf32> to vector<1x64x64xf32>
    tpu.vector_store %arg5[%c1_43, %c0_44, %c0_45], %40 {strides = array<i32>} : memref<4x64x64xf32, #tpu.memory_space<vmem>>, vector<1x64x64xf32>,
    %cst_46 = arith.constant dense<0.000000e+00> : vector<64xf32>
    %41 = vector.multi_reduction <add>, %37, %cst_46 [0] : vector<64x64xf32> to vector<64xf32>
    %42 = vector.shape_cast %41 : vector<64xf32> to vector<1x64xf32>
    %43 = arith.addf %20, %42 : vector<1x64xf32>
    %44 = arith.mulf %37, %37 : vector<64x64xf32>
    %cst_47 = arith.constant dense<0.000000e+00> : vector<64xf32>
    %45 = vector.multi_reduction <add>, %44, %cst_47 [0] : vector<64x64xf32> to vector<64xf32>
    %46 = vector.shape_cast %45 : vector<64xf32> to vector<1x64xf32>
    %47 = arith.addf %24, %46 : vector<1x64xf32>
    %c0_48 = arith.constant 0 : index
    %c1_49 = arith.constant 1 : index
    %c0_50 = arith.constant 0 : index
    %c0_51 = arith.constant 0 : index
    %48 = vector.load %arg2[%c0_48, %c1_49, %c0_50, %c0_51] : memref<1x10x10x128xbf16, #tpu.memory_space<vmem>>, vector<1x8x8x128xbf16>
    %49 = vector.shape_cast %48 : vector<1x8x8x128xbf16> to vector<8x8x128xbf16>
    %c0_52 = arith.constant 0 : index
    %c1_53 = arith.constant 1 : index
    %c1_54 = arith.constant 1 : index
    %c0_55 = arith.constant 0 : index
    %50 = vector.load %arg2[%c0_52, %c1_53, %c1_54, %c0_55] : memref<1x10x10x128xbf16, #tpu.memory_space<vmem>>, vector<1x8x8x128xbf16>
    %51 = vector.shape_cast %50 : vector<1x8x8x128xbf16> to vector<8x8x128xbf16>
    %c0_56 = arith.constant 0 : index
    %c2_57 = arith.constant 2 : index
    %c0_58 = arith.constant 0 : index
    %c0_59 = arith.constant 0 : index
    %52 = vector.load %arg2[%c0_56, %c2_57, %c0_58, %c0_59] : memref<1x10x10x128xbf16, #tpu.memory_space<vmem>>, vector<1x8x8x128xbf16>
    %53 = vector.shape_cast %52 : vector<1x8x8x128xbf16> to vector<8x8x128xbf16>
    %c0_60 = arith.constant 0 : index
    %c2_61 = arith.constant 2 : index
    %c1_62 = arith.constant 1 : index
    %c0_63 = arith.constant 0 : index
    %54 = vector.load %arg2[%c0_60, %c2_61, %c1_62, %c0_63] : memref<1x10x10x128xbf16, #tpu.memory_space<vmem>>, vector<1x8x8x128xbf16>
    %55 = vector.shape_cast %54 : vector<1x8x8x128xbf16> to vector<8x8x128xbf16>
    %56 = tpu.concatenate %49, %51, %53, %55 in 2 : vector<8x8x128xbf16>, vector<8x8x128xbf16>, vector<8x8x128xbf16>, vector<8x8x128xbf16> -> vector<8x8x512xbf16>
    %57 = vector.shape_cast %56 : vector<8x8x512xbf16> to vector<64x512xbf16>
    %c2_64 = arith.constant 2 : index
    %c0_65 = arith.constant 0 : index
    %c0_66 = arith.constant 0 : index
    %58 = vector.load %arg3[%c2_64, %c0_65, %c0_66] : memref<4x512x64xbf16, #tpu.memory_space<vmem>>, vector<1x512x64xbf16>
    %59 = vector.shape_cast %58 : vector<1x512x64xbf16> to vector<512x64xbf16>
    %cst_67 = arith.constant dense<0.000000e+00> : vector<64x64xf32>
    %60 = tpu.matmul %57, %59, %cst_67 {dimension_numbers = #tpu.dot_dimension_numbers<[1], [0], [0], [1], [0, 0, 1, 1], [], []>} : vector<64x512xbf16>, vector<512x64xbf16>, vector<64x64xf32> -> vector<64x64xf32>
    %c2_68 = arith.constant 2 : index
    %c0_69 = arith.constant 0 : index
    %c0_70 = arith.constant 0 : index
    %61 = vector.load %arg5[%c2_68, %c0_69, %c0_70] : memref<4x64x64xf32, #tpu.memory_space<vmem>>, vector<1x64x64xf32>
    %62 = vector.shape_cast %61 : vector<1x64x64xf32> to vector<64x64xf32>
    %63 = vector.shape_cast %60 : vector<64x64xf32> to vector<1x64x64xf32>
    tpu.vector_store %arg5[%c2_68, %c0_69, %c0_70], %63 {strides = array<i32>} : memref<4x64x64xf32, #tpu.memory_space<vmem>>, vector<1x64x64xf32>,
    %cst_71 = arith.constant dense<0.000000e+00> : vector<64xf32>
    %64 = vector.multi_reduction <add>, %60, %cst_71 [0] : vector<64x64xf32> to vector<64xf32>
    %65 = vector.shape_cast %64 : vector<64xf32> to vector<1x64xf32>
    %66 = arith.addf %43, %65 : vector<1x64xf32>
    %67 = arith.mulf %60, %60 : vector<64x64xf32>
    %cst_72 = arith.constant dense<0.000000e+00> : vector<64xf32>
    %68 = vector.multi_reduction <add>, %67, %cst_72 [0] : vector<64x64xf32> to vector<64xf32>
    %69 = vector.shape_cast %68 : vector<64xf32> to vector<1x64xf32>
    %70 = arith.addf %47, %69 : vector<1x64xf32>
    %c0_73 = arith.constant 0 : index
    %c1_74 = arith.constant 1 : index
    %c1_75 = arith.constant 1 : index
    %c0_76 = arith.constant 0 : index
    %71 = vector.load %arg2[%c0_73, %c1_74, %c1_75, %c0_76] : memref<1x10x10x128xbf16, #tpu.memory_space<vmem>>, vector<1x8x8x128xbf16>
    %72 = vector.shape_cast %71 : vector<1x8x8x128xbf16> to vector<8x8x128xbf16>
    %c0_77 = arith.constant 0 : index
    %c1_78 = arith.constant 1 : index
    %c2_79 = arith.constant 2 : index
    %c0_80 = arith.constant 0 : index
    %73 = vector.load %arg2[%c0_77, %c1_78, %c2_79, %c0_80] : memref<1x10x10x128xbf16, #tpu.memory_space<vmem>>, vector<1x8x8x128xbf16>
    %74 = vector.shape_cast %73 : vector<1x8x8x128xbf16> to vector<8x8x128xbf16>
    %c0_81 = arith.constant 0 : index
    %c2_82 = arith.constant 2 : index
    %c1_83 = arith.constant 1 : index
    %c0_84 = arith.constant 0 : index
    %75 = vector.load %arg2[%c0_81, %c2_82, %c1_83, %c0_84] : memref<1x10x10x128xbf16, #tpu.memory_space<vmem>>, vector<1x8x8x128xbf16>
    %76 = vector.shape_cast %75 : vector<1x8x8x128xbf16> to vector<8x8x128xbf16>
    %c0_85 = arith.constant 0 : index
    %c2_86 = arith.constant 2 : index
    %c2_87 = arith.constant 2 : index
    %c0_88 = arith.constant 0 : index
    %77 = vector.load %arg2[%c0_85, %c2_86, %c2_87, %c0_88] : memref<1x10x10x128xbf16, #tpu.memory_space<vmem>>, vector<1x8x8x128xbf16>
    %78 = vector.shape_cast %77 : vector<1x8x8x128xbf16> to vector<8x8x128xbf16>
    %79 = tpu.concatenate %72, %74, %76, %78 in 2 : vector<8x8x128xbf16>, vector<8x8x128xbf16>, vector<8x8x128xbf16>, vector<8x8x128xbf16> -> vector<8x8x512xbf16>
    %80 = vector.shape_cast %79 : vector<8x8x512xbf16> to vector<64x512xbf16>
    %c3 = arith.constant 3 : index
    %c0_89 = arith.constant 0 : index
    %c0_90 = arith.constant 0 : index
    %81 = vector.load %arg3[%c3, %c0_89, %c0_90] : memref<4x512x64xbf16, #tpu.memory_space<vmem>>, vector<1x512x64xbf16>
    %82 = vector.shape_cast %81 : vector<1x512x64xbf16> to vector<512x64xbf16>
    %cst_91 = arith.constant dense<0.000000e+00> : vector<64x64xf32>
    %83 = tpu.matmul %80, %82, %cst_91 {dimension_numbers = #tpu.dot_dimension_numbers<[1], [0], [0], [1], [0, 0, 1, 1], [], []>} : vector<64x512xbf16>, vector<512x64xbf16>, vector<64x64xf32> -> vector<64x64xf32>
    %c3_92 = arith.constant 3 : index
    %c0_93 = arith.constant 0 : index
    %c0_94 = arith.constant 0 : index
    %84 = vector.load %arg5[%c3_92, %c0_93, %c0_94] : memref<4x64x64xf32, #tpu.memory_space<vmem>>, vector<1x64x64xf32>
    %85 = vector.shape_cast %84 : vector<1x64x64xf32> to vector<64x64xf32>
    %86 = vector.shape_cast %83 : vector<64x64xf32> to vector<1x64x64xf32>
    tpu.vector_store %arg5[%c3_92, %c0_93, %c0_94], %86 {strides = array<i32>} : memref<4x64x64xf32, #tpu.memory_space<vmem>>, vector<1x64x64xf32>,
    %cst_95 = arith.constant dense<0.000000e+00> : vector<64xf32>
    %87 = vector.multi_reduction <add>, %83, %cst_95 [0] : vector<64x64xf32> to vector<64xf32>
    %88 = vector.shape_cast %87 : vector<64xf32> to vector<1x64xf32>
    %89 = arith.addf %66, %88 : vector<1x64xf32>
    %90 = arith.mulf %83, %83 : vector<64x64xf32>
    %cst_96 = arith.constant dense<0.000000e+00> : vector<64xf32>
    %91 = vector.multi_reduction <add>, %90, %cst_96 [0] : vector<64x64xf32> to vector<64xf32>
    %92 = vector.shape_cast %91 : vector<64xf32> to vector<1x64xf32>
    %93 = arith.addf %70, %92 : vector<1x64xf32>
    %cst_97 = arith.constant 2.560000e+02 : f32
    %94 = vector.broadcast %cst_97 : f32 to vector<1x64xf32>
    %95 = arith.divf %89, %94 : vector<1x64xf32>
    %cst_98 = arith.constant 2.560000e+02 : f32
    %96 = vector.broadcast %cst_98 : f32 to vector<1x64xf32>
    %97 = arith.divf %93, %96 : vector<1x64xf32>
    %98 = arith.mulf %95, %95 : vector<1x64xf32>
    %99 = arith.subf %97, %98 : vector<1x64xf32>
    %cst_99 = arith.constant 0.000000e+00 : f32
    %100 = vector.broadcast %cst_99 : f32 to vector<1x64xf32>
    %101 = arith.maximumf %99, %100 : vector<1x64xf32>
    %cst_100 = arith.constant 9.99999974E-6 : f32
    %102 = vector.broadcast %cst_100 : f32 to vector<1x64xf32>
    %103 = arith.addf %101, %102 : vector<1x64xf32>
    %104 = math.rsqrt %103 : vector<1x64xf32>
    %cst_101 = arith.constant 0.000000e+00 : f32
    %105 = vector.broadcast %cst_101 : f32 to vector<1x64xf32>
    %106 = arith.subf %105, %95 : vector<1x64xf32>
    %107 = arith.mulf %106, %104 : vector<1x64xf32>
    %108 = vector.shape_cast %104 : vector<1x64xf32> to vector<1x64xf32>
    %109 = vector.broadcast %108 : vector<1x64xf32> to vector<64x64xf32>
    %110 = vector.shape_cast %107 : vector<1x64xf32> to vector<1x64xf32>
    %111 = vector.broadcast %110 : vector<1x64xf32> to vector<64x64xf32>
    %c0_102 = arith.constant 0 : index
    %c0_103 = arith.constant 0 : index
    %c0_104 = arith.constant 0 : index
    %112 = vector.load %arg5[%c0_102, %c0_103, %c0_104] : memref<4x64x64xf32, #tpu.memory_space<vmem>>, vector<1x64x64xf32>
    %113 = vector.shape_cast %112 : vector<1x64x64xf32> to vector<64x64xf32>
    %114 = arith.mulf %113, %109 : vector<64x64xf32>
    %115 = arith.addf %114, %111 : vector<64x64xf32>
    %cst_105 = arith.constant 0.000000e+00 : f32
    %116 = vector.broadcast %cst_105 : f32 to vector<64x64xf32>
    %117 = arith.maximumf %115, %116 : vector<64x64xf32>
    %c0_106 = arith.constant 0 : index
    %c0_107 = arith.constant 0 : index
    %c0_108 = arith.constant 0 : index
    %c0_109 = arith.constant 0 : index
    %118 = vector.load %arg4[%c0_106, %c0_107, %c0_108, %c0_109] : memref<1x4x64x64xf32, #tpu.memory_space<vmem>>, vector<1x1x64x64xf32>
    %119 = vector.shape_cast %118 : vector<1x1x64x64xf32> to vector<64x64xf32>
    %120 = vector.shape_cast %117 : vector<64x64xf32> to vector<1x1x64x64xf32>
    tpu.vector_store %arg4[%c0_106, %c0_107, %c0_108, %c0_109], %120 {strides = array<i32>} : memref<1x4x64x64xf32, #tpu.memory_space<vmem>>, vector<1x1x64x64xf32>,
    %c1_110 = arith.constant 1 : index
    %c0_111 = arith.constant 0 : index
    %c0_112 = arith.constant 0 : index
    %121 = vector.load %arg5[%c1_110, %c0_111, %c0_112] : memref<4x64x64xf32, #tpu.memory_space<vmem>>, vector<1x64x64xf32>
    %122 = vector.shape_cast %121 : vector<1x64x64xf32> to vector<64x64xf32>
    %123 = arith.mulf %122, %109 : vector<64x64xf32>
    %124 = arith.addf %123, %111 : vector<64x64xf32>
    %cst_113 = arith.constant 0.000000e+00 : f32
    %125 = vector.broadcast %cst_113 : f32 to vector<64x64xf32>
    %126 = arith.maximumf %124, %125 : vector<64x64xf32>
    %c0_114 = arith.constant 0 : index
    %c1_115 = arith.constant 1 : index
    %c0_116 = arith.constant 0 : index
    %c0_117 = arith.constant 0 : index
    %127 = vector.load %arg4[%c0_114, %c1_115, %c0_116, %c0_117] : memref<1x4x64x64xf32, #tpu.memory_space<vmem>>, vector<1x1x64x64xf32>
    %128 = vector.shape_cast %127 : vector<1x1x64x64xf32> to vector<64x64xf32>
    %129 = vector.shape_cast %126 : vector<64x64xf32> to vector<1x1x64x64xf32>
    tpu.vector_store %arg4[%c0_114, %c1_115, %c0_116, %c0_117], %129 {strides = array<i32>} : memref<1x4x64x64xf32, #tpu.memory_space<vmem>>, vector<1x1x64x64xf32>,
    %c2_118 = arith.constant 2 : index
    %c0_119 = arith.constant 0 : index
    %c0_120 = arith.constant 0 : index
    %130 = vector.load %arg5[%c2_118, %c0_119, %c0_120] : memref<4x64x64xf32, #tpu.memory_space<vmem>>, vector<1x64x64xf32>
    %131 = vector.shape_cast %130 : vector<1x64x64xf32> to vector<64x64xf32>
    %132 = arith.mulf %131, %109 : vector<64x64xf32>
    %133 = arith.addf %132, %111 : vector<64x64xf32>
    %cst_121 = arith.constant 0.000000e+00 : f32
    %134 = vector.broadcast %cst_121 : f32 to vector<64x64xf32>
    %135 = arith.maximumf %133, %134 : vector<64x64xf32>
    %c0_122 = arith.constant 0 : index
    %c2_123 = arith.constant 2 : index
    %c0_124 = arith.constant 0 : index
    %c0_125 = arith.constant 0 : index
    %136 = vector.load %arg4[%c0_122, %c2_123, %c0_124, %c0_125] : memref<1x4x64x64xf32, #tpu.memory_space<vmem>>, vector<1x1x64x64xf32>
    %137 = vector.shape_cast %136 : vector<1x1x64x64xf32> to vector<64x64xf32>
    %138 = vector.shape_cast %135 : vector<64x64xf32> to vector<1x1x64x64xf32>
    tpu.vector_store %arg4[%c0_122, %c2_123, %c0_124, %c0_125], %138 {strides = array<i32>} : memref<1x4x64x64xf32, #tpu.memory_space<vmem>>, vector<1x1x64x64xf32>,
    %c3_126 = arith.constant 3 : index
    %c0_127 = arith.constant 0 : index
    %c0_128 = arith.constant 0 : index
    %139 = vector.load %arg5[%c3_126, %c0_127, %c0_128] : memref<4x64x64xf32, #tpu.memory_space<vmem>>, vector<1x64x64xf32>
    %140 = vector.shape_cast %139 : vector<1x64x64xf32> to vector<64x64xf32>
    %141 = arith.mulf %140, %109 : vector<64x64xf32>
    %142 = arith.addf %141, %111 : vector<64x64xf32>
    %cst_129 = arith.constant 0.000000e+00 : f32
    %143 = vector.broadcast %cst_129 : f32 to vector<64x64xf32>
    %144 = arith.maximumf %142, %143 : vector<64x64xf32>
    %c0_130 = arith.constant 0 : index
    %c3_131 = arith.constant 3 : index
    %c0_132 = arith.constant 0 : index
    %c0_133 = arith.constant 0 : index
    %145 = vector.load %arg4[%c0_130, %c3_131, %c0_132, %c0_133] : memref<1x4x64x64xf32, #tpu.memory_space<vmem>>, vector<1x1x64x64xf32>
    %146 = vector.shape_cast %145 : vector<1x1x64x64xf32> to vector<64x64xf32>
    %147 = vector.shape_cast %144 : vector<64x64xf32> to vector<1x1x64x64xf32>
    tpu.vector_store %arg4[%c0_130, %c3_131, %c0_132, %c0_133], %147 {strides = array<i32>} : memref<1x4x64x64xf32, #tpu.memory_space<vmem>>, vector<1x1x64x64xf32>,
    return
  }
  func.func @transform_0(%arg0: i32, %arg1: i32) -> (i32, i32, i32, i32) {
    %c0_i32 = arith.constant 0 : i32
    %c0_i32_0 = arith.constant 0 : i32
    %c0_i32_1 = arith.constant 0 : i32
    %c0_i32_2 = arith.constant 0 : i32
    return %arg0, %c0_i32, %c0_i32_0, %c0_i32_1 : i32, i32, i32, i32
  }
  func.func @transform_1(%arg0: i32, %arg1: i32) -> (i32, i32, i32) {
    %c0_i32 = arith.constant 0 : i32
    %c0_i32_0 = arith.constant 0 : i32
    %c0_i32_1 = arith.constant 0 : i32
    return %c0_i32, %c0_i32_0, %arg1 : i32, i32, i32
  }
  func.func @transform_2(%arg0: i32, %arg1: i32) -> (i32, i32, i32, i32) {
    %c0_i32 = arith.constant 0 : i32
    %c0_i32_0 = arith.constant 0 : i32
    %c0_i32_1 = arith.constant 0 : i32
    return %arg0, %c0_i32, %c0_i32_0, %arg1 : i32, i32, i32, i32
  }
}

</mosaic_0001>

<bundles_post_ra>
// kernel: tpu_custom_call.1
= control target key start
LH: loop header
LB: loop body
LE: loop exit
PB: predicated region body
PF: predicated region fallthrough
CT: control target
= control target key end

     0   :  { %7 = vsyncpa [#allocation4], 0  ;;  %s6666_s0 = inlined_call_operand.vmem [shape: bf16[2,10,10,128], index: 0, kind: input, shape index: {}]   ;;  %s6667_s1 = inlined_call_operand.vmem [shape: bf16[4,512,64], index: 1, kind: input, shape index: {}]   ;;  %s6668_s2 = inlined_call_operand.hbm [shape: f32[2,4,64,64], index: 2, kind: output, shape index: {}]  }
   0x1   :  { %9 = vsyncpa [#allocation4 + $0x1], 0  ;;  %s5425_s9 = smov 0   ;;  %s5427_s10 = smov 0  }
   0x2   :  { %s5429_s11 = smov 0   ;;  %s5431_s12 = smov 0  }
   0x3   :  { %s5433_s13 = smov 0   ;;  %s5435_s14 = smov 0  }
   0x4 LB: > { %s4037_s15 = sadd.s32 4294967295, %s5405_s14   ;;  %s4038_s16 = sadd.s32 4294967294, %s5405_s14   ;;  %s5405_s14 = sphi %s5435_s14, %s15_s14   ;;  %s5401_s13 = sphi %s5433_s13, %s6677_s13   ;;  %s5397_s12 = sphi %s5431_s12, %s6676_s12   ;;  %s5393_s11 = sphi %s5429_s11, %s6675_s11   ;;  %s5389_s10 = sphi %s5427_s10, %s6674_s10   ;;  %s5385_s9 = sphi %s5425_s9, %s6673_s9  }
   0x5   : > { %s27_s17 = sadd.s32 1, %s5401_s13  ;;  %s88_s18 = sadd.s32 1, %s5393_s11 }
   0x6   : > { %p29_p0 = scmp.ge.s32.totalorder %s27_s17, 2  ;;  %p98_p1 = scmp.ne.s32.totalorder %s5393_s11, %s5389_s10 }
   0x7   : > { %p99_p2 = scmp.eq.s32.totalorder %s4037_s15, 1  ;;  %p104_p3 = scmp.ne.s32.totalorder %s5389_s10, %s5385_s9 }
   0x8   : > { %s6679_s17 = smov (%p29_p0, %s27_s17), 0  ;;  %p105_p5 = scmp.eq.s32.totalorder %s4038_s16, 1 }
   0x9   : > { %p5465_p4 = por %p99_p2, %p98_p1  ;;  %s83_s20 = ssub.s32 %s5401_s13, %s6679_s17 }
   0xa   : > { %p4042_p6 = scmp.ge.s32.totalorder %s5405_s14, 1  ;;  %p86_p7 = scmp.eq.s32.totalorder %s83_s20, 0 }
   0xb   : > { %p5472_p8 = por %p105_p5, %p104_p3  ;;  %p138_p9 = scmp.lt.s32.totalorder %s5405_s14, 3 }
   0xc   : > { %s5478_s22 = scalar_select %p86_p7, %s5393_s11, %s88_s18  }
   0xd   : > { %p139_p10 = pnand %p4042_p6, %p138_p9 }
   0xe   : > { %v5117_v0 = vld [vmem:[%s6667_s1 + $0x40] sm:$0xff] (!%p139_p10)   ;;  %v5121_v4 = vld [vmem:[%s6667_s1 + $0x48] sm:$0xff] (!%p139_p10)   ;;  %v5125_v8 = vld [vmem:[%s6667_s1 + $0x50] sm:$0xff] (!%p139_p10)   ;;  %p164_p11 = scmp.lt.s32.totalorder (!%p139_p10), %s5397_s12, 1  ;;  %vm4167_vm0 = vcmask (!%p139_p10), 1043456  ;;  %vm833_vm4 = vcmask (!%p139_p10), 523264  }
   0xf   : > { %142 = sbr.rel (%p139_p10) target bundleno = 570 (0x23a), region = 28  ;;  %v5118_v1 = vld [vmem:[%s6667_s1 + $0xc0] sm:$0xff] (!%p139_p10)   ;;  %4739 = vmatprep.subr.bf16.mxu0 (!%p139_p10), %v5117_v0  ;;  %v5122_v5 = vld [vmem:[%s6667_s1 + $0xc8] sm:$0xff] (!%p139_p10)   ;;  %v5126_v9 = vld [vmem:[%s6667_s1 + $0xd0] sm:$0xff] (!%p139_p10)   ;;  %vm1230_vm1 = vsmask.f32 (!%p139_p10), 3328 }
  0x10   : > { %v5119_v2 = vld [vmem:[%s6667_s1] sm:$0xff] (!%p139_p10)   ;;  %4779 = vmatprep.subr.bf16.mxu1 (!%p139_p10), %v5118_v1  ;;  %v5123_v6 = vld [vmem:[%s6667_s1 + $0x8] sm:$0xff] (!%p139_p10)   ;;  %v5127_v10 = vld [vmem:[%s6667_s1 + $0x10] sm:$0xff] (!%p139_p10)   ;;  %vm1231_vm2 = vsmask.f32 (!%p139_p10), 7440  ;;  %s4738_s27 = sshll.u32 (!%p139_p10), %s5397_s12, 12 }
  0x11   : > { %v5120_v3 = vld [vmem:[%s6667_s1 + $0x80] sm:$0xff] (!%p139_p10)   ;;  %4740 = vmatpush3.bf16.msra.mxu0 (!%p139_p10), %v5119_v2  ;;  %v5124_v7 = vld [vmem:[%s6667_s1 + $0x88] sm:$0xff] (!%p139_p10)   ;;  %v5128_v11 = vld [vmem:[%s6667_s1 + $0x90] sm:$0xff] (!%p139_p10)   ;;  %s6600_s30 = scalar_lea.hbm (!%p139_p10), %s6668_s2, %s4738_s27  ;;  %s5407_s6 = smov (!%p139_p10), [#allocation3]  }
  0x12   : > { %4780 = vmatpush3.bf16.msra.mxu1 (!%p139_p10), %v5120_v3  ;;  %4741 = vmatprep.subr.bf16.mxu0 (!%p139_p10), %v5121_v4  ;;  %v5129_v12 = vld [vmem:[%s6667_s1 + $0x58] sm:$0xff] (!%p139_p10)   ;;  %v5133_v16 = vld [vmem:[%s6667_s1 + $0x60] sm:$0xff] (!%p139_p10)   ;;  %v5137_v20 = vld [vmem:[%s6667_s1 + $0x68] sm:$0xff] (!%p139_p10)   ;;  %s5331_s7 = sshll.u32 (!%p139_p10), %s5407_s6, 4  ;;  %s5332_s7 = int_to_ptr.vmem [resolvable:$false] %s5331_s7 }
  0x13   : > { %4781 = vmatprep.subr.bf16.mxu1 (!%p139_p10), %v5122_v5  ;;  %v5130_v13 = vld [vmem:[%s6667_s1 + $0xd8] sm:$0xff] (!%p139_p10)   ;;  %v5134_v17 = vld [vmem:[%s6667_s1 + $0xe0] sm:$0xff] (!%p139_p10)   ;;  %v5138_v21 = vld [vmem:[%s6667_s1 + $0xe8] sm:$0xff] (!%p139_p10)   ;;  %s5333_s8 = scalar_lea.vmem (!%p139_p10), %s5332_s7, 8192 }
  0x14   : > { %v5131_v14 = vld [vmem:[%s6667_s1 + $0x18] sm:$0xff] (!%p139_p10)   ;;  %v5135_v18 = vld [vmem:[%s6667_s1 + $0x20] sm:$0xff] (!%p139_p10)   ;;  %v5139_v22 = vld [vmem:[%s6667_s1 + $0x28] sm:$0xff] (!%p139_p10)  }
  0x15   : > { %4742 = vmatpush3.bf16.msra.mxu0 (!%p139_p10), %v5123_v6  ;;  %v5132_v15 = vld [vmem:[%s6667_s1 + $0x98] sm:$0xff] (!%p139_p10)   ;;  %v5136_v19 = vld [vmem:[%s6667_s1 + $0xa0] sm:$0xff] (!%p139_p10)   ;;  %v5140_v23 = vld [vmem:[%s6667_s1 + $0xa8] sm:$0xff] (!%p139_p10)  }
  0x16   : > { %4782 = vmatpush3.bf16.msra.mxu1 %v5124_v7  ;;  %4743 = vmatprep.subr.bf16.mxu0 %v5125_v8  ;;  %s165_s3 = scalar_select %p164_p11, %s5397_s12, 1  ;;  %v5141_v24 = vld [vmem:[%s6667_s1 + $0x70] sm:$0xff]   ;;  %v5145_v28 = vld [vmem:[%s6667_s1 + $0x78] sm:$0xff]   ;;  %v5155_v46 = vld [vmem:[%s6667_s1 + $0x140] sm:$0xff]  }
  0x17   : > { %4783 = vmatprep.subr.bf16.mxu1 %v5126_v9  ;;  %v5142_v25 = vld [vmem:[%s6667_s1 + $0xf0] sm:$0xff]   ;;  %v5146_v29 = vld [vmem:[%s6667_s1 + $0xf8] sm:$0xff]   ;;  %v5156_v47 = vld [vmem:[%s6667_s1 + $0x1c0] sm:$0xff]  }
  0x18   : > { %s5059_s20 = smul.u32 80, %s165_s3  ;;  %v5143_v26 = vld [vmem:[%s6667_s1 + $0x30] sm:$0xff]   ;;  %v5147_v30 = vld [vmem:[%s6667_s1 + $0x38] sm:$0xff]   ;;  %v5157_v60 = vld [vmem:[%s6667_s1 + $0x100] sm:$0xff]  }
  0x19   : > { %4744 = vmatpush3.bf16.msra.mxu0 %v5127_v10  ;;  %v5144_v27 = vld [vmem:[%s6667_s1 + $0xb0] sm:$0xff]   ;;  %v5148_v31 = vld [vmem:[%s6667_s1 + $0xb8] sm:$0xff]   ;;  %v5158_v1 = vld [vmem:[%s6667_s1 + $0x180] sm:$0xff]  }
  0x1a   : > { %4784 = vmatpush3.bf16.msra.mxu1 %v5128_v11  ;;  %4745 = vmatprep.subr.bf16.mxu0 %v5129_v12  ;;  %s5575_s5 = scalar_lea.vmem %s6666_s0, %s5059_s20  ;;  %v5159_v2 = vld [vmem:[%s6667_s1 + $0x148] sm:$0xff]   ;;  %vm5746_vm3 = vmor %vm1230_vm1, %vm1231_vm2 }
  0x1b   : > { %4785 = vmatprep.subr.bf16.mxu1 %v5130_v13  ;;  %v174_v32 = vld [vmem:[%s5575_s5] sm:$0xf]  ;;  %v175_v33 = vld [vmem:[%s5575_s5 + $0x8] sm:$0xf]  ;;  %v182_v34 = vld [vmem:[%s5575_s5 + $0x4] sm:$0x1] }
  0x1c   : > { %v183_v35 = vld [vmem:[%s5575_s5 + $0xc] sm:$0x1]  ;;  %v4061_v36 = vcombine.low %v174_v32, %v182_v34  ;;  %v4045_v37 = vld [vmem:[%s5575_s5 + $0x8] sm:$0xf]  ;;  %v4046_v38 = vld [vmem:[%s5575_s5 + $0x10] sm:$0xf]  ;;  %v4077_v62 = vcombine.low %v174_v32, %v175_v33 }
  0x1d   : > { %4746 = vmatpush3.bf16.msra.mxu0 %v5131_v14  ;;  %v4062_v39 = vcombine.low %v175_v33, %v183_v35  ;;  %v4053_v40 = vld [vmem:[%s5575_s5 + $0xc] sm:$0x1]  ;;  %v4054_v41 = vld [vmem:[%s5575_s5 + $0x14] sm:$0x1]  ;;  %v4079_v3 = vcombine.low %v4045_v37, %v4046_v38  ;;  %v176_v5 = vld [vmem:[%s5575_s5 + $0x10] sm:$0xf] }
  0x1e   : > { %4786 = vmatpush3.bf16.msra.mxu1 %v5132_v15  ;;  %4747 = vmatprep.subr.bf16.mxu0 %v5133_v16  ;;  %v248_v42 = vshrl.u32 %v4061_v36, 16  ;;  %v250_v43 = vshll.u32 %v4061_v36, 16  ;;  %v4069_v44 = vcombine.low %v4045_v37, %v4053_v40  ;;  %v4070_v45 = vcombine.low %v4046_v38, %v4054_v41  ;;  %v5160_v4 = vld [vmem:[%s6667_s1 + $0x1c8] sm:$0xff]   ;;  %v177_v8 = vld [vmem:[%s5575_s5 + $0x18] sm:$0xf]  ;;  %v5171_v33 = vld [vmem:[%s6667_s1 + $0x110] sm:$0xff]  }
  0x1f   : > { %4787 = vmatprep.subr.bf16.mxu1 %v5134_v17  ;;  %v255_v48 = vshrl.u32 %v4062_v39, 16  ;;  %v257_v49 = vshll.u32 %v4062_v39, 16  ;;  %v5161_v7 = vld [vmem:[%s6667_s1 + $0x108] sm:$0xff]   ;;  %v184_v9 = vld [vmem:[%s5575_s5 + $0x14] sm:$0x1]  ;;  %v4081_v39 = vcombine.low %v176_v5, %v177_v8  ;;  %v5173_v40 = vld [vmem:[%s6667_s1 + $0x158] sm:$0xff]  }
  0x20   : > { %v252_v50 = vrot.slane %v250_v43, 1  ;;  %v344_v51 = vshrl.u32 %v4069_v44, 16  ;;  %v346_v52 = vshll.u32 %v4069_v44, 16  ;;  %v351_v54 = vshrl.u32 %v4070_v45, 16  ;;  %v185_v10 = vld [vmem:[%s5575_s5 + $0x1c] sm:$0x1] }
  0x21   : > { %4748 = vmatpush3.bf16.msra.mxu0 %v5135_v18  ;;  %v259_v53 = vrot.slane %v257_v49, 1  ;;  %v353_v55 = vshll.u32 %v4070_v45, 16  ;;  %v4063_v11 = vcombine.low %v176_v5, %v184_v9  ;;  %v4064_v12 = vcombine.low %v177_v8, %v185_v10  ;;  %v5617_v13 = vld [vmem:[%s5575_s5 + $0x18] sm:$0xf]  ;;  %v5620_v14 = vld [vmem:[%s5575_s5 + $0x20] sm:$0xf] }
  0x22   : > { %4788 = vmatpush3.bf16.msra.mxu1 %v5136_v19  ;;  %4749 = vmatprep.subr.bf16.mxu0 %v5137_v20  ;;  %v253_v56 = vor.u32 %v252_v50, %v248_v42  ;;  %v348_v57 = vrot.slane %v346_v52, 1  ;;  %v4055_v15 = vld [vmem:[%s5575_s5 + $0x1c] sm:$0x1]  ;;  %v5162_v16 = vld [vmem:[%s6667_s1 + $0x188] sm:$0xff]   ;;  %v4056_v17 = vld [vmem:[%s5575_s5 + $0x24] sm:$0x1]  ;;  %v4083_v45 = vcombine.low %v5617_v13, %v5620_v14 }
  0x23   : > { %4789 = vmatprep.subr.bf16.mxu1 %v5138_v21  ;;  %v260_v58 = vor.u32 %v259_v53, %v255_v48  ;;  %v355_v59 = vrot.slane %v353_v55, 1  ;;  %v4071_v18 = vcombine.low %v5617_v13, %v4055_v15  ;;  %v262_v19 = vshrl.u32 %v4063_v11, 16  ;;  %v5172_v36 = vld [vmem:[%s6667_s1 + $0x190] sm:$0xff]   ;;  %v5174_v42 = vld [vmem:[%s6667_s1 + $0x1d8] sm:$0xff]   ;;  %v179_v49 = vld [vmem:[%s5575_s5 + $0x28] sm:$0xf] }
  0x24   : > { %v349_v61 = vor.u32 %v348_v57, %v344_v51  ;;  %v264_v20 = vshll.u32 %v4063_v11, 16  ;;  %v269_v21 = vshrl.u32 %v4064_v12, 16  ;;  %v5175_v44 = vld [vmem:[%s6667_s1 + $0x118] sm:$0xff]   ;;  %v186_v50 = vld [vmem:[%s5575_s5 + $0x24] sm:$0x1] }
  0x25   : > { %4750 = vmatpush3.bf16.msra.mxu0 %v5139_v22  ;;  %v4078_v63 = vcombine.low %v253_v56, %v260_v58  ;;  %v356_v0 = vor.u32 %v355_v59, %v351_v54  ;;  %v271_v22 = vshll.u32 %v4064_v12, 16  ;;  %v187_v51 = vld [vmem:[%s5575_s5 + $0x2c] sm:$0x1]  ;;  %v4049_v54 = vld [vmem:[%s5575_s5 + $0x28] sm:$0xf]  ;;  %v5185_v9 = vld [vmem:[%s6667_s1 + $0x120] sm:$0xff]  }
  0x26   : > { %4790 = vmatpush3.bf16.msra.mxu1 %v5140_v23  ;;  %4751 = vmatprep.subr.bf16.mxu0 %v5141_v24  ;;  %v5169_v23 = vld [vmem:[%s6667_s1 + $0x150] sm:$0xff]   ;;  %v4066_v53 = vcombine.low %v179_v49, %v187_v51  ;;  %v4057_v56 = vld [vmem:[%s5575_s5 + $0x2c] sm:$0x1]  ;;  %v5186_v12 = vld [vmem:[%s6667_s1 + $0x1a0] sm:$0xff]  }
  0x27   : > { %4791 = vmatprep.subr.bf16.mxu1 %v5142_v25  ;;  %735 = vmatprep.mubr.bf16.mxu0 %v4078_v63  ;;  %v4080_v6 = vcombine.low %v349_v61, %v356_v0  ;;  %v5170_v24 = vld [vmem:[%s6667_s1 + $0x1d0] sm:$0xff]   ;;  %v4072_v25 = vcombine.low %v5620_v14, %v4056_v17  ;;  %v4073_v58 = vcombine.low %v4049_v54, %v4057_v56  ;;  %v5183_v63 = vld [vmem:[%s6667_s1 + $0x160] sm:$0xff]   ;;  %v5201_v56 = vld [vmem:[%s6667_s1 + $0x178] sm:$0xff]  }
  0x28   : > { %v4050_v55 = vld [vmem:[%s5575_s5 + $0x30] sm:$0xf]  ;;  %v4058_v57 = vld [vmem:[%s5575_s5 + $0x34] sm:$0x1]  ;;  %v283_v61 = vshrl.u32 %v4066_v53, 16  ;;  %v5184_v0 = vld [vmem:[%s6667_s1 + $0x1e0] sm:$0xff]  }
  0x29   : > { %4752 = vmatpush3.bf16.msra.mxu0 %v5143_v26  ;;  %800 = vmatprep.mubr.bf16.mxu1 %v4080_v6  ;;  %v358_v26 = vshrl.u32 %v4071_v18, 16  ;;  %v367_v32 = vshll.u32 %v4072_v25, 16 }
  0x2a   : > { %4792 = vmatpush3.bf16.msra.mxu1 %v5144_v27  ;;  %4753 = vmatprep.subr.bf16.mxu0 %v5145_v28  ;;  %v360_v27 = vshll.u32 %v4071_v18, 16  ;;  %v266_v28 = vrot.slane %v264_v20, 1  ;;  %v5188_v18 = vld [vmem:[%s6667_s1 + $0x1e8] sm:$0xff]  }
  0x2b   : > { %4793 = vmatprep.subr.bf16.mxu1 %v5146_v29  ;;  %v273_v29 = vrot.slane %v271_v22, 1  ;;  %v369_v38 = vrot.slane %v367_v32, 1  ;;  %v5189_v20 = vld [vmem:[%s6667_s1 + $0x128] sm:$0xff]   ;;  %v4059_v32 = vld [vmem:[%s5575_s5 + $0x3c] sm:$0x1] }
  0x2c   : > { %v267_v34 = vor.u32 %v266_v28, %v262_v19  ;;  %v5190_v22 = vld [vmem:[%s6667_s1 + $0x1a8] sm:$0xff]  }
  0x2d   : > { %4754 = vmatpush3.bf16.msra.mxu0 %v5147_v30  ;;  %v362_v30 = vrot.slane %v360_v27, 1  ;;  %v274_v35 = vor.u32 %v273_v29, %v269_v21  ;;  %v4087_v21 = vcombine.low %v4049_v54, %v4050_v55  ;;  %v189_v27 = vld [vmem:[%s5575_s5 + $0x3c] sm:$0x1] }
  0x2e   : > { %4794 = vmatpush3.bf16.msra.mxu1 %v5148_v31  ;;  %4819 = vmatprep.subr.bf16.mxu0 %v5155_v46  ;;  %v365_v31 = vshrl.u32 %v4072_v25, 16  ;;  %v5176_v46 = vld [vmem:[%s6667_s1 + $0x198] sm:$0xff]  }
  0x2f   : > { %4859 = vmatprep.subr.bf16.mxu1 %v5156_v47  ;;  %v363_v37 = vor.u32 %v362_v30, %v358_v26  ;;  %v4082_v41 = vcombine.low %v267_v34, %v274_v35  ;;  %v178_v47 = vld [vmem:[%s5575_s5 + $0x20] sm:$0xf]  ;;  %v181_v25 = vld [vmem:[%s5575_s5 + $0x38] sm:$0xf]  ;;  %v188_v26 = vld [vmem:[%s5575_s5 + $0x34] sm:$0x1] }
  0x30   : > { %736 = vmatmul.mubr.bf16.vlgmr.msra.gmra.mrb[0].mxu0 %v4077_v62  ;;  %v370_v43 = vor.u32 %v369_v38, %v365_v31  ;;  %v4065_v52 = vcombine.low %v178_v47, %v186_v50  ;;  %v285_v62 = vshll.u32 %v4066_v53, 16  ;;  %v4085_v15 = vcombine.low %v178_v47, %v179_v49  ;;  %v4051_v30 = vld [vmem:[%s5575_s5 + $0x38] sm:$0xf]  ;;  %v4052_v31 = vld [vmem:[%s5575_s5 + $0x40] sm:$0xf]  ;;  %v5199_v49 = vld [vmem:[%s6667_s1 + $0x130] sm:$0xff]  }
  0x31   : > { %4820 = vmatpush3.bf16.msra.mxu0 %v5157_v60  ;;  %801 = vmatmul.mubr.bf16.vlgmr.msra.gmra.mrb[0].mxu1 %v4079_v3  ;;  %v374_v3 = vshll.u32 %v4073_v58, 16  ;;  %v4068_v29 = vcombine.low %v181_v25, %v189_v27  ;;  %v4075_v34 = vcombine.low %v4051_v30, %v4059_v32 }
  0x32   : > { %4821 = vmatprep.subr.bf16.mxu0 %v5159_v2  ;;  %4860 = vmatpush3.bf16.msra.mxu1 %v5158_v1  ;;  %v4084_v48 = vcombine.low %v363_v37, %v370_v43  ;;  %v276_v59 = vshrl.u32 %v4065_v52, 16  ;;  %v278_v60 = vshll.u32 %v4065_v52, 16  ;;  %v4074_v1 = vcombine.low %v4050_v55, %v4058_v57  ;;  %v5200_v52 = vld [vmem:[%s6667_s1 + $0x1b0] sm:$0xff]  }
  0x33   : > { %4861 = vmatprep.subr.bf16.mxu1 %v5160_v4  ;;  %743 = vmatprep.mubr.bf16.mxu0 %v4082_v41  ;;  %v372_v2 = vshrl.u32 %v4073_v58, 16  ;;  %v287_v5 = vrot.slane %v285_v62, 1  ;;  %v376_v6 = vrot.slane %v374_v3, 1  ;;  %v297_v37 = vshrl.u32 %v4068_v29, 16  ;;  %v5202_v58 = vld [vmem:[%s6667_s1 + $0x1f8] sm:$0xff]  }
  0x34   : > { %808 = vmatprep.mubr.bf16.mxu1 %v4084_v48  ;;  %v280_v4 = vrot.slane %v278_v60, 1  ;;  %v381_v8 = vshll.u32 %v4074_v1, 16  ;;  %v299_v38 = vshll.u32 %v4068_v29, 16  ;;  %v388_v43 = vshll.u32 %v4075_v34, 16  ;;  %v5203_v60 = vld [vmem:[%s6667_s1 + $0x138] sm:$0xff]  }
  0x35   : > { %4822 = vmatpush3.bf16.msra.mxu0 %v5161_v7  ;;  %v379_v7 = vshrl.u32 %v4074_v1, 16  ;;  %v288_v11 = vor.u32 %v287_v5, %v283_v61  ;;  %v377_v13 = vor.u32 %v376_v6, %v372_v2  ;;  %v4091_v61 = vcombine.low %v4051_v30, %v4052_v31  ;;  %v5204_v62 = vld [vmem:[%s6667_s1 + $0x1b8] sm:$0xff]   ;;  %v897_v1 = vld [vmem:[%s5575_s5 + $0xc] sm:$0x1]  ;;  %v910_v2 = vld [vmem:[%s5575_s5] sm:$0xe] }
  0x36   : > { %4823 = vmatprep.subr.bf16.mxu0 %v5169_v23  ;;  %4862 = vmatpush3.bf16.msra.mxu1 %v5162_v16  ;;  %v281_v10 = vor.u32 %v280_v4, %v276_v59  ;;  %v383_v14 = vrot.slane %v381_v8, 1  ;;  %v5187_v16 = vld [vmem:[%s6667_s1 + $0x168] sm:$0xff]   ;;  %v180_v23 = vld [vmem:[%s5575_s5 + $0x30] sm:$0xf] }
  0x37   : > { %4863 = vmatprep.subr.bf16.mxu1 %v5170_v24  ;;  %v4067_v28 = vcombine.low %v180_v23, %v188_v26  ;;  %v4089_v55 = vcombine.low %v180_v23, %v181_v25  ;;  %v911_v3 = vld [vmem:[%s5575_s5 + $0x8] sm:$0xe]  ;;  %v4126_v6 = vld [vmem:[%s5575_s5 + $0xc] sm:$0x1] }
  0x38   : > { %744 = vmatmul.mubr.bf16.gmra.mrb[4].mxu0 %v4081_v39  ;;  %v4086_v17 = vcombine.low %v281_v10, %v288_v11  ;;  %v384_v19 = vor.u32 %v383_v14, %v379_v7  ;;  %v5197_v39 = vld [vmem:[%s6667_s1 + $0x170] sm:$0xff]   ;;  %v4150_v5 = vcombine.low %v911_v3, %v897_v1  ;;  %v896_v14 = vld [vmem:[%s5575_s5 + $0x8] sm:$0xf] }
  0x39   : > { %4824 = vmatpush3.bf16.msra.mxu0 %v5171_v33  ;;  %809 = vmatmul.mubr.bf16.gmra.mrb[4].mxu1 %v4083_v45  ;;  %v4060_v33 = vld [vmem:[%s5575_s5 + $0x44] sm:$0x1]  ;;  %v290_v35 = vshrl.u32 %v4067_v28, 16  ;;  %v301_v45 = vrot.slane %v299_v38, 1  ;;  %v4128_v7 = vld [vmem:[%s5575_s5 + $0x14] sm:$0x1] }
  0x3a   : > { %4825 = vmatprep.subr.bf16.mxu0 %v5173_v40  ;;  %4864 = vmatpush3.bf16.msra.mxu1 %v5172_v36  ;;  %v4088_v24 = vcombine.low %v377_v13, %v384_v19  ;;  %v292_v36 = vshll.u32 %v4067_v28, 16  ;;  %v5198_v40 = vld [vmem:[%s6667_s1 + $0x1f0] sm:$0xff]   ;;  %v4076_v41 = vcombine.low %v4052_v31, %v4060_v33  ;;  %v1006_v10 = vshrl.u32 %v4150_v5, 16  ;;  %v894_v13 = vld [vmem:[%s5575_s5] sm:$0xf] }
  0x3b   : > { %4865 = vmatprep.subr.bf16.mxu1 %v5174_v42  ;;  %751 = vmatprep.mubr.bf16.mxu0 %v4086_v17  ;;  %v386_v42 = vshrl.u32 %v4075_v34, 16  ;;  %v302_v51 = vor.u32 %v301_v45, %v297_v37  ;;  %v1008_v11 = vshll.u32 %v4150_v5, 16  ;;  %v4125_v26 = vld [vmem:[%s5575_s5 + $0x8] sm:$0xf]  ;;  %v4127_v34 = vld [vmem:[%s5575_s5 + $0x10] sm:$0xf] }
  0x3c   : > { %816 = vmatprep.mubr.bf16.mxu1 %v4088_v24  ;;  %v393_v47 = vshrl.u32 %v4076_v41, 16  ;;  %v395_v48 = vshll.u32 %v4076_v41, 16 }
  0x3d   : > { %4826 = vmatpush3.bf16.msra.mxu0 %v5175_v44  ;;  %v294_v44 = vrot.slane %v292_v36, 1 }
  0x3e   : > { %4866 = vmatpush3.bf16.msra.mxu1 %v5176_v46  ;;  %4827 = vmatprep.subr.bf16.mxu0 %v5183_v63  ;;  %v390_v46 = vrot.slane %v388_v43, 1  ;;  %v397_v54 = vrot.slane %v395_v48, 1 }
  0x3f   : > { %4867 = vmatprep.subr.bf16.mxu1 %v5184_v0  ;;  %v295_v50 = vor.u32 %v294_v44, %v290_v35  ;;  %v895_v0 = vld [vmem:[%s5575_s5 + $0x4] sm:$0x1] }
  0x40   : > { %752 = vmatmul.mubr.bf16.gmra.mrb[8].mxu0 %v4085_v15  ;;  %v391_v53 = vor.u32 %v390_v46, %v386_v42  ;;  %v398_v59 = vor.u32 %v397_v54, %v393_v47  ;;  %v4149_v4 = vcombine.low %v910_v2, %v895_v0  ;;  %v4142_v15 = vld [vmem:[%s5575_s5 + $0x10] sm:$0xe] }
  0x41   : > { %4828 = vmatpush3.bf16.msra.mxu0 %v5185_v9  ;;  %817 = vmatmul.mubr.bf16.gmra.mrb[8].mxu1 %v4087_v21  ;;  %v4090_v57 = vcombine.low %v295_v50, %v302_v51  ;;  %v4158_v19 = vcombine.low %v4142_v15, %v4128_v7  ;;  %v5210_v21 = vld [vmem:[%s6667_s1 + $0x2c0] sm:$0xff]  }
  0x42   : > { %4868 = vmatpush3.bf16.msra.mxu1 %v5186_v12  ;;  %4829 = vmatprep.subr.bf16.mxu0 %v5187_v16  ;;  %v4092_v63 = vcombine.low %v391_v53, %v398_v59  ;;  %v999_v8 = vshrl.u32 %v4149_v4, 16  ;;  %v1001_v9 = vshll.u32 %v4149_v4, 16  ;;  %v4141_v12 = vld [vmem:[%s5575_s5 + $0x8] sm:$0xe]  ;;  %v5742_v59 = vld [vmem:[%s5575_s5 + $0x14] sm:$0x1] }
  0x43   : > { %4869 = vmatprep.subr.bf16.mxu1 %v5188_v18  ;;  %759 = vmatprep.mubr.bf16.mxu0 %v4090_v57  ;;  %v4157_v16 = vcombine.low %v4141_v12, %v4126_v6  ;;  %v1010_v18 = vrot.slane %v1008_v11, 1  ;;  %v1120_v27 = vshll.u32 %v4158_v19, 16  ;;  %v1118_v29 = vshrl.u32 %v4158_v19, 16  ;;  %v5211_v15 = vld [vmem:[%s6667_s1 + $0x200] sm:$0xff]  }
  0x44   : > { %824 = vmatprep.mubr.bf16.mxu1 %v4092_v63  ;;  %v1003_v17 = vrot.slane %v1001_v9, 1 }
  0x45   : > { %4830 = vmatpush3.bf16.msra.mxu0 %v5189_v20  ;;  %v5209_v20 = vld [vmem:[%s6667_s1 + $0x240] sm:$0xff]   ;;  %v1113_v23 = vshll.u32 %v4157_v16, 16  ;;  %v1011_v25 = vor.u32 %v1010_v18, %v1006_v10  ;;  %v1122_v38 = vrot.slane %v1120_v27, 1  ;;  %v913_v10 = vld [vmem:[%s5575_s5 + $0x18] sm:$0xe] }
  0x46   : > { %4870 = vmatpush3.bf16.msra.mxu1 %v5190_v22  ;;  %4831 = vmatprep.subr.bf16.mxu0 %v5197_v39  ;;  %v1111_v22 = vshrl.u32 %v4157_v16, 16  ;;  %v1004_v24 = vor.u32 %v1003_v17, %v999_v8  ;;  %v5762_v17 = vld [vmem:[%s5575_s5 + $0x1c] sm:$0x1] }
  0x47   : > { %4871 = vmatprep.subr.bf16.mxu1 %v5198_v40  ;;  %v1115_v28 = vrot.slane %v1113_v23, 1  ;;  %v4171_v32 = vcombine.low %v896_v14, %v1011_v25  ;;  %v4174_v33 = vsel %vm4167_vm0, %v897_v1, %v1011_v25  ;;  %v1123_v45 = vor.u32 %v1122_v38, %v1118_v29  ;;  %v901_v1 = vld [vmem:[%s5575_s5 + $0x1c] sm:$0x1]  ;;  %v5768_v23 = vld [vmem:[%s5575_s5 + $0x24] sm:$0x1] }
  0x48   : > { %760 = vmatmul.mubr.bf16.gmra.mrb[12].mxu0 %v4089_v55  ;;  %v4165_v30 = vcombine.low %v894_v13, %v1004_v24  ;;  %v4168_v31 = vsel %vm4167_vm0, %v895_v0, %v1004_v24  ;;  %v1271_v36 = vshll.u32 %v4174_v33, 16  ;;  %v4152_v16 = vcombine.low %v913_v10, %v901_v1  ;;  %v4143_v24 = vld [vmem:[%s5575_s5 + $0x18] sm:$0xe]  ;;  %v4144_v29 = vld [vmem:[%s5575_s5 + $0x20] sm:$0xe] }
  0x49   : > { %4832 = vmatpush3.bf16.msra.mxu0 %v5199_v49  ;;  %825 = vmatmul.mubr.bf16.gmra.mrb[12].mxu1 %v4091_v61  ;;  %v1243_v35 = vshll.u32 %v4168_v31, 16  ;;  %v1116_v37 = vor.u32 %v1115_v28, %v1111_v22  ;;  %v1262_v41 = vshrl.u32 %v4171_v32, 16  ;;  %v1265_v42 = vshll.u32 %v4171_v32, 16  ;;  %v5215_v31 = vld [vmem:[%s6667_s1 + $0x208] sm:$0xff]   ;;  %v898_v32 = vld [vmem:[%s5575_s5 + $0x10] sm:$0xf] }
  0x4a   : > { %4872 = vmatpush3.bf16.msra.mxu1 %v5200_v52  ;;  %4833 = vmatprep.subr.bf16.mxu0 %v5201_v56  ;;  %v1234_v39 = vshrl.u32 %v4165_v30, 16  ;;  %v1237_v40 = vshll.u32 %v4165_v30, 16  ;;  %v1273_v44 = vrot.slane %v1271_v36, 5  ;;  %v4172_v52 = vcombine.low %v4127_v34, %v1123_v45  ;;  %v900_v33 = vld [vmem:[%s5575_s5 + $0x18] sm:$0xf] }
  0x4b   : > { %4873 = vmatprep.subr.bf16.mxu1 %v5202_v58  ;;  %v1245_v43 = vrot.slane %v1243_v35, 5  ;;  %v4166_v46 = vcombine.low %v4125_v26, %v1116_v37  ;;  %v1264_v49 = vrot.slane %v1262_v41, 4  ;;  %v1267_v50 = vrot.slane %v1265_v42, 5  ;;  %v5214_v41 = vld [vmem:[%s6667_s1 + $0x2c8] sm:$0xff]  }
  0x4c   : > { %v1236_v47 = vrot.slane %v1234_v39, 4  ;;  %v1239_v48 = vrot.slane %v1237_v40, 5  ;;  %v4170_v51 = vsel %vm4167_vm0, %v4126_v6, %v1116_v37  ;;  %v4176_v53 = vsel %vm4167_vm0, %v4128_v7, %v1123_v45  ;;  %v912_v6 = vld [vmem:[%s5575_s5 + $0x10] sm:$0xe]  ;;  %v5212_v37 = vld [vmem:[%s6667_s1 + $0x280] sm:$0xff]  }
  0x4d   : > { %4834 = vmatpush3.bf16.msra.mxu0 %v5203_v60  ;;  %v1248_v54 = vshrl.u32 %v4166_v46, 16  ;;  %v1268_v56 = vor.u32 %v1267_v50, %v1264_v49  ;;  %v1251_v57 = vshll.u32 %v4166_v46, 16  ;;  %v1257_v58 = vshll.u32 %v4170_v51, 16  ;;  %v5221_v45 = vld [vmem:[%s6667_s1 + $0x250] sm:$0xff]   ;;  %v4129_v50 = vld [vmem:[%s5575_s5 + $0x18] sm:$0xf] }
  0x4e   : > { %4874 = vmatpush3.bf16.msra.mxu1 %v5204_v62  ;;  %4899 = vmatprep.subr.bf16.mxu0 %v5209_v20  ;;  %v1240_v55 = vor.u32 %v1239_v48, %v1236_v47  ;;  %v1276_v62 = vshrl.u32 %v4172_v52, 16  ;;  %v1279_v63 = vshll.u32 %v4172_v52, 16  ;;  %v1285_v0 = vshll.u32 %v4176_v53, 16  ;;  %v5216_v53 = vld [vmem:[%s6667_s1 + $0x288] sm:$0xff]  }
  0x4f   : > { %4939 = vmatprep.subr.bf16.mxu1 %v5210_v21  ;;  %v1250_v61 = vrot.slane %v1248_v54, 4  ;;  %v1269_v3 = vrot.slane %v1268_v56, 4  ;;  %v1253_v4 = vrot.slane %v1251_v57, 5  ;;  %v1259_v5 = vrot.slane %v1257_v58, 5  ;;  %v5213_v21 = vld [vmem:[%s6667_s1 + $0x248] sm:$0xff]  }
  0x50   : > { %v1241_v2 = vrot.slane %v1240_v55, 4  ;;  %v1278_v7 = vrot.slane %v1276_v62, 4  ;;  %v1281_v8 = vrot.slane %v1279_v63, 5  ;;  %v1287_v9 = vrot.slane %v1285_v0, 5  ;;  %v4131_v58 = vld [vmem:[%s5575_s5 + $0x20] sm:$0xf] }
  0x51   : > { %v4151_v11 = vcombine.low %v912_v6, %v5742_v59  ;;  %v1274_v13 = vsel %vm5746_vm3, %v1269_v3, %v1273_v44  ;;  %v1254_v14 = vor.u32 %v1253_v4, %v1250_v61  ;;  %v1020_v27 = vshrl.u32 %v4152_v16, 16  ;;  %v5223_v61 = vld [vmem:[%s6667_s1 + $0x210] sm:$0xff]  }
  0x52   : > { %v1246_v12 = vsel %vm5746_vm3, %v1241_v2, %v1245_v43  ;;  %v1282_v20 = vor.u32 %v1281_v8, %v1278_v7  ;;  %v1022_v28 = vshll.u32 %v4152_v16, 16  ;;  %v4159_v34 = vcombine.low %v4143_v24, %v5762_v17  ;;  %v5222_v3 = vld [vmem:[%s6667_s1 + $0x2d0] sm:$0xff]   ;;  %v5233_v24 = vld [vmem:[%s6667_s1 + $0x260] sm:$0xff]  }
  0x53   : > { %v4277_v18 = vcombine.low %v1246_v12, %v1274_v13  ;;  %v4278_v19 = vcombine.high %v1246_v12, %v1274_v13  ;;  %v1013_v22 = vshrl.u32 %v4151_v11, 16  ;;  %v1255_v25 = vrot.slane %v1254_v14, 4 }
  0x54   : > { %v1015_v26 = vshll.u32 %v4151_v11, 16  ;;  %v1283_v30 = vrot.slane %v1282_v20, 4  ;;  %v4160_v35 = vcombine.low %v4144_v29, %v5768_v23  ;;  %v1024_v39 = vrot.slane %v1022_v28, 1  ;;  %v5829_v28 = vld [vmem:[%s5575_s5 + $0x2c] sm:$0x1] }
  0x55   : > { %1810 = vmatprep.mubr.bf16.mxu0 %v4278_v19  ;;  %v1260_v36 = vsel %vm5746_vm3, %v1255_v25, %v1259_v5  ;;  %v1125_v42 = vshrl.u32 %v4159_v34, 16  ;;  %v1127_v43 = vshll.u32 %v4159_v34, 16 }
  0x56   : > { %1811 = vmatmul.mubr.bf16.vlgmr.msra.gmra.mrb[16].mxu0 %v4277_v18  ;;  %v1017_v38 = vrot.slane %v1015_v26, 1  ;;  %v1288_v40 = vsel %vm5746_vm3, %v1283_v30, %v1287_v9  ;;  %v1132_v44 = vshrl.u32 %v4160_v35, 16  ;;  %v1025_v49 = vor.u32 %v1024_v39, %v1020_v27  ;;  %v5826_v27 = vld [vmem:[%s5575_s5 + $0x24] sm:$0x1] }
  0x57   : > { %4900 = vmatpush3.bf16.msra.mxu0 %v5211_v15  ;;  %v4279_v46 = vcombine.low %v1260_v36, %v1288_v40  ;;  %v4280_v47 = vcombine.high %v1260_v36, %v1288_v40  ;;  %v1129_v51 = vrot.slane %v1127_v43, 1  ;;  %v1134_v52 = vshll.u32 %v4160_v35, 16  ;;  %v5224_v15 = vld [vmem:[%s6667_s1 + $0x290] sm:$0xff]   ;;  %v5235_v43 = vld [vmem:[%s6667_s1 + $0x220] sm:$0xff]  }
  0x58   : > { %4901 = vmatprep.subr.bf16.mxu0 %v5213_v21  ;;  %v1018_v48 = vor.u32 %v1017_v38, %v1013_v22  ;;  %v4183_v56 = vcombine.low %v900_v33, %v1025_v49  ;;  %v4186_v57 = vsel %vm4167_vm0, %v901_v1, %v1025_v49  ;;  %v5226_v21 = vld [vmem:[%s6667_s1 + $0x2d8] sm:$0xff]   ;;  %v914_v33 = vld [vmem:[%s5575_s5 + $0x20] sm:$0xe]  ;;  %v915_v38 = vld [vmem:[%s5575_s5 + $0x28] sm:$0xe] }
  0x59   : > { %1875 = vmatprep.mubr.bf16.mxu1 %v4280_v47  ;;  %v1327_v63 = vshll.u32 %v4186_v57, 16  ;;  %v1130_v0 = vor.u32 %v1129_v51, %v1125_v42  ;;  %v1136_v2 = vrot.slane %v1134_v52, 1  ;;  %v5227_v22 = vld [vmem:[%s6667_s1 + $0x218] sm:$0xff]   ;;  %v4153_v42 = vcombine.low %v914_v33, %v5826_v27  ;;  %v5846_v49 = vld [vmem:[%s5575_s5 + $0x2c] sm:$0x1]  ;;  %v5234_v57 = vld [vmem:[%s6667_s1 + $0x2e0] sm:$0xff]  }
  0x5a   : > { %v4177_v54 = vcombine.low %v898_v32, %v1018_v48  ;;  %v4180_v55 = vsel %vm4167_vm0, %v5742_v59, %v1018_v48  ;;  %1876 = vmatmul.mubr.bf16.vlgmr.msra.gmra.mrb[16].mxu1 %v4279_v46  ;;  %v5225_v59 = vld [vmem:[%s6667_s1 + $0x258] sm:$0xff]   ;;  %v1318_v5 = vshrl.u32 %v4183_v56, 16  ;;  %v1321_v6 = vshll.u32 %v4183_v56, 16  ;;  %v4146_v56 = vld [vmem:[%s5575_s5 + $0x30] sm:$0xe] }
  0x5b   : > { %4902 = vmatpush3.bf16.msra.mxu0 %v5215_v31  ;;  %v1299_v62 = vshll.u32 %v4180_v55, 16  ;;  %4940 = vmatpush3.bf16.msra.mxu1 %v5212_v37  ;;  %v1329_v8 = vrot.slane %v1327_v63, 5  ;;  %v1137_v9 = vor.u32 %v1136_v2, %v1132_v44  ;;  %v4178_v10 = vcombine.low %v4129_v50, %v1130_v0  ;;  %v5228_v47 = vld [vmem:[%s6667_s1 + $0x298] sm:$0xff]   ;;  %v5849_v50 = vld [vmem:[%s5575_s5 + $0x34] sm:$0x1] }
  0x5c   : > { %v1290_v1 = vshrl.u32 %v4177_v54, 16  ;;  %v1293_v4 = vshll.u32 %v4177_v54, 16  ;;  %4903 = vmatprep.subr.bf16.mxu0 %v5221_v45  ;;  %4941 = vmatprep.subr.bf16.mxu1 %v5214_v41  ;;  %v1320_v13 = vrot.slane %v1318_v5, 4  ;;  %v1323_v14 = vrot.slane %v1321_v6, 5  ;;  %v4145_v55 = vld [vmem:[%s5575_s5 + $0x28] sm:$0xe] }
  0x5d   : > { %v1301_v7 = vrot.slane %v1299_v62, 5  ;;  %v4182_v16 = vsel %vm4167_vm0, %v5762_v17, %v1130_v0  ;;  %v4184_v18 = vcombine.low %v4131_v58, %v1137_v9  ;;  %v4188_v19 = vsel %vm4167_vm0, %v5768_v23, %v1137_v9  ;;  %v902_v2 = vld [vmem:[%s5575_s5 + $0x20] sm:$0xf] }
  0x5e   : > { %v1292_v11 = vrot.slane %v1290_v1, 4  ;;  %v1295_v12 = vrot.slane %v1293_v4, 5  ;;  %v1304_v20 = vshrl.u32 %v4178_v10, 16  ;;  %v1324_v25 = vor.u32 %v1323_v14, %v1320_v13  ;;  %v5237_v4 = vld [vmem:[%s6667_s1 + $0x268] sm:$0xff]  }
  0x5f   : > { %4904 = vmatpush3.bf16.msra.mxu0 %v5223_v61  ;;  %4942 = vmatpush3.bf16.msra.mxu1 %v5216_v53  ;;  %v1307_v23 = vshll.u32 %v4178_v10, 16  ;;  %v1313_v26 = vshll.u32 %v4182_v16, 16  ;;  %v1332_v30 = vshrl.u32 %v4184_v18, 16  ;;  %v1335_v31 = vshll.u32 %v4184_v18, 16  ;;  %v5238_v13 = vld [vmem:[%s6667_s1 + $0x2e8] sm:$0xff]  }
  0x60   : > { %v1296_v17 = vor.u32 %v1295_v12, %v1292_v11  ;;  %4905 = vmatprep.subr.bf16.mxu0 %v5225_v59  ;;  %v1306_v29 = vrot.slane %v1304_v20, 4  ;;  %v1341_v32 = vshll.u32 %v4188_v19, 16  ;;  %4943 = vmatprep.subr.bf16.mxu1 %v5222_v3  ;;  %v1325_v35 = vrot.slane %v1324_v25, 4  ;;  %v904_v3 = vld [vmem:[%s5575_s5 + $0x28] sm:$0xf] }
  0x61   : > { %v1309_v36 = vrot.slane %v1307_v23, 5  ;;  %v1315_v37 = vrot.slane %v1313_v26, 5  ;;  %v1334_v39 = vrot.slane %v1332_v30, 4  ;;  %v1337_v40 = vrot.slane %v1335_v31, 5  ;;  %v4133_v19 = vld [vmem:[%s5575_s5 + $0x28] sm:$0xf] }
  0x62   : > { %v1297_v34 = vrot.slane %v1296_v17, 4  ;;  %v1343_v41 = vrot.slane %v1341_v32, 5  ;;  %v1330_v45 = vsel %vm5746_vm3, %v1325_v35, %v1329_v8  ;;  %v4154_v48 = vcombine.low %v915_v38, %v5829_v28  ;;  %v5236_v8 = vld [vmem:[%s6667_s1 + $0x2a0] sm:$0xff]   ;;  %v4135_v23 = vld [vmem:[%s5575_s5 + $0x30] sm:$0xf]  ;;  %v5239_v32 = vld [vmem:[%s6667_s1 + $0x228] sm:$0xff]  }
  0x63   : > { %4906 = vmatpush3.bf16.msra.mxu0 %v5227_v22  ;;  %v1310_v46 = vor.u32 %v1309_v36, %v1306_v29  ;;  %4944 = vmatpush3.bf16.msra.mxu1 %v5224_v15  ;;  %v1338_v52 = vor.u32 %v1337_v40, %v1334_v39  ;;  %v1027_v54 = vshrl.u32 %v4153_v42, 16  ;;  %v1029_v61 = vshll.u32 %v4153_v42, 16  ;;  %v5240_v39 = vld [vmem:[%s6667_s1 + $0x2a8] sm:$0xff]   ;;  %v5245_v40 = vld [vmem:[%s6667_s1 + $0x270] sm:$0xff]  }
  0x64   : > { %v1302_v44 = vsel %vm5746_vm3, %v1297_v34, %v1301_v7  ;;  %4945 = vmatprep.subr.bf16.mxu1 %v5226_v21  ;;  %4907 = vmatprep.subr.bf16.mxu0 %v5233_v24  ;;  %v1034_v62 = vshrl.u32 %v4154_v48, 16  ;;  %v1036_v63 = vshll.u32 %v4154_v48, 16  ;;  %v4161_v59 = vcombine.low %v4145_v55, %v5846_v49 }
  0x65   : > { %v4282_v51 = vcombine.high %v1302_v44, %v1330_v45  ;;  %v4281_v53 = vcombine.low %v1302_v44, %v1330_v45  ;;  %v1311_v58 = vrot.slane %v1310_v46, 4  ;;  %v1339_v0 = vrot.slane %v1338_v52, 4  ;;  %v5246_v52 = vld [vmem:[%s6667_s1 + $0x2f0] sm:$0xff]  }
  0x66   : > { %v4162_v1 = vcombine.low %v4146_v56, %v5849_v50  ;;  %v1031_v6 = vrot.slane %v1029_v61, 1  ;;  %v1038_v7 = vrot.slane %v1036_v63, 1  ;;  %v1139_v10 = vshrl.u32 %v4161_v59, 16  ;;  %v917_v63 = vld [vmem:[%s5575_s5 + $0x38] sm:$0xe] }
  0x67   : > { %1818 = vmatprep.mubr.bf16.mxu0 %v4282_v51  ;;  %4908 = vmatpush3.bf16.msra.mxu0 %v5235_v43  ;;  %v1316_v5 = vsel %vm5746_vm3, %v1311_v58, %v1315_v37  ;;  %v1344_v9 = vsel %vm5746_vm3, %v1339_v0, %v1343_v41  ;;  %v1141_v11 = vshll.u32 %v4161_v59, 16  ;;  %v5893_v51 = vld [vmem:[%s5575_s5 + $0x34] sm:$0x1] }
  0x68   : > { %1819 = vmatmul.mubr.bf16.gmra.mrb[20].mxu0 %v4281_v53  ;;  %4946 = vmatpush3.bf16.msra.mxu1 %v5228_v47  ;;  %v1146_v12 = vshrl.u32 %v4162_v1, 16  ;;  %v4284_v14 = vcombine.high %v1316_v5, %v1344_v9  ;;  %v4283_v15 = vcombine.low %v1316_v5, %v1344_v9  ;;  %v1032_v16 = vor.u32 %v1031_v6, %v1027_v54 }
  0x69   : > { %4947 = vmatprep.subr.bf16.mxu1 %v5234_v57  ;;  %4909 = vmatprep.subr.bf16.mxu0 %v5237_v4  ;;  %v1039_v18 = vor.u32 %v1038_v7, %v1034_v62  ;;  %v1143_v20 = vrot.slane %v1141_v11, 1  ;;  %v1148_v21 = vshll.u32 %v4162_v1, 16  ;;  %v5899_v57 = vld [vmem:[%s5575_s5 + $0x3c] sm:$0x1] }
  0x6a   : > { %1883 = vmatprep.mubr.bf16.mxu1 %v4284_v14  ;;  %v4189_v22 = vcombine.low %v902_v2, %v1032_v16  ;;  %v4192_v24 = vsel %vm4167_vm0, %v5826_v27, %v1032_v16  ;;  %v5905_v7 = vld [vmem:[%s5575_s5 + $0x3c] sm:$0x1]  ;;  %v4147_v14 = vld [vmem:[%s5575_s5 + $0x38] sm:$0xe] }
  0x6b   : > { %v4195_v17 = vcombine.low %v904_v3, %v1039_v18  ;;  %v4198_v25 = vsel %vm4167_vm0, %v5829_v28, %v1039_v18  ;;  %1884 = vmatmul.mubr.bf16.gmra.mrb[20].mxu1 %v4283_v15  ;;  %v1355_v26 = vshll.u32 %v4192_v24, 16  ;;  %v1144_v30 = vor.u32 %v1143_v20, %v1139_v10  ;;  %4910 = vmatpush3.bf16.msra.mxu0 %v5239_v32  ;;  %v4148_v15 = vld [vmem:[%s5575_s5 + $0x40] sm:$0xe]  ;;  %v5249_v32 = vld [vmem:[%s6667_s1 + $0x278] sm:$0xff]  }
  0x6c   : > { %v1383_v29 = vshll.u32 %v4198_v25, 16  ;;  %v1150_v31 = vrot.slane %v1148_v21, 1  ;;  %v1346_v33 = vshrl.u32 %v4189_v22, 16  ;;  %v1349_v34 = vshll.u32 %v4189_v22, 16  ;;  %4948 = vmatpush3.bf16.msra.mxu1 %v5236_v8  ;;  %4911 = vmatprep.subr.bf16.mxu0 %v5245_v40  ;;  %v5247_v8 = vld [vmem:[%s6667_s1 + $0x230] sm:$0xff]  }
  0x6d   : > { %v1374_v35 = vshrl.u32 %v4195_v17, 16  ;;  %v1377_v36 = vshll.u32 %v4195_v17, 16  ;;  %v1357_v27 = vrot.slane %v1355_v26, 5  ;;  %v4190_v28 = vcombine.low %v4133_v19, %v1144_v30  ;;  %4949 = vmatprep.subr.bf16.mxu1 %v5238_v13  ;;  %v5916_v13 = vld [vmem:[%s5575_s5 + $0x44] sm:$0x1]  ;;  %v5248_v21 = vld [vmem:[%s6667_s1 + $0x2b0] sm:$0xff]  }
  0x6e   : > { %v1385_v37 = vrot.slane %v1383_v29, 5  ;;  %v1151_v38 = vor.u32 %v1150_v31, %v1146_v12  ;;  %v1348_v41 = vrot.slane %v1346_v33, 4  ;;  %v1351_v42 = vrot.slane %v1349_v34, 5  ;;  %v906_v26 = vld [vmem:[%s5575_s5 + $0x30] sm:$0xf] }
  0x6f   : > { %v1376_v43 = vrot.slane %v1374_v35, 4  ;;  %v1379_v44 = vrot.slane %v1377_v36, 5  ;;  %v4194_v45 = vsel %vm4167_vm0, %v5846_v49, %v1144_v30  ;;  %v1360_v48 = vshrl.u32 %v4190_v28, 16  ;;  %v916_v49 = vld [vmem:[%s5575_s5 + $0x30] sm:$0xe]  ;;  %4912 = vmatpush3.bf16.msra.mxu0 %v5247_v8 }
  0x70   : > { %v4196_v46 = vcombine.low %v4135_v23, %v1151_v38  ;;  %v4200_v47 = vsel %vm4167_vm0, %v5849_v50, %v1151_v38  ;;  %v1352_v53 = vor.u32 %v1351_v42, %v1348_v41  ;;  %v1363_v55 = vshll.u32 %v4190_v28, 16  ;;  %4950 = vmatpush3.bf16.msra.mxu1 %v5240_v39  ;;  %v908_v29 = vld [vmem:[%s5575_s5 + $0x38] sm:$0xf]  ;;  %4913 = vmatprep.subr.bf16.mxu0 %v5249_v32  ;;  %v4350_v32 = vld [vmem:[%s5575_s5 + $0x1c] sm:$0x1] }
  0x71   : > { %v1380_v54 = vor.u32 %v1379_v44, %v1376_v43  ;;  %v1369_v56 = vshll.u32 %v4194_v45, 16  ;;  %v1362_v58 = vrot.slane %v1360_v48, 4  ;;  %v1397_v62 = vshll.u32 %v4200_v47, 16  ;;  %4951 = vmatprep.subr.bf16.mxu1 %v5246_v52  ;;  %v5250_v28 = vld [vmem:[%s6667_s1 + $0x2f8] sm:$0xff]  }
  0x72   : > { %v1388_v50 = vshrl.u32 %v4196_v46, 16  ;;  %v1391_v61 = vshll.u32 %v4196_v46, 16  ;;  %v1353_v0 = vrot.slane %v1352_v53, 4  ;;  %v1365_v3 = vrot.slane %v1363_v55, 5  ;;  %v4137_v43 = vld [vmem:[%s5575_s5 + $0x38] sm:$0xf] }
  0x73   : > { %v1381_v2 = vrot.slane %v1380_v54, 4  ;;  %v1371_v59 = vrot.slane %v1369_v56, 5  ;;  %v1399_v5 = vrot.slane %v1397_v62, 5  ;;  %v4155_v6 = vcombine.low %v916_v49, %v5893_v51  ;;  %v5251_v53 = vld [vmem:[%s6667_s1 + $0x238] sm:$0xff]  }
  0x74   : > { %v1390_v1 = vrot.slane %v1388_v50, 4  ;;  %v1393_v4 = vrot.slane %v1391_v61, 5  ;;  %v1358_v9 = vsel %vm5746_vm3, %v1353_v0, %v1357_v27  ;;  %v1366_v11 = vor.u32 %v1365_v3, %v1362_v58  ;;  %4952 = vmatpush3.bf16.msra.mxu1 %v5248_v21  ;;  %v5252_v58 = vld [vmem:[%s6667_s1 + $0x2b8] sm:$0xff]   ;;  %4914 = vmatpush3.bf16.msra.mxu0 %v5251_v53 }
  0x75   : > { %v1386_v10 = vsel %vm5746_vm3, %v1381_v2, %v1385_v37  ;;  %v4156_v12 = vcombine.low %v917_v63, %v5899_v57  ;;  %v1041_v20 = vshrl.u32 %v4155_v6, 16  ;;  %v1043_v24 = vshll.u32 %v4155_v6, 16  ;;  %4953 = vmatprep.subr.bf16.mxu1 %v5250_v28  ;;  %v4139_v63 = vld [vmem:[%s5575_s5 + $0x40] sm:$0xf] }
  0x76   : > { %v4286_v16 = vcombine.high %v1358_v9, %v1386_v10  ;;  %v1394_v18 = vor.u32 %v1393_v4, %v1390_v1  ;;  %v4285_v19 = vcombine.low %v1358_v9, %v1386_v10  ;;  %v1367_v22 = vrot.slane %v1366_v11, 4  ;;  %v5954_v11 = vld [vmem:[%s5575_s5 + $0x8] sm:$0xf] }
  0x77   : > { %v1048_v17 = vshrl.u32 %v4156_v12, 16  ;;  %v1050_v25 = vshll.u32 %v4156_v12, 16  ;;  %v4163_v30 = vcombine.low %v4147_v14, %v5905_v7  ;;  %v4164_v31 = vcombine.low %v4148_v15, %v5916_v13  ;;  %v5957_v12 = vld [vmem:[%s5575_s5 + $0x10] sm:$0xf]  ;;  %v5259_v14 = vld [vmem:[%s6667_s1 + $0x340] sm:$0xff]  }
  0x78   : > { %1826 = vmatprep.mubr.bf16.mxu0 %v4286_v16  ;;  %v1395_v23 = vrot.slane %v1394_v18, 4  ;;  %v1372_v33 = vsel %vm5746_vm3, %v1367_v22, %v1371_v59  ;;  %v1045_v34 = vrot.slane %v1043_v24, 1  ;;  %4954 = vmatpush3.bf16.msra.mxu1 %v5252_v58 }
  0x79   : > { %1827 = vmatmul.mubr.bf16.gmra.mrb[24].mxu0 %v4285_v19  ;;  %v1052_v35 = vrot.slane %v1050_v25, 1  ;;  %v1153_v27 = vshrl.u32 %v4163_v30, 16  ;;  %v1155_v37 = vshll.u32 %v4163_v30, 16  ;;  %v1160_v38 = vshrl.u32 %v4164_v31, 16  ;;  %v4333_v19 = vld [vmem:[%s5575_s5 + $0xc] sm:$0x1]  ;;  %4979 = vmatprep.subr.bf16.mxu0 %v5259_v14 }
  0x7a   : > { %v1400_v36 = vsel %vm5746_vm3, %v1395_v23, %v1399_v5  ;;  %v1046_v41 = vor.u32 %v1045_v34, %v1041_v20  ;;  %v1162_v45 = vshll.u32 %v4164_v31, 16  ;;  %v4334_v20 = vld [vmem:[%s5575_s5 + $0x14] sm:$0x1]  ;;  %v5968_v30 = vld [vmem:[%s5575_s5 + $0x18] sm:$0xf]  ;;  %v5263_v14 = vld [vmem:[%s6667_s1 + $0x348] sm:$0xff]  }
  0x7b   : > { %v4288_v39 = vcombine.high %v1372_v33, %v1400_v36  ;;  %v4287_v40 = vcombine.low %v1372_v33, %v1400_v36  ;;  %v1053_v42 = vor.u32 %v1052_v35, %v1048_v17  ;;  %v1157_v44 = vrot.slane %v1155_v37, 1  ;;  %v4349_v31 = vld [vmem:[%s5575_s5 + $0x14] sm:$0x1] }
  0x7c   : > { %v4201_v46 = vcombine.low %v906_v26, %v1046_v41  ;;  %v4204_v47 = vsel %vm4167_vm0, %v5893_v51, %v1046_v41  ;;  %v1164_v49 = vrot.slane %v1162_v45, 1  ;;  %v4357_v36 = vcombine.low %v5954_v11, %v4333_v19 }
  0x7d   : > { %1891 = vmatprep.mubr.bf16.mxu1 %v4288_v39  ;;  %v4207_v48 = vcombine.low %v908_v29, %v1053_v42  ;;  %v4210_v52 = vsel %vm4167_vm0, %v5899_v57, %v1053_v42  ;;  %v1411_v54 = vshll.u32 %v4204_v47, 16  ;;  %v1158_v56 = vor.u32 %v1157_v44, %v1153_v27  ;;  %v5965_v29 = vld [vmem:[%s5575_s5 + $0x10] sm:$0xf]  ;;  %v5260_v27 = vld [vmem:[%s6667_s1 + $0x3c0] sm:$0xff]  }
  0x7e   : > { %1892 = vmatmul.mubr.bf16.gmra.mrb[24].mxu1 %v4287_v40  ;;  %v1439_v55 = vshll.u32 %v4210_v52, 16  ;;  %v1402_v50 = vshrl.u32 %v4201_v46, 16  ;;  %v1405_v61 = vshll.u32 %v4201_v46, 16  ;;  %v1165_v2 = vor.u32 %v1164_v49, %v1160_v38  ;;  %5019 = vmatprep.subr.bf16.mxu1 %v5260_v27  ;;  %v5273_v27 = vld [vmem:[%s6667_s1 + $0x350] sm:$0xff]  }
  0x7f   : > { %v1430_v51 = vshrl.u32 %v4207_v48, 16  ;;  %v1433_v62 = vshll.u32 %v4207_v48, 16  ;;  %v1413_v57 = vrot.slane %v1411_v54, 5  ;;  %v4202_v3 = vcombine.low %v4137_v43, %v1158_v56 }
  0x80   : > { %v1441_v0 = vrot.slane %v1439_v55, 5  ;;  %v1404_v59 = vrot.slane %v1402_v50, 4  ;;  %v1407_v1 = vrot.slane %v1405_v61, 5  ;;  %v4206_v6 = vsel %vm4167_vm0, %v5905_v7, %v1158_v56 }
  0x81   : > { %v1432_v4 = vrot.slane %v1430_v51, 4  ;;  %v1435_v5 = vrot.slane %v1433_v62, 5  ;;  %v4208_v8 = vcombine.low %v4139_v63, %v1165_v2  ;;  %v4212_v9 = vsel %vm4167_vm0, %v5916_v13, %v1165_v2 }
  0x82   : > { %v1416_v10 = vshrl.u32 %v4202_v3, 16  ;;  %v1408_v15 = vor.u32 %v1407_v1, %v1404_v59  ;;  %v1419_v18 = vshll.u32 %v4202_v3, 16  ;;  %v1425_v7 = vshll.u32 %v4206_v6, 16  ;;  %v5261_v3 = vld [vmem:[%s6667_s1 + $0x300] sm:$0xff]   ;;  %v5991_v59 = vld [vmem:[%s5575_s5 + $0x18] sm:$0xf] }
  0x83   : > { %v1436_v16 = vor.u32 %v1435_v5, %v1432_v4  ;;  %v1444_v21 = vshrl.u32 %v4208_v8, 16  ;;  %v1447_v22 = vshll.u32 %v4208_v8, 16  ;;  %v1453_v24 = vshll.u32 %v4212_v9, 16  ;;  %v5996_v5 = vld [vmem:[%s5575_s5 + $0x20] sm:$0xf] }
  0x84   : > { %v1418_v13 = vrot.slane %v1416_v10, 4  ;;  %v1409_v17 = vrot.slane %v1408_v15, 4  ;;  %v1421_v23 = vrot.slane %v1419_v18, 5  ;;  %v1427_v26 = vrot.slane %v1425_v7, 5  ;;  %v4335_v6 = vld [vmem:[%s5575_s5 + $0x1c] sm:$0x1] }
  0x85   : > { %v1437_v25 = vrot.slane %v1436_v16, 4  ;;  %v1446_v33 = vrot.slane %v1444_v21, 4  ;;  %v1449_v34 = vrot.slane %v1447_v22, 5  ;;  %v1455_v35 = vrot.slane %v1453_v24, 5  ;;  %v4336_v8 = vld [vmem:[%s5575_s5 + $0x24] sm:$0x1] }
  0x86   : > { %v1414_v37 = vsel %vm5746_vm3, %v1409_v17, %v1413_v57  ;;  %v1422_v28 = vor.u32 %v1421_v23, %v1418_v13  ;;  %v4358_v39 = vcombine.low %v5957_v12, %v4334_v20  ;;  %v2043_v43 = vshrl.u32 %v4357_v36, 16  ;;  %v6006_v18 = vld [vmem:[%s5575_s5 + $0x20] sm:$0xf]  ;;  %v6009_v7 = vld [vmem:[%s5575_s5 + $0x28] sm:$0xf] }
  0x87   : > { %v1442_v38 = vsel %vm5746_vm3, %v1437_v25, %v1441_v0  ;;  %v1450_v41 = vor.u32 %v1449_v34, %v1446_v33  ;;  %v2045_v45 = vshll.u32 %v4357_v36, 16  ;;  %v4365_v52 = vcombine.low %v5965_v29, %v4349_v31  ;;  %v5262_v21 = vld [vmem:[%s6667_s1 + $0x380] sm:$0xff]   ;;  %v5264_v31 = vld [vmem:[%s6667_s1 + $0x3c8] sm:$0xff]  }
  0x88   : > { %v4290_v40 = vcombine.high %v1414_v37, %v1442_v38  ;;  %v4289_v42 = vcombine.low %v1414_v37, %v1442_v38  ;;  %v1423_v44 = vrot.slane %v1422_v28, 4  ;;  %v2050_v46 = vshrl.u32 %v4358_v39, 16  ;;  %v5266_v38 = vld [vmem:[%s6667_s1 + $0x388] sm:$0xff]  }
  0x89   : > { %v2052_v47 = vshll.u32 %v4358_v39, 16  ;;  %v1451_v48 = vrot.slane %v1450_v41, 4  ;;  %v4366_v53 = vcombine.low %v5968_v30, %v4350_v32  ;;  %v2047_v55 = vrot.slane %v2045_v45, 1  ;;  %v5265_v32 = vld [vmem:[%s6667_s1 + $0x308] sm:$0xff]  }
  0x8a   : > { %1834 = vmatprep.mubr.bf16.mxu0 %v4290_v40  ;;  %v1428_v54 = vsel %vm5746_vm3, %v1423_v44, %v1427_v26  ;;  %v2139_v58 = vshrl.u32 %v4365_v52, 16  ;;  %v2141_v50 = vshll.u32 %v4365_v52, 16  ;;  %v4437_v4 = vcombine.low %v5954_v11, %v5957_v12  ;;  %v4351_v11 = vld [vmem:[%s5575_s5 + $0x24] sm:$0x1]  ;;  %v4352_v12 = vld [vmem:[%s5575_s5 + $0x2c] sm:$0x1] }
  0x8b   : > { %1835 = vmatmul.mubr.bf16.gmra.mrb[28].mxu0 %v4289_v42  ;;  %v2054_v56 = vrot.slane %v2052_v47, 1  ;;  %v1456_v49 = vsel %vm5746_vm3, %v1451_v48, %v1455_v35  ;;  %v2048_v62 = vor.u32 %v2047_v55, %v2043_v43  ;;  %v2146_v0 = vshrl.u32 %v4366_v53, 16  ;;  %v5274_v42 = vld [vmem:[%s6667_s1 + $0x3d0] sm:$0xff]   ;;  %v6044_v48 = vld [vmem:[%s5575_s5 + $0x28] sm:$0xf] }
  0x8c   : > { %v4292_v61 = vcombine.high %v1428_v54, %v1456_v49  ;;  %v4291_v51 = vcombine.low %v1428_v54, %v1456_v49  ;;  %v2143_v57 = vrot.slane %v2141_v50, 1  ;;  %v2148_v2 = vshll.u32 %v4366_v53, 16  ;;  %v5275_v43 = vld [vmem:[%s6667_s1 + $0x310] sm:$0xff]   ;;  %v4337_v53 = vld [vmem:[%s5575_s5 + $0x2c] sm:$0x1] }
  0x8d   : > { %v2055_v63 = vor.u32 %v2054_v56, %v2050_v46  ;;  %v4359_v15 = vcombine.low %v5991_v59, %v4335_v6  ;;  %v4360_v16 = vcombine.low %v5996_v5, %v4336_v8  ;;  %v4367_v17 = vcombine.low %v6006_v18, %v4351_v11  ;;  %v5277_v46 = vld [vmem:[%s6667_s1 + $0x358] sm:$0xff]   ;;  %v6047_v52 = vld [vmem:[%s5575_s5 + $0x30] sm:$0xf]  ;;  %v4338_v55 = vld [vmem:[%s5575_s5 + $0x34] sm:$0x1] }
  0x8e   : > { %1899 = vmatprep.mubr.bf16.mxu1 %v4292_v61  ;;  %v2144_v9 = vor.u32 %v2143_v57, %v2139_v58  ;;  %v2150_v10 = vrot.slane %v2148_v2, 1  ;;  %v4368_v25 = vcombine.low %v6009_v7, %v4352_v12  ;;  %v4439_v26 = vcombine.low %v5965_v29, %v5968_v30  ;;  %v5276_v54 = vld [vmem:[%s6667_s1 + $0x390] sm:$0xff]   ;;  %v6059_v58 = vld [vmem:[%s5575_s5 + $0x38] sm:$0xf]  ;;  %v4354_v57 = vld [vmem:[%s5575_s5 + $0x3c] sm:$0x1] }
  0x8f   : > { %v4438_v1 = vcombine.low %v2048_v62, %v2055_v63  ;;  %1900 = vmatmul.mubr.bf16.gmra.mrb[28].mxu1 %v4291_v51  ;;  %v2057_v20 = vshrl.u32 %v4359_v15, 16  ;;  %v2059_v13 = vshll.u32 %v4359_v15, 16  ;;  %v2064_v22 = vshrl.u32 %v4360_v16, 16  ;;  %v6056_v49 = vld [vmem:[%s5575_s5 + $0x30] sm:$0xf]  ;;  %v5278_v51 = vld [vmem:[%s6667_s1 + $0x3d8] sm:$0xff]  }
  0x90   : > { %v2151_v19 = vor.u32 %v2150_v10, %v2146_v0  ;;  %v2066_v24 = vshll.u32 %v4360_v16, 16  ;;  %v2153_v35 = vshrl.u32 %v4367_v17, 16  ;;  %v2155_v36 = vshll.u32 %v4367_v17, 16  ;;  %v4353_v63 = vld [vmem:[%s5575_s5 + $0x34] sm:$0x1]  ;;  %v5279_v0 = vld [vmem:[%s6667_s1 + $0x318] sm:$0xff]  }
  0x91   : > { %2531 = vmatprep.mubr.bf16.mxu0 %v4438_v1  ;;  %v2061_v33 = vrot.slane %v2059_v13, 1  ;;  %v2160_v30 = vshrl.u32 %v4368_v25, 16  ;;  %v2162_v37 = vshll.u32 %v4368_v25, 16  ;;  %v4441_v41 = vcombine.low %v5991_v59, %v5996_v5  ;;  %v5280_v8 = vld [vmem:[%s6667_s1 + $0x398] sm:$0xff]  }
  0x92   : > { %v4440_v23 = vcombine.low %v2144_v9, %v2151_v19  ;;  %v2068_v34 = vrot.slane %v2066_v24, 1  ;;  %v2157_v39 = vrot.slane %v2155_v36, 1  ;;  %v4361_v56 = vcombine.low %v6044_v48, %v4337_v53  ;;  %v5289_v19 = vld [vmem:[%s6667_s1 + $0x320] sm:$0xff]   ;;  %v4339_v36 = vld [vmem:[%s5575_s5 + $0x3c] sm:$0x1] }
  0x93   : > { %2532 = vmatmul.mubr.bf16.vlgmr.msra.gmra.mrb[32].mxu0 %v4437_v4  ;;  %v2062_v29 = vor.u32 %v2061_v33, %v2057_v20  ;;  %v2164_v40 = vrot.slane %v2162_v37, 1  ;;  %v4443_v61 = vcombine.low %v6006_v18, %v6009_v7  ;;  %v4362_v62 = vcombine.low %v6047_v52, %v4338_v55  ;;  %v5287_v4 = vld [vmem:[%s6667_s1 + $0x360] sm:$0xff]   ;;  %v4331_v33 = vld [vmem:[%s5575_s5 + $0x38] sm:$0xf] }
  0x94   : > { %4980 = vmatpush3.bf16.msra.mxu0 %v5261_v3  ;;  %2596 = vmatprep.mubr.bf16.mxu1 %v4440_v23  ;;  %v2069_v28 = vor.u32 %v2068_v34, %v2064_v22  ;;  %v2158_v45 = vor.u32 %v2157_v39, %v2153_v35  ;;  %v2071_v2 = vshrl.u32 %v4361_v56, 16  ;;  %v2073_v3 = vshll.u32 %v4361_v56, 16  ;;  %v5288_v7 = vld [vmem:[%s6667_s1 + $0x3e0] sm:$0xff]   ;;  %v5294_v39 = vld [vmem:[%s6667_s1 + $0x3a8] sm:$0xff]  }
  0x95   : > { %4981 = vmatprep.subr.bf16.mxu0 %v5263_v14  ;;  %v2165_v47 = vor.u32 %v2164_v40, %v2160_v30  ;;  %v4369_v59 = vcombine.low %v6056_v49, %v4353_v63  ;;  %v4370_v1 = vcombine.low %v6059_v58, %v4354_v57  ;;  %v2078_v5 = vshrl.u32 %v4362_v62, 16  ;;  %v5290_v23 = vld [vmem:[%s6667_s1 + $0x3a0] sm:$0xff]   ;;  %v4356_v40 = vld [vmem:[%s5575_s5 + $0x4c] sm:$0x1] }
  0x96   : > { %v4442_v44 = vcombine.low %v2062_v29, %v2069_v28  ;;  %v2080_v6 = vshll.u32 %v4362_v62, 16  ;;  %v2075_v9 = vrot.slane %v2073_v3, 1  ;;  %v4445_v24 = vcombine.low %v6044_v48, %v6047_v52  ;;  %v4332_v35 = vld [vmem:[%s5575_s5 + $0x40] sm:$0xf]  ;;  %v4355_v28 = vld [vmem:[%s5575_s5 + $0x44] sm:$0x1] }
  0x97   : > { %2597 = vmatmul.mubr.bf16.vlgmr.msra.gmra.mrb[32].mxu1 %v4439_v26  ;;  %v4444_v50 = vcombine.low %v2158_v45, %v2165_v47  ;;  %v2167_v10 = vshrl.u32 %v4369_v59, 16  ;;  %v2169_v14 = vshll.u32 %v4369_v59, 16  ;;  %v2174_v16 = vshrl.u32 %v4370_v1, 16  ;;  %v4347_v37 = vld [vmem:[%s5575_s5 + $0x40] sm:$0xf]  ;;  %v5302_v47 = vld [vmem:[%s6667_s1 + $0x3f0] sm:$0xff]  }
  0x98   : > { %4982 = vmatpush3.bf16.msra.mxu0 %v5265_v32  ;;  %5020 = vmatpush3.bf16.msra.mxu1 %v5262_v21  ;;  %v2082_v15 = vrot.slane %v2080_v6, 1  ;;  %v2176_v18 = vshll.u32 %v4370_v1, 16  ;;  %v2076_v11 = vor.u32 %v2075_v9, %v2071_v2  ;;  %v5291_v21 = vld [vmem:[%s6667_s1 + $0x368] sm:$0xff]   ;;  %v4447_v26 = vcombine.low %v6056_v49, %v6059_v58  ;;  %v5304_v62 = vld [vmem:[%s6667_s1 + $0x3b0] sm:$0xff]   ;;  %v5305_v2 = vld [vmem:[%s6667_s1 + $0x378] sm:$0xff]  }
  0x99   : > { %4983 = vmatprep.subr.bf16.mxu0 %v5273_v27  ;;  %5021 = vmatprep.subr.bf16.mxu1 %v5264_v31  ;;  %v2171_v12 = vrot.slane %v2169_v14, 1  ;;  %v5292_v31 = vld [vmem:[%s6667_s1 + $0x3e8] sm:$0xff]   ;;  %v4340_v27 = vld [vmem:[%s5575_s5 + $0x44] sm:$0x1]  ;;  %v4363_v29 = vcombine.low %v4331_v33, %v4339_v36  ;;  %v5306_v59 = vld [vmem:[%s6667_s1 + $0x3f8] sm:$0xff]  }
  0x9a   : > { %2539 = vmatprep.mubr.bf16.mxu0 %v4442_v44  ;;  %2604 = vmatprep.mubr.bf16.mxu1 %v4444_v50  ;;  %v2083_v20 = vor.u32 %v2082_v15, %v2078_v5  ;;  %v2178_v13 = vrot.slane %v2176_v18, 1  ;;  %v5293_v32 = vld [vmem:[%s6667_s1 + $0x328] sm:$0xff]   ;;  %v4364_v30 = vcombine.low %v4332_v35, %v4340_v27  ;;  %v5303_v50 = vld [vmem:[%s6667_s1 + $0x330] sm:$0xff]  }
  0x9b   : > { %2540 = vmatmul.mubr.bf16.gmra.mrb[36].mxu0 %v4441_v41  ;;  %v2172_v22 = vor.u32 %v2171_v12, %v2167_v10  ;;  %v4371_v41 = vcombine.low %v4347_v37, %v4355_v28  ;;  %v4486_v9 = vld [vmem:[%s5575_s5 + $0xc] sm:$0x1]  ;;  %v4488_v10 = vld [vmem:[%s5575_s5 + $0x14] sm:$0x1]  ;;  %v4501_v14 = vld [vmem:[%s5575_s5 + $0x8] sm:$0xe] }
  0x9c   : > { %5022 = vmatpush3.bf16.msra.mxu1 %v5266_v38  ;;  %4984 = vmatpush3.bf16.msra.mxu0 %v5275_v43  ;;  %v4446_v17 = vcombine.low %v2076_v11, %v2083_v20  ;;  %v2179_v25 = vor.u32 %v2178_v13, %v2174_v16  ;;  %v4348_v38 = vld [vmem:[%s5575_s5 + $0x48] sm:$0xf]  ;;  %v2087_v43 = vshll.u32 %v4363_v29, 16  ;;  %v2092_v44 = vshrl.u32 %v4364_v30, 16  ;;  %v4502_v15 = vld [vmem:[%s5575_s5 + $0x10] sm:$0xe] }
  0x9d   : > { %5023 = vmatprep.subr.bf16.mxu1 %v5274_v42  ;;  %4985 = vmatprep.subr.bf16.mxu0 %v5277_v46  ;;  %v2085_v42 = vshrl.u32 %v4363_v29, 16  ;;  %v2094_v45 = vshll.u32 %v4364_v30, 16  ;;  %v5301_v46 = vld [vmem:[%s6667_s1 + $0x370] sm:$0xff]   ;;  %v4372_v48 = vcombine.low %v4348_v38, %v4356_v40  ;;  %v2181_v52 = vshrl.u32 %v4371_v41, 16  ;;  %v4512_v11 = vld [vmem:[%s5575_s5 + $0x1c] sm:$0x1] }
  0x9e   : > { %2547 = vmatprep.mubr.bf16.mxu0 %v4446_v17  ;;  %v4448_v34 = vcombine.low %v2172_v22, %v2179_v25  ;;  %v2183_v53 = vshll.u32 %v4371_v41, 16  ;;  %v4451_v5 = vcombine.low %v4347_v37, %v4348_v38  ;;  %v4533_v16 = vcombine.low %v4501_v14, %v4486_v9  ;;  %v4525_v12 = vld [vmem:[%s5575_s5 + $0x10] sm:$0xe] }
  0x9f   : > { %2605 = vmatmul.mubr.bf16.gmra.mrb[36].mxu1 %v4443_v61  ;;  %v2096_v55 = vrot.slane %v2094_v45, 1  ;;  %v2188_v49 = vshrl.u32 %v4372_v48, 16  ;;  %v2190_v58 = vshll.u32 %v4372_v48, 16  ;;  %v4534_v18 = vcombine.low %v4502_v15, %v4488_v10  ;;  %v4487_v36 = vld [vmem:[%s5575_s5 + $0x10] sm:$0xf] }
  0xa0   : > { %5024 = vmatpush3.bf16.msra.mxu1 %v5276_v54  ;;  %4986 = vmatpush3.bf16.msra.mxu0 %v5279_v0  ;;  %v2089_v54 = vrot.slane %v2087_v43, 1  ;;  %v2185_v56 = vrot.slane %v2183_v53, 1  ;;  %v4449_v0 = vcombine.low %v4331_v33, %v4332_v35  ;;  %v2795_v20 = vshrl.u32 %v4533_v16, 16  ;;  %v4509_v48 = vld [vmem:[%s5575_s5 + $0x10] sm:$0xf] }
  0xa1   : > { %5025 = vmatprep.subr.bf16.mxu1 %v5278_v51  ;;  %4987 = vmatprep.subr.bf16.mxu0 %v5287_v4  ;;  %v2097_v51 = vor.u32 %v2096_v55, %v2092_v44  ;;  %v2192_v57 = vrot.slane %v2190_v58, 1  ;;  %v5307_v4 = vld [vmem:[%s6667_s1 + $0x338] sm:$0xff]   ;;  %v2797_v13 = vshll.u32 %v4533_v16, 16  ;;  %v2804_v22 = vshll.u32 %v4534_v18, 16 }
  0xa2   : > { %2612 = vmatprep.mubr.bf16.mxu1 %v4448_v34  ;;  %v2090_v61 = vor.u32 %v2089_v54, %v2085_v42  ;;  %v2186_v63 = vor.u32 %v2185_v56, %v2181_v52  ;;  %v4504_v34 = vld [vmem:[%s5575_s5 + $0x20] sm:$0xe] }
  0xa3   : > { %2548 = vmatmul.mubr.bf16.gmra.mrb[40].mxu0 %v4445_v24  ;;  %v2193_v1 = vor.u32 %v2192_v57, %v2188_v49  ;;  %v6146_v24 = vld [vmem:[%s5575_s5 + $0x1c] sm:$0x1]  ;;  %v2806_v33 = vrot.slane %v2804_v22, 1 }
  0xa4   : > { %5026 = vmatpush3.bf16.msra.mxu1 %v5280_v8  ;;  %4988 = vmatpush3.bf16.msra.mxu0 %v5289_v19  ;;  %v4450_v3 = vcombine.low %v2090_v61, %v2097_v51  ;;  %v5308_v8 = vld [vmem:[%s6667_s1 + $0x3b8] sm:$0xff]  }
  0xa5   : > { %5027 = vmatprep.subr.bf16.mxu1 %v5288_v7  ;;  %4989 = vmatprep.subr.bf16.mxu0 %v5291_v21  ;;  %v4452_v6 = vcombine.low %v2186_v63, %v2193_v1  ;;  %v4510_v7 = vld [vmem:[%s5575_s5 + $0x14] sm:$0x1]  ;;  %v4526_v19 = vld [vmem:[%s5575_s5 + $0x18] sm:$0xe]  ;;  %v2802_v21 = vshrl.u32 %v4534_v18, 16 }
  0xa6   : > { %2555 = vmatprep.mubr.bf16.mxu0 %v4450_v3  ;;  %v4541_v17 = vcombine.low %v4525_v12, %v4510_v7  ;;  %v4542_v25 = vcombine.low %v4526_v19, %v4512_v11  ;;  %v4511_v61 = vld [vmem:[%s5575_s5 + $0x18] sm:$0xf]  ;;  %v6170_v12 = vld [vmem:[%s5575_s5 + $0x24] sm:$0x1]  ;;  %v6173_v19 = vld [vmem:[%s5575_s5 + $0x2c] sm:$0x1] }
  0xa7   : > { %2613 = vmatmul.mubr.bf16.gmra.mrb[40].mxu1 %v4447_v26  ;;  %v4503_v26 = vld [vmem:[%s5575_s5 + $0x18] sm:$0xe]  ;;  %v2807_v28 = vor.u32 %v2806_v33, %v2802_v21 }
  0xa8   : > { %4990 = vmatpush3.bf16.msra.mxu0 %v5293_v32  ;;  %5028 = vmatpush3.bf16.msra.mxu1 %v5290_v23  ;;  %v6149_v23 = vld [vmem:[%s5575_s5 + $0x24] sm:$0x1]  ;;  %v2799_v32 = vrot.slane %v2797_v13, 1  ;;  %v6155_v35 = vcombine.low %v4503_v26, %v6146_v24  ;;  %v2907_v27 = vshrl.u32 %v4541_v17, 16  ;;  %v2909_v29 = vshll.u32 %v4541_v17, 16 }
  0xa9   : > { %5029 = vmatprep.subr.bf16.mxu1 %v5292_v31  ;;  %4991 = vmatprep.subr.bf16.mxu0 %v5301_v46  ;;  %v4485_v31 = vld [vmem:[%s5575_s5 + $0x8] sm:$0xf]  ;;  %v2914_v30 = vshrl.u32 %v4542_v25, 16  ;;  %v2916_v37 = vshll.u32 %v4542_v25, 16  ;;  %v4555_v46 = vcombine.low %v4487_v36, %v2807_v28  ;;  %v6178_v25 = vld [vmem:[%s5575_s5 + $0x2c] sm:$0x1] }
  0xaa   : > { %2620 = vmatprep.mubr.bf16.mxu1 %v4452_v6  ;;  %v2800_v38 = vor.u32 %v2799_v32, %v2795_v20  ;;  %v2911_v40 = vrot.slane %v2909_v29, 1  ;;  %v2809_v42 = vshrl.u32 %v6155_v35, 16  ;;  %v2811_v43 = vshll.u32 %v6155_v35, 16  ;;  %v4527_v20 = vld [vmem:[%s5575_s5 + $0x20] sm:$0xe] }
  0xab   : > { %2556 = vmatmul.mubr.bf16.gmra.mrb[44].mxu0 %v4449_v0  ;;  %v2918_v41 = vrot.slane %v2916_v37, 1  ;;  %v3055_v58 = vshrl.u32 %v4555_v46, 16  ;;  %v4528_v13 = vld [vmem:[%s5575_s5 + $0x28] sm:$0xe]  ;;  %v4506_v37 = vld [vmem:[%s5575_s5 + $0x30] sm:$0xe] }
  0xac   : > { %5030 = vmatpush3.bf16.msra.mxu1 %v5294_v39  ;;  %4992 = vmatpush3.bf16.msra.mxu0 %v5303_v50  ;;  %v6159_v39 = vcombine.low %v4504_v34, %v6149_v23  ;;  %v4549_v44 = vcombine.low %v4485_v31, %v2800_v38  ;;  %v4552_v45 = vsel %vm4167_vm0, %v4486_v9, %v2800_v38  ;;  %v3058_v50 = vshll.u32 %v4555_v46, 16  ;;  %v6181_v34 = vld [vmem:[%s5575_s5 + $0x34] sm:$0x1] }
  0xad   : > { %5031 = vmatprep.subr.bf16.mxu1 %v5302_v47  ;;  %4993 = vmatprep.subr.bf16.mxu0 %v5305_v2  ;;  %v4558_v47 = vsel %vm4167_vm0, %v4488_v10, %v2807_v28  ;;  %v3036_v52 = vshll.u32 %v4552_v45, 16  ;;  %v2912_v54 = vor.u32 %v2911_v40, %v2907_v27  ;;  %v2919_v55 = vor.u32 %v2918_v41, %v2914_v30  ;;  %v4505_v30 = vld [vmem:[%s5575_s5 + $0x28] sm:$0xe] }
  0xae   : > { %v3064_v53 = vshll.u32 %v4558_v47, 16  ;;  %v3027_v56 = vshrl.u32 %v4549_v44, 16  ;;  %v3030_v49 = vshll.u32 %v4549_v44, 16  ;;  %v3057_v3 = vrot.slane %v3055_v58, 4 }
  0xaf   : > { %2621 = vmatmul.mubr.bf16.gmra.mrb[44].mxu1 %v4451_v5  ;;  %v3038_v51 = vrot.slane %v3036_v52, 5  ;;  %v4550_v63 = vcombine.low %v4509_v48, %v2912_v54  ;;  %v4554_v57 = vsel %vm4167_vm0, %v4510_v7, %v2912_v54  ;;  %v4556_v1 = vcombine.low %v4511_v61, %v2919_v55 }
  0xb0   : > { %5032 = vmatpush3.bf16.msra.mxu1 %v5304_v62  ;;  %4994 = vmatpush3.bf16.msra.mxu0 %v5307_v4  ;;  %v3066_v62 = vrot.slane %v3064_v53, 5  ;;  %v3029_v0 = vrot.slane %v3027_v56, 4  ;;  %v3032_v2 = vrot.slane %v3030_v49, 5  ;;  %v4560_v4 = vsel %vm4167_vm0, %v4512_v11, %v2919_v55  ;;  %v4491_v53 = vld [vmem:[%s5575_s5 + $0x20] sm:$0xf] }
  0xb1   : > { %5033 = vmatprep.subr.bf16.mxu1 %v5306_v59  ;;  %v3060_v59 = vrot.slane %v3058_v50, 5  ;;  %v3041_v5 = vshrl.u32 %v4550_v63, 16  ;;  %v3044_v6 = vshll.u32 %v4550_v63, 16  ;;  %v3050_v10 = vshll.u32 %v4554_v57, 16 }
  0xb2   : > { %v3078_v14 = vshll.u32 %v4560_v4, 16  ;;  %v3069_v18 = vshrl.u32 %v4556_v1, 16  ;;  %v3072_v7 = vshll.u32 %v4556_v1, 16  ;;  %v2813_v33 = vrot.slane %v2811_v43, 1  ;;  %v4489_v43 = vld [vmem:[%s5575_s5 + $0x18] sm:$0xf] }
  0xb3   : > { %v3061_v9 = vor.u32 %v3060_v59, %v3057_v3  ;;  %v3043_v15 = vrot.slane %v3041_v5, 4  ;;  %v3046_v16 = vrot.slane %v3044_v6, 5  ;;  %v3052_v22 = vrot.slane %v3050_v10, 5 }
  0xb4   : > { %5034 = vmatpush3.bf16.msra.mxu1 %v5308_v8  ;;  %v3033_v8 = vor.u32 %v3032_v2, %v3029_v0  ;;  %v3080_v17 = vrot.slane %v3078_v14, 5  ;;  %v3071_v31 = vrot.slane %v3069_v18, 4  ;;  %v3074_v32 = vrot.slane %v3072_v7, 5  ;;  %v4513_v14 = vld [vmem:[%s5575_s5 + $0x20] sm:$0xf] }
  0xb5   : > { %v3062_v21 = vrot.slane %v3061_v9, 4  ;;  %v3047_v26 = vor.u32 %v3046_v16, %v3043_v15  ;;  %v2816_v27 = vshrl.u32 %v6159_v39, 16  ;;  %v2818_v29 = vshll.u32 %v6159_v39, 16 }
  0xb6   : > { %v3034_v11 = vrot.slane %v3033_v8, 4  ;;  %v3075_v41 = vor.u32 %v3074_v32, %v3071_v31  ;;  %v2814_v44 = vor.u32 %v2813_v33, %v2809_v42  ;;  %v4543_v46 = vcombine.low %v4527_v20, %v6170_v12 }
  0xb7   : > { %v3067_v36 = vsel %vm5746_vm3, %v3062_v21, %v3066_v62  ;;  %v3048_v40 = vrot.slane %v3047_v26, 4  ;;  %v2820_v45 = vrot.slane %v2818_v29, 1  ;;  %v4544_v47 = vcombine.low %v4528_v13, %v6173_v19  ;;  %v4515_v13 = vld [vmem:[%s5575_s5 + $0x28] sm:$0xf] }
  0xb8   : > { %v3039_v35 = vsel %vm5746_vm3, %v3034_v11, %v3038_v51  ;;  %v3076_v52 = vrot.slane %v3075_v41, 4  ;;  %v6198_v39 = vcombine.low %v4505_v30, %v6178_v25  ;;  %v6201_v54 = vcombine.low %v4506_v37, %v6181_v34  ;;  %v4529_v41 = vld [vmem:[%s5575_s5 + $0x30] sm:$0xe] }
  0xb9   : > { %v4661_v38 = vcombine.low %v3039_v35, %v3067_v36  ;;  %v4662_v28 = vcombine.high %v3039_v35, %v3067_v36  ;;  %v3053_v48 = vsel %vm5746_vm3, %v3048_v40, %v3052_v22  ;;  %v2821_v55 = vor.u32 %v2820_v45, %v2816_v27  ;;  %v6223_v40 = vld [vmem:[%s5575_s5 + $0x3c] sm:$0x1] }
  0xba   : > { %v4561_v42 = vcombine.low %v4489_v43, %v2814_v44  ;;  %v4564_v56 = vsel %vm4167_vm0, %v6146_v24, %v2814_v44  ;;  %v2921_v49 = vshrl.u32 %v4543_v46, 16  ;;  %v3081_v58 = vsel %vm5746_vm3, %v3076_v52, %v3080_v17  ;;  %v4530_v43 = vld [vmem:[%s5575_s5 + $0x38] sm:$0xe] }
  0xbb   : > { %3603 = vmatprep.mubr.bf16.mxu0 %v4662_v28  ;;  %v3092_v50 = vshll.u32 %v4564_v56, 16  ;;  %v2923_v61 = vshll.u32 %v4543_v46, 16  ;;  %v2928_v51 = vshrl.u32 %v4544_v47, 16  ;;  %v4663_v62 = vcombine.low %v3053_v48, %v3081_v58  ;;  %v6220_v28 = vld [vmem:[%s5575_s5 + $0x34] sm:$0x1] }
  0xbc   : > { %3604 = vmatmul.mubr.bf16.vlgmr.msra.gmra.mrb[48].mxu0 %v4661_v38  ;;  %v4664_v63 = vcombine.high %v3053_v48, %v3081_v58  ;;  %v4567_v57 = vcombine.low %v4491_v53, %v2821_v55  ;;  %v4570_v0 = vsel %vm4167_vm0, %v6149_v23, %v2821_v55  ;;  %v3083_v2 = vshrl.u32 %v4561_v42, 16  ;;  %v4495_v58 = vld [vmem:[%s5575_s5 + $0x30] sm:$0xf] }
  0xbd   : > { %v3086_v3 = vshll.u32 %v4561_v42, 16  ;;  %v3094_v59 = vrot.slane %v3092_v50, 5  ;;  %v3120_v1 = vshll.u32 %v4570_v0, 16  ;;  %v2925_v5 = vrot.slane %v2923_v61, 1 }
  0xbe   : > { %3668 = vmatprep.mubr.bf16.mxu1 %v4664_v63  ;;  %v3111_v24 = vshrl.u32 %v4567_v57, 16  ;;  %v3114_v4 = vshll.u32 %v4567_v57, 16  ;;  %v2930_v6 = vshll.u32 %v4544_v47, 16  ;;  %v3085_v8 = vrot.slane %v3083_v2, 4  ;;  %v6230_v47 = vld [vmem:[%s5575_s5 + $0x3c] sm:$0x1] }
  0xbf   : > { %3669 = vmatmul.mubr.bf16.vlgmr.msra.gmra.mrb[48].mxu1 %v4663_v62  ;;  %v3088_v9 = vrot.slane %v3086_v3, 5  ;;  %v3122_v10 = vrot.slane %v3120_v1, 5  ;;  %v2823_v15 = vshrl.u32 %v6198_v39, 16  ;;  %v2926_v23 = vor.u32 %v2925_v5, %v2921_v49  ;;  %v4493_v49 = vld [vmem:[%s5575_s5 + $0x28] sm:$0xf] }
  0xc0   : > { %v3113_v16 = vrot.slane %v3111_v24, 4  ;;  %v3116_v18 = vrot.slane %v3114_v4, 5  ;;  %v2932_v7 = vrot.slane %v2930_v6, 1  ;;  %v2825_v11 = vshll.u32 %v6198_v39, 16  ;;  %v4507_v39 = vld [vmem:[%s5575_s5 + $0x38] sm:$0xe] }
  0xc1   : > { %v3089_v20 = vor.u32 %v3088_v9, %v3085_v8  ;;  %v2830_v21 = vshrl.u32 %v6201_v54, 16  ;;  %v2832_v22 = vshll.u32 %v6201_v54, 16  ;;  %v4562_v31 = vcombine.low %v4513_v14, %v2926_v23 }
  0xc2   : > { %v3117_v17 = vor.u32 %v3116_v18, %v3113_v16  ;;  %v2933_v26 = vor.u32 %v2932_v7, %v2928_v51  ;;  %v4566_v32 = vsel %vm4167_vm0, %v6170_v12, %v2926_v23  ;;  %v2827_v36 = vrot.slane %v2825_v11, 1  ;;  %v6247_v7 = vld [vmem:[%s5575_s5 + $0x44] sm:$0x1] }
  0xc3   : > { %v3090_v33 = vrot.slane %v3089_v20, 4  ;;  %v3106_v35 = vshll.u32 %v4566_v32, 16  ;;  %v2834_v27 = vrot.slane %v2832_v22, 1  ;;  %v3097_v38 = vshrl.u32 %v4562_v31, 16  ;;  %v6253_v32 = vld [vmem:[%s5575_s5 + $0x44] sm:$0x1] }
  0xc4   : > { %v3118_v29 = vrot.slane %v3117_v17, 4  ;;  %v4568_v30 = vcombine.low %v4515_v13, %v2933_v26  ;;  %v4572_v37 = vsel %vm4167_vm0, %v6173_v19, %v2933_v26  ;;  %v3100_v44 = vshll.u32 %v4562_v31, 16 }
  0xc5   : > { %v3095_v12 = vsel %vm5746_vm3, %v3090_v33, %v3094_v59  ;;  %v3108_v45 = vrot.slane %v3106_v35, 5  ;;  %v3134_v46 = vshll.u32 %v4572_v37, 16  ;;  %v3099_v48 = vrot.slane %v3097_v38, 4  ;;  %v4531_v33 = vld [vmem:[%s5575_s5 + $0x40] sm:$0xe] }
  0xc6   : > { %v3123_v19 = vsel %vm5746_vm3, %v3118_v29, %v3122_v10  ;;  %v3125_v52 = vshrl.u32 %v4568_v30, 16  ;;  %v3128_v53 = vshll.u32 %v4568_v30, 16  ;;  %v3102_v55 = vrot.slane %v3100_v44, 5 }
  0xc7   : > { %v4666_v54 = vcombine.high %v3095_v12, %v3123_v19  ;;  %v3136_v42 = vrot.slane %v3134_v46, 5  ;;  %v4665_v56 = vcombine.low %v3095_v12, %v3123_v19  ;;  %v2828_v51 = vor.u32 %v2827_v36, %v2823_v15  ;;  %v4532_v12 = vld [vmem:[%s5575_s5 + $0x48] sm:$0xe] }
  0xc8   : > { %v3127_v50 = vrot.slane %v3125_v52, 4  ;;  %v3130_v61 = vrot.slane %v3128_v53, 5  ;;  %v2835_v62 = vor.u32 %v2834_v27, %v2830_v21  ;;  %v3103_v63 = vor.u32 %v3102_v55, %v3099_v48  ;;  %v4508_v21 = vld [vmem:[%s5575_s5 + $0x40] sm:$0xe]  ;;  %v4519_v53 = vld [vmem:[%s5575_s5 + $0x38] sm:$0xf] }
  0xc9   : > { %3611 = vmatprep.mubr.bf16.mxu0 %v4666_v54  ;;  %v4545_v57 = vcombine.low %v4529_v41, %v6220_v28  ;;  %v4546_v0 = vcombine.low %v4530_v43, %v6223_v40  ;;  %v4539_v2 = vcombine.low %v4507_v39, %v6230_v47  ;;  %v4573_v59 = vcombine.low %v4493_v49, %v2828_v51  ;;  %v6258_v43 = vld [vmem:[%s5575_s5 + $0x4c] sm:$0x1] }
  0xca   : > { %v3131_v3 = vor.u32 %v3130_v61, %v3127_v50  ;;  %3612 = vmatmul.mubr.bf16.gmra.mrb[52].mxu0 %v4665_v56  ;;  %v4576_v1 = vsel %vm4167_vm0, %v6178_v25, %v2828_v51  ;;  %v4579_v24 = vcombine.low %v4495_v58, %v2835_v62  ;;  %v3104_v4 = vrot.slane %v3103_v63, 4 }
  0xcb   : > { %v4582_v5 = vsel %vm4167_vm0, %v6181_v34, %v2835_v62  ;;  %v3148_v6 = vshll.u32 %v4576_v1, 16  ;;  %v2935_v8 = vshrl.u32 %v4545_v57, 16  ;;  %v3139_v10 = vshrl.u32 %v4573_v59, 16 }
  0xcc   : > { %v3132_v9 = vrot.slane %v3131_v3, 4  ;;  %v3142_v14 = vshll.u32 %v4573_v59, 16  ;;  %v3167_v15 = vshrl.u32 %v4579_v24, 16  ;;  %v3109_v16 = vsel %vm5746_vm3, %v3104_v4, %v3108_v45  ;;  %v4517_v45 = vld [vmem:[%s5575_s5 + $0x30] sm:$0xf] }
  0xcd   : > { %v3150_v18 = vrot.slane %v3148_v6, 5  ;;  %v3170_v23 = vshll.u32 %v4579_v24, 16  ;;  %v3176_v25 = vshll.u32 %v4582_v5, 16  ;;  %v3141_v20 = vrot.slane %v3139_v10, 4  ;;  %v4497_v3 = vld [vmem:[%s5575_s5 + $0x38] sm:$0xf] }
  0xce   : > { %v3137_v34 = vsel %vm5746_vm3, %v3132_v9, %v3136_v42  ;;  %v3144_v13 = vrot.slane %v3142_v14, 5  ;;  %v3169_v11 = vrot.slane %v3167_v15, 4  ;;  %v2937_v36 = vshll.u32 %v4545_v57, 16  ;;  %v4499_v10 = vld [vmem:[%s5575_s5 + $0x40] sm:$0xf] }
  0xcf   : > { %v4668_v22 = vcombine.high %v3109_v16, %v3137_v34  ;;  %v4667_v17 = vcombine.low %v3109_v16, %v3137_v34  ;;  %v3172_v26 = vrot.slane %v3170_v23, 5  ;;  %v3178_v31 = vrot.slane %v3176_v25, 5 }
  0xd0   : > { %v3145_v35 = vor.u32 %v3144_v13, %v3141_v20  ;;  %v2942_v27 = vshrl.u32 %v4546_v0, 16  ;;  %v2944_v29 = vshll.u32 %v4546_v0, 16  ;;  %v4540_v37 = vcombine.low %v4508_v21, %v6247_v7 }
  0xd1   : > { %3676 = vmatprep.mubr.bf16.mxu1 %v4668_v22  ;;  %v3173_v30 = vor.u32 %v3172_v26, %v3169_v11  ;;  %v2837_v38 = vshrl.u32 %v4539_v2, 16  ;;  %v2839_v41 = vshll.u32 %v4539_v2, 16  ;;  %v2939_v46 = vrot.slane %v2937_v36, 1 }
  0xd2   : > { %3677 = vmatmul.mubr.bf16.gmra.mrb[52].mxu1 %v4667_v17  ;;  %v3146_v44 = vrot.slane %v3145_v35, 4  ;;  %v2946_v19 = vrot.slane %v2944_v29, 1  ;;  %v6263_v48 = vcombine.low %v4531_v33, %v6253_v32  ;;  %v2844_v54 = vshrl.u32 %v4540_v37, 16 }
  0xd3   : > { %v3174_v52 = vrot.slane %v3173_v30, 4  ;;  %v2841_v39 = vrot.slane %v2839_v41, 1  ;;  %v2846_v55 = vshll.u32 %v4540_v37, 16  ;;  %v2940_v56 = vor.u32 %v2939_v46, %v2935_v8 }
  0xd4   : > { %v3151_v42 = vsel %vm5746_vm3, %v3146_v44, %v3150_v18  ;;  %v2947_v49 = vor.u32 %v2946_v19, %v2942_v27  ;;  %v6269_v58 = vcombine.low %v4532_v12, %v6258_v43  ;;  %v2949_v62 = vshrl.u32 %v6263_v48, 16 }
  0xd5   : > { %v3179_v50 = vsel %vm5746_vm3, %v3174_v52, %v3178_v31  ;;  %v2842_v61 = vor.u32 %v2841_v39, %v2837_v38  ;;  %v2848_v51 = vrot.slane %v2846_v55, 1  ;;  %v4574_v57 = vcombine.low %v4517_v45, %v2940_v56 }
  0xd6   : > { %v4670_v63 = vcombine.high %v3151_v42, %v3179_v50  ;;  %v4578_v0 = vsel %vm4167_vm0, %v6220_v28, %v2940_v56  ;;  %v4580_v2 = vcombine.low %v4519_v53, %v2947_v49  ;;  %v4584_v59 = vsel %vm4167_vm0, %v6223_v40, %v2947_v49 }
  0xd7   : > { %v3162_v1 = vshll.u32 %v4578_v0, 16  ;;  %v4669_v24 = vcombine.low %v3151_v42, %v3179_v50  ;;  %v2849_v4 = vor.u32 %v2848_v51, %v2844_v54  ;;  %v3153_v5 = vshrl.u32 %v4574_v57, 16 }
  0xd8   : > { %3619 = vmatprep.mubr.bf16.mxu0 %v4670_v63  ;;  %v3156_v6 = vshll.u32 %v4574_v57, 16  ;;  %v3181_v8 = vshrl.u32 %v4580_v2, 16  ;;  %v3184_v9 = vshll.u32 %v4580_v2, 16  ;;  %v3190_v15 = vshll.u32 %v4584_v59, 16  ;;  %v4521_v63 = vld [vmem:[%s5575_s5 + $0x40] sm:$0xf] }
  0xd9   : > { %v3164_v14 = vrot.slane %v3162_v1, 5  ;;  %3620 = vmatmul.mubr.bf16.gmra.mrb[56].mxu0 %v4669_v24  ;;  %v4585_v16 = vcombine.low %v4497_v3, %v2842_v61  ;;  %v4588_v28 = vsel %vm4167_vm0, %v6230_v47, %v2842_v61  ;;  %v3155_v18 = vrot.slane %v3153_v5, 4 }
  0xda   : > { %v3158_v23 = vrot.slane %v3156_v6, 5  ;;  %v3183_v25 = vrot.slane %v3181_v8, 4  ;;  %v3186_v40 = vrot.slane %v3184_v9, 5  ;;  %v3192_v34 = vrot.slane %v3190_v15, 5 }
  0xdb   : > { %v4591_v20 = vcombine.low %v4499_v10, %v2849_v4  ;;  %v4594_v13 = vsel %vm4167_vm0, %v6247_v7, %v2849_v4  ;;  %v3195_v11 = vshrl.u32 %v4585_v16, 16  ;;  %v3198_v17 = vshll.u32 %v4585_v16, 16 }
  0xdc   : > { %v3159_v21 = vor.u32 %v3158_v23, %v3155_v18  ;;  %v3187_v22 = vor.u32 %v3186_v40, %v3183_v25  ;;  %v3204_v26 = vshll.u32 %v4588_v28, 16  ;;  %v3232_v36 = vshll.u32 %v4594_v13, 16 }
  0xdd   : > { %v3197_v31 = vrot.slane %v3195_v11, 4  ;;  %v3223_v33 = vshrl.u32 %v4591_v20, 16  ;;  %v3226_v35 = vshll.u32 %v4591_v20, 16  ;;  %v3200_v30 = vrot.slane %v3198_v17, 5 }
  0xde   : > { %v3160_v27 = vrot.slane %v3159_v21, 4  ;;  %v3188_v29 = vrot.slane %v3187_v22, 4  ;;  %v3206_v37 = vrot.slane %v3204_v26, 5  ;;  %v3234_v44 = vrot.slane %v3232_v36, 5 }
  0xdf   : > { %v3225_v41 = vrot.slane %v3223_v33, 4  ;;  %v3228_v12 = vrot.slane %v3226_v35, 5  ;;  %v2951_v7 = vshll.u32 %v6263_v48, 16  ;;  %v3201_v53 = vor.u32 %v3200_v30, %v3197_v31 }
  0xe0   : > { %v3165_v19 = vsel %vm5746_vm3, %v3160_v27, %v3164_v14  ;;  %v3193_v52 = vsel %vm5746_vm3, %v3188_v29, %v3192_v34  ;;  %v2956_v39 = vshrl.u32 %v6269_v58, 16  ;;  %v2958_v57 = vshll.u32 %v6269_v58, 16  ;;  %v4523_v58 = vld [vmem:[%s5575_s5 + $0x48] sm:$0xf]  ;;  %s161_s5 = sand.u32 1, %s5389_s10  }
  0xe1   : > { %v4672_v42 = vcombine.high %v3165_v19, %v3193_v52  ;;  %v4671_v56 = vcombine.low %v3165_v19, %v3193_v52  ;;  %v3229_v49 = vor.u32 %v3228_v12, %v3225_v41  ;;  %v2953_v50 = vrot.slane %v2951_v7, 1  ;;  %s6428_s25 = sshll.u32 %s161_s5, 8  ;;  %s6620_s3 = scalar_lea.sflag [#allocation4], %s161_s5 }
  0xe2   : > { %v3202_v51 = vrot.slane %v3201_v53, 4  ;;  %v2960_v6 = vrot.slane %v2958_v57, 1  ;;  %s6464_s26 = scalar_lea.vmem [#allocation3], %s6428_s25 }
  0xe3   : > { %3684 = vmatprep.mubr.bf16.mxu1 %v4672_v42  ;;  %v3230_v59 = vrot.slane %v3229_v49, 4  ;;  %v2954_v1 = vor.u32 %v2953_v50, %v2949_v62  ;;  %s3950_s28 = sshll.u32 %s6464_s26, 4  ;;  %s6602_s28 = int_to_ptr.vmem [resolvable:$true] %s3950_s28 }
  0xe4   : > { %3685 = vmatmul.mubr.bf16.gmra.mrb[56].mxu1 %v4671_v56  ;;  %v3207_v5 = vsel %vm5746_vm3, %v3202_v51, %v3206_v37  ;;  %v2961_v48 = vor.u32 %v2960_v6, %v2956_v39  ;;  %s5327_s4 = scalar_lea.vmem %s6602_s28, 4096  ;;  %p5334_p1 = scmp.lt.s32.totalorder %s6602_s28, %s5332_s7 }
  0xe5   : > { %v3235_v9 = vsel %vm5746_vm3, %v3230_v59, %v3234_v44  ;;  %v4586_v10 = vcombine.low %v4521_v63, %v2954_v1  ;;  %v4590_v14 = vsel %vm4167_vm0, %v6253_v32, %v2954_v1  ;;  %p5328_p12 = scmp.ne.s32.totalorder %s6602_s28, %s5327_s4  ;;  %p5335_p2 = scmp.lt.s32.totalorder %s5333_s8, %s5327_s4 }
  0xe6   : > { %v4674_v16 = vcombine.high %v3207_v5, %v3235_v9  ;;  %v4673_v62 = vcombine.low %v3207_v5, %v3235_v9  ;;  %v3218_v23 = vshll.u32 %v4590_v14, 16  ;;  %v4592_v40 = vcombine.low %v4523_v58, %v2961_v48 }
  0xe7   : > { %v3209_v28 = vshrl.u32 %v4586_v10, 16  ;;  %v3212_v18 = vshll.u32 %v4586_v10, 16  ;;  %v4596_v34 = vsel %vm4167_vm0, %v6258_v43, %v2961_v48  ;;  %p5329_p13 = pnand %p5328_p12, %p5465_p4  ;;  %p5336_p3 = por %p5335_p2, %p5334_p1 }
  0xe8   : > { %3627 = vmatprep.mubr.bf16.mxu0 %v4674_v16  ;;  %v3246_v21 = vshll.u32 %v4596_v34, 16  ;;  %v3237_v26 = vshrl.u32 %v4592_v40, 16  ;;  %v3240_v31 = vshll.u32 %v4592_v40, 16  ;;  %v3220_v27 = vrot.slane %v3218_v23, 5 }
  0xe9   : > { %v3211_v13 = vrot.slane %v3209_v28, 4  ;;  %v3214_v11 = vrot.slane %v3212_v18, 5  ;;  %3628 = vmatmul.mubr.bf16.gmra.mrb[60].mxu0 %v4673_v62  ;;  %p5330_p0 = pneg %p5329_p13 }
  0xea   : > { %v3242_v41 = vrot.slane %v3240_v31, 5  ;;  %v3248_v39 = vrot.slane %v3246_v21, 5 }
  0xeb   : > { %p5337_p5 = pnand %p5336_p3, %p5330_p0 }
 0x103   : > { %v4755_v47 = vpop.f32.mrb[0].mxu0 }
 0x104   : > { %v4756_v38 = vpop.f32.mrb[1].mxu0  ;;  %v4795_v45 = vpop.f32.mrb[0].mxu1 }
 0x105   : > { %v4758_v46 = vpop.f32.mrb[2].mxu0  ;;  %v4796_v54 = vpop.f32.mrb[1].mxu1  ;;  %v4757_v0 = vadd.f32 %v4756_v38, %v4755_v47  ;;  %v3215_v47 = vor.u32 %v3214_v11, %v3211_v13  ;;  %v3239_v38 = vrot.slane %v3237_v26, 4 }
 0x106   : > { %v4759_v55 = vpop.f32.mrb[3].mxu0  ;;  %v4798_v61 = vpop.f32.mrb[2].mxu1  ;;  %v4797_v2 = vadd.f32 %v4796_v54, %v4795_v45 }
 0x107   : > { %v4799_v3 = vpop.f32.mrb[3].mxu1  ;;  %v4760_v24 = vadd.f32 %v4759_v55, %v4758_v46  ;;  %v3216_v45 = vrot.slane %v3215_v47, 4  ;;  %v3243_v53 = vor.u32 %v3242_v41, %v3239_v38 }
 0x108   : > { %v4800_v4 = vadd.f32 %v4799_v3, %v4798_v61  ;;  %v803_v8 = vadd.f32 %v4797_v2, %v4757_v0 }
 0x109   : > { %v3221_v56 = vsel %vm5746_vm3, %v3216_v45, %v3220_v27  ;;  %v3244_v49 = vrot.slane %v3243_v53, 4 }
 0x10a   : > { %v806_v15 = vadd.f32 %v4800_v4, %v4760_v24  ;;  %834 = vst.msk [vmem:[#allocation2] sm:$0xff] %vm833_vm4, %v803_v8  ;;  %v864_v25 = vmul.f32 %v803_v8, %v803_v8  ;;  %v842_v22 = vsel %vm833_vm4, %v803_v8, 0.0 }
 0x10b   : > { %v4761_v32 = vpop.f32.mrb[4].mxu0  ;;  %v3249_v63 = vsel %vm5746_vm3, %v3244_v49, %v3248_v39 }
 0x10c   : > { %835 = vst.msk [vmem:[#allocation2 + $0x8] sm:$0xff] %vm833_vm4, %v806_v15  ;;  %v843_v20 = vsel %vm833_vm4, %v806_v15, 0.0  ;;  %v4762_v17 = vpop.f32.mrb[5].mxu0  ;;  %v865_v35 = vmul.f32 %v806_v15, %v806_v15  ;;  %v872_v29 = vsel %vm833_vm4, %v864_v25, 0.0  ;;  %v4801_v43 = vpop.f32.mrb[4].mxu1  ;;  %v4676_v0 = vcombine.high %v3221_v56, %v3249_v63 }
 0x10d   : > { %v844_v33 = vadd.f32 %v843_v20, %v842_v22  ;;  %v4764_v36 = vpop.f32.mrb[6].mxu0  ;;  %v4763_v30 = vadd.f32 %v4762_v17, %v4761_v32  ;;  %v4802_v44 = vpop.f32.mrb[5].mxu1  ;;  %v4675_v2 = vcombine.low %v3221_v56, %v3249_v63 }
 0x10e   : > { %v4765_v37 = vpop.f32.mrb[7].mxu0  ;;  %v873_v12 = vsel %vm833_vm4, %v865_v35, 0.0  ;;  %v4803_v19 = vadd.f32 %v4802_v44, %v4801_v43  ;;  %v4804_v52 = vpop.f32.mrb[6].mxu1  ;;  %3692 = vmatprep.mubr.bf16.mxu1 %v4676_v0 }
 0x10f   : > { %v4766_v7 = vadd.f32 %v4765_v37, %v4764_v36  ;;  %v874_v46 = vadd.f32 %v873_v12, %v872_v29  ;;  %v4805_v54 = vpop.f32.mrb[7].mxu1  ;;  %3693 = vmatmul.mubr.bf16.gmra.mrb[60].mxu1 %v4675_v2 }
 0x110   : > { %v811_v55 = vadd.f32 %v4803_v19, %v4763_v30  ;;  %v4806_v42 = vadd.f32 %v4805_v54, %v4804_v52 }
 0x112   : > { %836 = vst.msk [vmem:[#allocation2 + $0x10] sm:$0xff] %vm833_vm4, %v811_v55  ;;  %v845_v50 = vsel %vm833_vm4, %v811_v55, 0.0  ;;  %v866_v61 = vmul.f32 %v811_v55, %v811_v55  ;;  %v814_v51 = vadd.f32 %v4806_v42, %v4766_v7 }
 0x113   : > { %v846_v57 = vadd.f32 %v845_v50, %v844_v33  ;;  %v4767_v5 = vpop.f32.mrb[8].mxu0 }
 0x114   : > { %v875_v3 = vsel %vm833_vm4, %v866_v61, 0.0  ;;  %837 = vst.msk [vmem:[#allocation2 + $0x18] sm:$0xff] %vm833_vm4, %v814_v51  ;;  %v847_v59 = vsel %vm833_vm4, %v814_v51, 0.0  ;;  %v867_v4 = vmul.f32 %v814_v51, %v814_v51  ;;  %v4768_v6 = vpop.f32.mrb[9].mxu0  ;;  %v4807_v10 = vpop.f32.mrb[8].mxu1 }
 0x115   : > { %v876_v1 = vadd.f32 %v875_v3, %v874_v46  ;;  %v848_v24 = vadd.f32 %v847_v59, %v846_v57  ;;  %v4769_v60 = vadd.f32 %v4768_v6, %v4767_v5  ;;  %v4770_v9 = vpop.f32.mrb[10].mxu0  ;;  %v4808_v15 = vpop.f32.mrb[9].mxu1 }
 0x116   : > { %v877_v8 = vsel %vm833_vm4, %v867_v4, 0.0  ;;  %v4771_v14 = vpop.f32.mrb[11].mxu0  ;;  %v4809_v48 = vadd.f32 %v4808_v15, %v4807_v10  ;;  %v4810_v62 = vpop.f32.mrb[10].mxu1 }
 0x117   : > { %v878_v58 = vadd.f32 %v877_v8, %v876_v1  ;;  %v4772_v16 = vadd.f32 %v4771_v14, %v4770_v9  ;;  %v4811_v28 = vpop.f32.mrb[11].mxu1 }
 0x118   : > { %v819_v18 = vadd.f32 %v4809_v48, %v4769_v60  ;;  %v4812_v23 = vadd.f32 %v4811_v28, %v4810_v62 }
 0x11a   : > { %838 = vst.msk [vmem:[#allocation2 + $0x20] sm:$0xff] %vm833_vm4, %v819_v18  ;;  %v849_v25 = vsel %vm833_vm4, %v819_v18, 0.0  ;;  %v868_v40 = vmul.f32 %v819_v18, %v819_v18  ;;  %v822_v34 = vadd.f32 %v4812_v23, %v4772_v16 }
 0x11b   : > { %v850_v20 = vadd.f32 %v849_v25, %v848_v24  ;;  %v4773_v17 = vpop.f32.mrb[12].mxu0 }
 0x11c   : > { %v879_v32 = vsel %vm833_vm4, %v868_v40, 0.0  ;;  %839 = vst.msk [vmem:[#allocation2 + $0x28] sm:$0xff] %vm833_vm4, %v822_v34  ;;  %v851_v13 = vsel %vm833_vm4, %v822_v34, 0.0  ;;  %v869_v11 = vmul.f32 %v822_v34, %v822_v34  ;;  %v4774_v31 = vpop.f32.mrb[13].mxu0  ;;  %v4813_v47 = vpop.f32.mrb[12].mxu1 }
 0x11d   : > { %v880_v21 = vadd.f32 %v879_v32, %v878_v58  ;;  %v852_v22 = vadd.f32 %v851_v13, %v850_v20  ;;  %v4775_v35 = vadd.f32 %v4774_v31, %v4773_v17  ;;  %v4776_v36 = vpop.f32.mrb[14].mxu0  ;;  %v4814_v29 = vpop.f32.mrb[13].mxu1 }
 0x11e   : > { %v881_v26 = vsel %vm833_vm4, %v869_v11, 0.0  ;;  %v4777_v27 = vpop.f32.mrb[15].mxu0  ;;  %v4815_v30 = vadd.f32 %v4814_v29, %v4813_v47  ;;  %v4816_v37 = vpop.f32.mrb[14].mxu1 }
 0x11f   : > { %v882_v33 = vadd.f32 %v881_v26, %v880_v21  ;;  %v4778_v43 = vadd.f32 %v4777_v27, %v4776_v36  ;;  %v4817_v38 = vpop.f32.mrb[15].mxu1 }
 0x120   : > { %v827_v41 = vadd.f32 %v4815_v30, %v4775_v35  ;;  %v4818_v12 = vadd.f32 %v4817_v38, %v4816_v37 }
 0x122   : > { %840 = vst.msk [vmem:[#allocation2 + $0x30] sm:$0xff] %vm833_vm4, %v827_v41  ;;  %v853_v44 = vsel %vm833_vm4, %v827_v41, 0.0  ;;  %v870_v7 = vmul.f32 %v827_v41, %v827_v41  ;;  %v830_v45 = vadd.f32 %v4818_v12, %v4778_v43 }
 0x123   : > { %v854_v46 = vadd.f32 %v853_v44, %v852_v22 }
 0x124   : > { %v883_v19 = vsel %vm833_vm4, %v870_v7, 0.0  ;;  %841 = vst.msk [vmem:[#allocation2 + $0x38] sm:$0xff] %vm833_vm4, %v830_v45  ;;  %v855_v52 = vsel %vm833_vm4, %v830_v45, 0.0  ;;  %v871_v53 = vmul.f32 %v830_v45, %v830_v45 }
 0x125   : > { %v884_v39 = vadd.f32 %v883_v19, %v882_v33  ;;  %v6330_v54 = vadd.f32 %v855_v52, %v854_v46 }
 0x126   : > { %v885_v55 = vsel %vm833_vm4, %v871_v53, 0.0 }
 0x127   : > { %v6333_v42 = vadd.f32 %v885_v55, %v884_v39 }
 0x129   : > { %v4835_v56 = vpop.f32.mrb[16].mxu0 }
 0x12a   : > { %v4836_v49 = vpop.f32.mrb[17].mxu0 }
 0x12b   : > { %v4837_v50 = vadd.f32 %v4836_v49, %v4835_v56  ;;  %v4838_v61 = vpop.f32.mrb[18].mxu0 }
 0x12c   : > { %v4839_v51 = vpop.f32.mrb[19].mxu0 }
 0x12d   : > { %v4840_v63 = vadd.f32 %v4839_v51, %v4838_v61  ;;  %v4875_v57 = vpop.f32.mrb[16].mxu1 }
 0x12e   : > { %v4876_v0 = vpop.f32.mrb[17].mxu1 }
 0x12f   : > { %v4877_v2 = vadd.f32 %v4876_v0, %v4875_v57  ;;  %v4878_v3 = vpop.f32.mrb[18].mxu1 }
 0x130   : > { %v4879_v59 = vpop.f32.mrb[19].mxu1 }
 0x131   : > { %v1878_v1 = vadd.f32 %v4877_v2, %v4837_v50  ;;  %v4880_v24 = vadd.f32 %v4879_v59, %v4878_v3 }
 0x133   : > { %1909 = vst.msk [vmem:[#allocation2 + $0x40] sm:$0xff] %vm833_vm4, %v1878_v1  ;;  %v1939_v4 = vmul.f32 %v1878_v1, %v1878_v1  ;;  %v1881_v5 = vadd.f32 %v4880_v24, %v4840_v63  ;;  %v1917_v6 = vsel %vm833_vm4, %v1878_v1, 0.0 }
 0x135   : > { %1910 = vst.msk [vmem:[#allocation2 + $0x48] sm:$0xff] %vm833_vm4, %v1881_v5  ;;  %v1918_v8 = vsel %vm833_vm4, %v1881_v5, 0.0  ;;  %v1940_v60 = vmul.f32 %v1881_v5, %v1881_v5  ;;  %v1947_v58 = vsel %vm833_vm4, %v1939_v4, 0.0 }
 0x136   : > { %v1919_v9 = vadd.f32 %v1918_v8, %v1917_v6  ;;  %v857_v6 = vrot.slane %v6330_v54, 4 }
 0x137   : > { %v1948_v10 = vsel %vm833_vm4, %v1940_v60, 0.0 }
 0x138   : > { %v1949_v14 = vadd.f32 %v1948_v10, %v1947_v58  ;;  %v887_v58 = vrot.slane %v6333_v42, 4 }
 0x13b   : > { %v4841_v15 = vpop.f32.mrb[20].mxu0 }
 0x13c   : > { %v4842_v16 = vpop.f32.mrb[21].mxu0 }
 0x13d   : > { %v4843_v48 = vadd.f32 %v4842_v16, %v4841_v15  ;;  %v4844_v62 = vpop.f32.mrb[22].mxu0 }
 0x13e   : > { %v4845_v28 = vpop.f32.mrb[23].mxu0  ;;  %v4881_v23 = vpop.f32.mrb[20].mxu1 }
 0x13f   : > { %v4846_v18 = vadd.f32 %v4845_v28, %v4844_v62  ;;  %v4882_v25 = vpop.f32.mrb[21].mxu1  ;;  %v858_v62 = vadd.f32 %v857_v6, %v6330_v54 }
 0x140   : > { %v4883_v40 = vadd.f32 %v4882_v25, %v4881_v23  ;;  %v4884_v34 = vpop.f32.mrb[22].mxu1 }
 0x141   : > { %v4885_v20 = vpop.f32.mrb[23].mxu1 }
 0x142   : > { %v1886_v32 = vadd.f32 %v4883_v40, %v4843_v48  ;;  %v4886_v13 = vadd.f32 %v4885_v20, %v4884_v34  ;;  %v888_v20 = vadd.f32 %v887_v58, %v6333_v42 }
 0x144   : > { %1911 = vst.msk [vmem:[#allocation2 + $0x50] sm:$0xff] %vm833_vm4, %v1886_v32  ;;  %v1920_v11 = vsel %vm833_vm4, %v1886_v32, 0.0  ;;  %v1941_v21 = vmul.f32 %v1886_v32, %v1886_v32  ;;  %v1889_v22 = vadd.f32 %v4886_v13, %v4846_v18 }
 0x145   : > { %v1921_v17 = vadd.f32 %v1920_v11, %v1919_v9 }
 0x146   : > { %v1950_v26 = vsel %vm833_vm4, %v1941_v21, 0.0  ;;  %1912 = vst.msk [vmem:[#allocation2 + $0x58] sm:$0xff] %vm833_vm4, %v1889_v22  ;;  %v1922_v31 = vsel %vm833_vm4, %v1889_v22, 0.0  ;;  %v1942_v33 = vmul.f32 %v1889_v22, %v1889_v22 }
 0x147   : > { %v1951_v35 = vadd.f32 %v1950_v26, %v1949_v14  ;;  %v1923_v36 = vadd.f32 %v1922_v31, %v1921_v17  ;;  %v859_v17 = vrot.slane %v858_v62, 2 }
 0x148   : > { %v1952_v47 = vsel %vm833_vm4, %v1942_v33, 0.0 }
 0x149   : > { %v1953_v27 = vadd.f32 %v1952_v47, %v1951_v35 }
 0x14c   : > { %v4847_v29 = vpop.f32.mrb[24].mxu0 }
 0x14d   : > { %v4848_v43 = vpop.f32.mrb[25].mxu0 }
 0x14e   : > { %v4849_v30 = vadd.f32 %v4848_v43, %v4847_v29  ;;  %v4850_v37 = vpop.f32.mrb[26].mxu0 }
 0x14f   : > { %v4851_v38 = vpop.f32.mrb[27].mxu0 }
 0x150   : > { %v4852_v41 = vadd.f32 %v4851_v38, %v4850_v37 }
 0x151   : > { %v4887_v12 = vpop.f32.mrb[24].mxu1 }
 0x152   : > { %v4888_v44 = vpop.f32.mrb[25].mxu1 }
 0x153   : > { %v4889_v7 = vadd.f32 %v4888_v44, %v4887_v12  ;;  %v4890_v45 = vpop.f32.mrb[26].mxu1 }
 0x154   : > { %v4891_v46 = vpop.f32.mrb[27].mxu1 }
 0x155   : > { %v1894_v19 = vadd.f32 %v4889_v7, %v4849_v30  ;;  %v4892_v52 = vadd.f32 %v4891_v46, %v4890_v45 }
 0x157   : > { %1913 = vst.msk [vmem:[#allocation2 + $0x60] sm:$0xff] %vm833_vm4, %v1894_v19  ;;  %v1924_v53 = vsel %vm833_vm4, %v1894_v19, 0.0  ;;  %v1943_v39 = vmul.f32 %v1894_v19, %v1894_v19  ;;  %v1897_v55 = vadd.f32 %v4892_v52, %v4852_v41  ;;  %v860_v41 = vadd.f32 %v859_v17, %v858_v62 }
 0x158   : > { %v1925_v56 = vadd.f32 %v1924_v53, %v1923_v36 }
 0x159   : > { %v1954_v49 = vsel %vm833_vm4, %v1943_v39, 0.0  ;;  %1914 = vst.msk [vmem:[#allocation2 + $0x68] sm:$0xff] %vm833_vm4, %v1897_v55  ;;  %v1926_v50 = vsel %vm833_vm4, %v1897_v55, 0.0  ;;  %v1944_v61 = vmul.f32 %v1897_v55, %v1897_v55 }
 0x15a   : > { %v1955_v51 = vadd.f32 %v1954_v49, %v1953_v27  ;;  %v1927_v63 = vadd.f32 %v1926_v50, %v1925_v56  ;;  %v889_v27 = vrot.slane %v888_v20, 2 }
 0x15b   : > { %v1956_v57 = vsel %vm833_vm4, %v1944_v61, 0.0 }
 0x15c   : > { %v1957_v0 = vadd.f32 %v1956_v57, %v1955_v51  ;;  %v890_v53 = vadd.f32 %v889_v27, %v888_v20  ;;  %v861_v57 = vrot.slane %v860_v41, 1 }
 0x15e   : > { %v4853_v2 = vpop.f32.mrb[28].mxu0  ;;  %v891_v6 = vrot.slane %v890_v53, 1 }
 0x15f   : > { %v4854_v3 = vpop.f32.mrb[29].mxu0 }
 0x160   : > { %v4855_v59 = vadd.f32 %v4854_v3, %v4853_v2  ;;  %v4856_v1 = vpop.f32.mrb[30].mxu0 }
 0x161   : > { %v4857_v24 = vpop.f32.mrb[31].mxu0 }
 0x162   : > { %v4858_v4 = vadd.f32 %v4857_v24, %v4856_v1  ;;  %v4893_v5 = vpop.f32.mrb[28].mxu1 }
 0x163   : > { %v4894_v8 = vpop.f32.mrb[29].mxu1 }
 0x164   : > { %v4895_v60 = vadd.f32 %v4894_v8, %v4893_v5  ;;  %v4896_v9 = vpop.f32.mrb[30].mxu1 }
 0x165   : > { %v4897_v10 = vpop.f32.mrb[31].mxu1 }
 0x166   : > { %v4915_v14 = vpop.f32.mrb[32].mxu0  ;;  %v1902_v15 = vadd.f32 %v4895_v60, %v4855_v59  ;;  %v4898_v16 = vadd.f32 %v4897_v10, %v4896_v9 }
 0x167   : > { %v4916_v48 = vpop.f32.mrb[33].mxu0 }
 0x168   : > { %v4917_v28 = vadd.f32 %v4916_v48, %v4915_v14  ;;  %v4918_v18 = vpop.f32.mrb[34].mxu0  ;;  %1915 = vst.msk [vmem:[#allocation2 + $0x70] sm:$0xff] %vm833_vm4, %v1902_v15  ;;  %v1928_v23 = vsel %vm833_vm4, %v1902_v15, 0.0  ;;  %v1945_v25 = vmul.f32 %v1902_v15, %v1902_v15  ;;  %v1905_v40 = vadd.f32 %v4898_v16, %v4858_v4 }
 0x169   : > { %v4919_v34 = vpop.f32.mrb[35].mxu0  ;;  %v1929_v32 = vadd.f32 %v1928_v23, %v1927_v63  ;;  %v862_v15 = vadd.f32 %v861_v57, %v860_v41  ;;  %v892_v23 = vadd.f32 %v891_v6, %v890_v53 }
 0x16a   : > { %v4920_v13 = vadd.f32 %v4919_v34, %v4918_v18  ;;  %v1958_v11 = vsel %vm833_vm4, %v1945_v25, 0.0  ;;  %1916 = vst.msk [vmem:[#allocation2 + $0x78] sm:$0xff] %vm833_vm4, %v1905_v40  ;;  %v1930_v21 = vsel %vm833_vm4, %v1905_v40, 0.0  ;;  %v1946_v54 = vmul.f32 %v1905_v40, %v1905_v40  ;;  %v4955_v22 = vpop.f32.mrb[32].mxu1 }
 0x16b   : > { %v1959_v26 = vadd.f32 %v1958_v11, %v1957_v0  ;;  %v1931_v31 = vadd.f32 %v1930_v21, %v1929_v32  ;;  %v4956_v33 = vpop.f32.mrb[33].mxu1 }
 0x16c   : > { %v1960_v35 = vsel %vm833_vm4, %v1946_v54, 0.0  ;;  %v4957_v36 = vadd.f32 %v4956_v33, %v4955_v22  ;;  %v4958_v47 = vpop.f32.mrb[34].mxu1 }
 0x16d   : > { %v1932_v42 = vrot.slane %v1931_v31, 4  ;;  %v1961_v29 = vadd.f32 %v1960_v35, %v1959_v26  ;;  %v4959_v43 = vpop.f32.mrb[35].mxu1 }
 0x16e   : > { %v2599_v30 = vadd.f32 %v4957_v36, %v4917_v28  ;;  %v4960_v37 = vadd.f32 %v4959_v43, %v4958_v47  ;;  %v4921_v38 = vpop.f32.mrb[36].mxu0 }
 0x16f   : > { %v1933_v12 = vadd.f32 %v1932_v42, %v1931_v31  ;;  %v1962_v44 = vrot.slane %v1961_v29, 4  ;;  %v4922_v7 = vpop.f32.mrb[37].mxu0 }
 0x170   : > { %2630 = vst.msk [vmem:[#allocation2 + $0x80] sm:$0xff] %vm833_vm4, %v2599_v30  ;;  %v2660_v45 = vmul.f32 %v2599_v30, %v2599_v30  ;;  %v2602_v46 = vadd.f32 %v4960_v37, %v4920_v13  ;;  %v4923_v19 = vadd.f32 %v4922_v7, %v4921_v38  ;;  %v4924_v52 = vpop.f32.mrb[38].mxu0  ;;  %v2638_v49 = vsel %vm833_vm4, %v2599_v30, 0.0 }
 0x171   : > { %v1934_v39 = vrot.slane %v1933_v12, 2  ;;  %v1963_v55 = vadd.f32 %v1962_v44, %v1961_v29  ;;  %v4925_v56 = vpop.f32.mrb[39].mxu0 }
 0x172   : > { %2631 = vst.msk [vmem:[#allocation2 + $0x88] sm:$0xff] %vm833_vm4, %v2602_v46  ;;  %v2639_v50 = vsel %vm833_vm4, %v2602_v46, 0.0  ;;  %v2661_v61 = vmul.f32 %v2602_v46, %v2602_v46  ;;  %v4961_v51 = vpop.f32.mrb[36].mxu1  ;;  %v4926_v63 = vadd.f32 %v4925_v56, %v4924_v52  ;;  %v2668_v1 = vsel %vm833_vm4, %v2660_v45, 0.0 }
 0x173   : > { %v1935_v0 = vadd.f32 %v1934_v39, %v1933_v12  ;;  %v1964_v2 = vrot.slane %v1963_v55, 2  ;;  %v2640_v3 = vadd.f32 %v2639_v50, %v2638_v49  ;;  %v4962_v59 = vpop.f32.mrb[37].mxu1 }
 0x174   : > { %v2669_v24 = vsel %vm833_vm4, %v2661_v61, 0.0  ;;  %v4963_v4 = vadd.f32 %v4962_v59, %v4961_v51  ;;  %v4964_v5 = vpop.f32.mrb[38].mxu1 }
 0x175   : > { %v1936_v8 = vrot.slane %v1935_v0, 1  ;;  %v1965_v60 = vadd.f32 %v1964_v2, %v1963_v55  ;;  %v2670_v9 = vadd.f32 %v2669_v24, %v2668_v1  ;;  %v4965_v58 = vpop.f32.mrb[39].mxu1 }
 0x176   : > { %v2607_v10 = vadd.f32 %v4963_v4, %v4923_v19  ;;  %v4966_v14 = vadd.f32 %v4965_v58, %v4964_v5  ;;  %v4927_v20 = vpop.f32.mrb[40].mxu0 }
 0x177   : > { %v1937_v16 = vadd.f32 %v1936_v8, %v1935_v0  ;;  %v1966_v48 = vrot.slane %v1965_v60, 1  ;;  %v4928_v21 = vpop.f32.mrb[41].mxu0 }
 0x178   : > { %2632 = vst.msk [vmem:[#allocation2 + $0x90] sm:$0xff] %vm833_vm4, %v2607_v10  ;;  %v2641_v62 = vsel %vm833_vm4, %v2607_v10, 0.0  ;;  %v2662_v28 = vmul.f32 %v2607_v10, %v2607_v10  ;;  %v2610_v18 = vadd.f32 %v4966_v14, %v4926_v63  ;;  %v4929_v31 = vadd.f32 %v4928_v21, %v4927_v20  ;;  %v4930_v33 = vpop.f32.mrb[42].mxu0 }
 0x179   : > { %v6371_v25 = vadd.f32 %v1937_v16, %v862_v15  ;;  %v1967_v40 = vadd.f32 %v1966_v48, %v1965_v60  ;;  %v2642_v34 = vadd.f32 %v2641_v62, %v2640_v3  ;;  %v4931_v47 = vpop.f32.mrb[43].mxu0 }
 0x17a   : > { %v2671_v32 = vsel %vm833_vm4, %v2662_v28, 0.0  ;;  %2633 = vst.msk [vmem:[#allocation2 + $0x98] sm:$0xff] %vm833_vm4, %v2610_v18  ;;  %v2643_v13 = vsel %vm833_vm4, %v2610_v18, 0.0  ;;  %v2663_v11 = vmul.f32 %v2610_v18, %v2610_v18  ;;  %v4967_v26 = vpop.f32.mrb[40].mxu1  ;;  %v4932_v43 = vadd.f32 %v4931_v47, %v4930_v33 }
 0x17b   : > { %v6376_v54 = vadd.f32 %v1967_v40, %v892_v23  ;;  %v2672_v22 = vadd.f32 %v2671_v32, %v2670_v9  ;;  %v2644_v17 = vadd.f32 %v2643_v13, %v2642_v34  ;;  %v4968_v36 = vpop.f32.mrb[41].mxu1 }
 0x17c   : > { %v2673_v35 = vsel %vm833_vm4, %v2663_v11, 0.0  ;;  %v4969_v42 = vadd.f32 %v4968_v36, %v4967_v26  ;;  %v4970_v29 = vpop.f32.mrb[42].mxu1 }
 0x17d   : > { %v2674_v27 = vadd.f32 %v2673_v35, %v2672_v22  ;;  %v4971_v30 = vpop.f32.mrb[43].mxu1 }
 0x17e   : > { %v2615_v37 = vadd.f32 %v4969_v42, %v4929_v31  ;;  %v4972_v38 = vadd.f32 %v4971_v30, %v4970_v29  ;;  %v4933_v39 = vpop.f32.mrb[44].mxu0 }
 0x17f   : > { %v4934_v56 = vpop.f32.mrb[45].mxu0 }
 0x180   : > { %2634 = vst.msk [vmem:[#allocation2 + $0xa0] sm:$0xff] %vm833_vm4, %v2615_v37  ;;  %v2645_v41 = vsel %vm833_vm4, %v2615_v37, 0.0  ;;  %v2664_v12 = vmul.f32 %v2615_v37, %v2615_v37  ;;  %v2618_v44 = vadd.f32 %v4972_v38, %v4932_v43  ;;  %v4935_v50 = vadd.f32 %v4934_v56, %v4933_v39  ;;  %v4936_v61 = vpop.f32.mrb[46].mxu0 }
 0x181   : > { %v2646_v7 = vadd.f32 %v2645_v41, %v2644_v17  ;;  %v4937_v63 = vpop.f32.mrb[47].mxu0 }
 0x182   : > { %v2675_v45 = vsel %vm833_vm4, %v2664_v12, 0.0  ;;  %2635 = vst.msk [vmem:[#allocation2 + $0xa8] sm:$0xff] %vm833_vm4, %v2618_v44  ;;  %v2647_v46 = vsel %vm833_vm4, %v2618_v44, 0.0  ;;  %v2665_v19 = vmul.f32 %v2618_v44, %v2618_v44  ;;  %v4973_v51 = vpop.f32.mrb[44].mxu1  ;;  %v4938_v0 = vadd.f32 %v4937_v63, %v4936_v61 }
 0x183   : > { %v2676_v52 = vadd.f32 %v2675_v45, %v2674_v27  ;;  %v2648_v53 = vadd.f32 %v2647_v46, %v2646_v7  ;;  %v4974_v57 = vpop.f32.mrb[45].mxu1 }
 0x184   : > { %v2677_v55 = vsel %vm833_vm4, %v2665_v19, 0.0  ;;  %v4975_v2 = vadd.f32 %v4974_v57, %v4973_v51  ;;  %v4976_v3 = vpop.f32.mrb[46].mxu1 }
 0x185   : > { %v2678_v49 = vadd.f32 %v2677_v55, %v2676_v52  ;;  %v4977_v59 = vpop.f32.mrb[47].mxu1 }
 0x186   : > { %v2623_v1 = vadd.f32 %v4975_v2, %v4935_v50  ;;  %v4978_v24 = vadd.f32 %v4977_v59, %v4976_v3 }
 0x188   : > { %2636 = vst.msk [vmem:[#allocation2 + $0xb0] sm:$0xff] %vm833_vm4, %v2623_v1  ;;  %v2649_v4 = vsel %vm833_vm4, %v2623_v1, 0.0  ;;  %v2666_v5 = vmul.f32 %v2623_v1, %v2623_v1  ;;  %v2626_v6 = vadd.f32 %v4978_v24, %v4938_v0 }
 0x189   : > { %v2650_v8 = vadd.f32 %v2649_v4, %v2648_v53 }
 0x18a   : > { %v2679_v60 = vsel %vm833_vm4, %v2666_v5, 0.0  ;;  %2637 = vst.msk [vmem:[#allocation2 + $0xb8] sm:$0xff] %vm833_vm4, %v2626_v6  ;;  %v2651_v9 = vsel %vm833_vm4, %v2626_v6, 0.0  ;;  %v2667_v58 = vmul.f32 %v2626_v6, %v2626_v6 }
 0x18b   : > { %v2680_v10 = vadd.f32 %v2679_v60, %v2678_v49  ;;  %v2652_v14 = vadd.f32 %v2651_v9, %v2650_v8 }
 0x18c   : > { %v2681_v15 = vsel %vm833_vm4, %v2667_v58, 0.0 }
 0x18d   : > { %v2653_v16 = vrot.slane %v2652_v14, 4  ;;  %v2682_v48 = vadd.f32 %v2681_v15, %v2680_v10 }
 0x18f   : > { %v2654_v62 = vadd.f32 %v2653_v16, %v2652_v14  ;;  %v2683_v28 = vrot.slane %v2682_v48, 4  ;;  %v4995_v21 = vpop.f32.mrb[48].mxu0 }
 0x190   : > { %v4996_v22 = vpop.f32.mrb[49].mxu0 }
 0x191   : > { %v2655_v18 = vrot.slane %v2654_v62, 2  ;;  %v2684_v23 = vadd.f32 %v2683_v28, %v2682_v48  ;;  %v4997_v31 = vadd.f32 %v4996_v22, %v4995_v21  ;;  %v4998_v33 = vpop.f32.mrb[50].mxu0 }
 0x192   : > { %v4999_v35 = vpop.f32.mrb[51].mxu0  ;;  %v5035_v27 = vpop.f32.mrb[48].mxu1 }
 0x193   : > { %v2656_v40 = vadd.f32 %v2655_v18, %v2654_v62  ;;  %v2685_v34 = vrot.slane %v2684_v23, 2  ;;  %v5000_v47 = vadd.f32 %v4999_v35, %v4998_v33  ;;  %v5036_v42 = vpop.f32.mrb[49].mxu1 }
 0x194   : > { %v5037_v29 = vadd.f32 %v5036_v42, %v5035_v27  ;;  %v5038_v43 = vpop.f32.mrb[50].mxu1 }
 0x195   : > { %v2657_v20 = vrot.slane %v2656_v40, 1  ;;  %v2686_v32 = vadd.f32 %v2685_v34, %v2684_v23  ;;  %v5039_v30 = vpop.f32.mrb[51].mxu1 }
 0x196   : > { %v3671_v37 = vadd.f32 %v5037_v29, %v4997_v31  ;;  %v5040_v38 = vadd.f32 %v5039_v30, %v5038_v43 }
 0x197   : > { %v2658_v13 = vadd.f32 %v2657_v20, %v2656_v40  ;;  %v2687_v11 = vrot.slane %v2686_v32, 1 }
 0x198   : > { %3702 = vst.msk [vmem:[#allocation2 + $0xc0] sm:$0xff] %vm833_vm4, %v3671_v37  ;;  %v3732_v41 = vmul.f32 %v3671_v37, %v3671_v37  ;;  %v3710_v12 = vsel %vm833_vm4, %v3671_v37, 0.0 }
 0x199   : > { %v6392_v17 = vadd.f32 %v2658_v13, %v6371_v25  ;;  %v2688_v26 = vadd.f32 %v2687_v11, %v2686_v32  ;;  %v3674_v25 = vadd.f32 %v5040_v38, %v5000_v47 }
 0x19a   : > { %v3740_v45 = vsel %vm833_vm4, %v3732_v41, 0.0 }
 0x19b   : > { %v6395_v36 = vadd.f32 %v2688_v26, %v6376_v54  ;;  %3703 = vst.msk [vmem:[#allocation2 + $0xc8] sm:$0xff] %vm833_vm4, %v3674_v25  ;;  %v3711_v44 = vsel %vm833_vm4, %v3674_v25, 0.0  ;;  %v3733_v54 = vmul.f32 %v3674_v25, %v3674_v25 }
 0x19c   : > { %v3712_v7 = vadd.f32 %v3711_v44, %v3710_v12 }
 0x19d   : > { %v3741_v46 = vsel %vm833_vm4, %v3733_v54, 0.0  ;;  %v5001_v52 = vpop.f32.mrb[52].mxu0 }
 0x19e   : > { %v3742_v19 = vadd.f32 %v3741_v46, %v3740_v45  ;;  %v5002_v53 = vpop.f32.mrb[53].mxu0 }
 0x19f   : > { %v5003_v39 = vadd.f32 %v5002_v53, %v5001_v52  ;;  %v5004_v55 = vpop.f32.mrb[54].mxu0 }
 0x1a0   : > { %v5005_v56 = vpop.f32.mrb[55].mxu0 }
 0x1a1   : > { %v5006_v49 = vadd.f32 %v5005_v56, %v5004_v55 }
 0x1a5   : > { %v5041_v50 = vpop.f32.mrb[52].mxu1 }
 0x1a6   : > { %v5042_v61 = vpop.f32.mrb[53].mxu1 }
 0x1a7   : > { %v5043_v51 = vadd.f32 %v5042_v61, %v5041_v50  ;;  %v5044_v63 = vpop.f32.mrb[54].mxu1 }
 0x1a8   : > { %v5045_v57 = vpop.f32.mrb[55].mxu1 }
 0x1a9   : > { %v3679_v0 = vadd.f32 %v5043_v51, %v5003_v39  ;;  %v5046_v2 = vadd.f32 %v5045_v57, %v5044_v63 }
 0x1ab   : > { %3704 = vst.msk [vmem:[#allocation2 + $0xd0] sm:$0xff] %vm833_vm4, %v3679_v0  ;;  %v3713_v3 = vsel %vm833_vm4, %v3679_v0, 0.0  ;;  %v3734_v59 = vmul.f32 %v3679_v0, %v3679_v0  ;;  %v3682_v1 = vadd.f32 %v5046_v2, %v5006_v49 }
 0x1ac   : > { %v3714_v24 = vadd.f32 %v3713_v3, %v3712_v7  ;;  %v5007_v4 = vpop.f32.mrb[56].mxu0 }
 0x1ad   : > { %v3743_v5 = vsel %vm833_vm4, %v3734_v59, 0.0  ;;  %3705 = vst.msk [vmem:[#allocation2 + $0xd8] sm:$0xff] %vm833_vm4, %v3682_v1  ;;  %v3715_v6 = vsel %vm833_vm4, %v3682_v1, 0.0  ;;  %v3735_v8 = vmul.f32 %v3682_v1, %v3682_v1  ;;  %v5008_v60 = vpop.f32.mrb[57].mxu0 }
 0x1ae   : > { %v3744_v9 = vadd.f32 %v3743_v5, %v3742_v19  ;;  %v3716_v58 = vadd.f32 %v3715_v6, %v3714_v24  ;;  %v5009_v10 = vadd.f32 %v5008_v60, %v5007_v4  ;;  %v5010_v14 = vpop.f32.mrb[58].mxu0 }
 0x1af   : > { %v3745_v15 = vsel %vm833_vm4, %v3735_v8, 0.0  ;;  %v5011_v16 = vpop.f32.mrb[59].mxu0 }
 0x1b0   : > { %v3746_v48 = vadd.f32 %v3745_v15, %v3744_v9  ;;  %v5012_v62 = vadd.f32 %v5011_v16, %v5010_v14 }
 0x1b7   : > { %v5047_v28 = vpop.f32.mrb[56].mxu1 }
 0x1b8   : > { %v5048_v18 = vpop.f32.mrb[57].mxu1 }
 0x1b9   : > { %v5049_v23 = vadd.f32 %v5048_v18, %v5047_v28  ;;  %v5050_v40 = vpop.f32.mrb[58].mxu1  ;;  %v3772_v28 = vld [vmem:[#allocation2] sm:$0xff]  ;;  %v3773_v18 = vld [vmem:[#allocation2 + $0x8] sm:$0xff] }
 0x1ba   : > { %v5051_v34 = vpop.f32.mrb[59].mxu1 }
 0x1bb   : > { %v3687_v20 = vadd.f32 %v5049_v23, %v5009_v10  ;;  %v5052_v32 = vadd.f32 %v5051_v34, %v5050_v40  ;;  %v3774_v23 = vld [vmem:[#allocation2 + $0x10] sm:$0xff]  ;;  %v3775_v40 = vld [vmem:[#allocation2 + $0x18] sm:$0xff]  ;;  %v3776_v34 = vld [vmem:[#allocation2 + $0x20] sm:$0xff] }
 0x1bc   : > { %v5013_v13 = vpop.f32.mrb[60].mxu0 }
 0x1bd   : > { %3706 = vst.msk [vmem:[#allocation2 + $0xe0] sm:$0xff] %vm833_vm4, %v3687_v20  ;;  %v3717_v11 = vsel %vm833_vm4, %v3687_v20, 0.0  ;;  %v3736_v21 = vmul.f32 %v3687_v20, %v3687_v20  ;;  %v3690_v22 = vadd.f32 %v5052_v32, %v5012_v62  ;;  %v5014_v26 = vpop.f32.mrb[61].mxu0 }
 0x1be   : > { %v3718_v31 = vadd.f32 %v3717_v11, %v3716_v58  ;;  %v5015_v33 = vadd.f32 %v5014_v26, %v5013_v13  ;;  %v5016_v35 = vpop.f32.mrb[62].mxu0  ;;  %v3778_v13 = vld [vmem:[#allocation2 + $0x30] sm:$0xff]  ;;  %v3779_v11 = vld [vmem:[#allocation2 + $0x38] sm:$0xff] }
 0x1bf   : > { %v3747_v47 = vsel %vm833_vm4, %v3736_v21, 0.0  ;;  %3707 = vst.msk [vmem:[#allocation2 + $0xe8] sm:$0xff] %vm833_vm4, %v3690_v22  ;;  %v3719_v27 = vsel %vm833_vm4, %v3690_v22, 0.0  ;;  %v3737_v42 = vmul.f32 %v3690_v22, %v3690_v22  ;;  %v5017_v29 = vpop.f32.mrb[63].mxu0  ;;  %v3812_v21 = vld [vmem:[#allocation2 + $0x40] sm:$0xff]  ;;  %v3813_v22 = vld [vmem:[#allocation2 + $0x48] sm:$0xff] }
 0x1c0   : > { %v3748_v43 = vadd.f32 %v3747_v47, %v3746_v48  ;;  %v3720_v30 = vadd.f32 %v3719_v27, %v3718_v31  ;;  %v5018_v37 = vadd.f32 %v5017_v29, %v5016_v35  ;;  %v3814_v47 = vld [vmem:[#allocation2 + $0x50] sm:$0xff]  ;;  %v3815_v27 = vld [vmem:[#allocation2 + $0x58] sm:$0xff] }
 0x1c1   : > { %v3749_v38 = vsel %vm833_vm4, %v3737_v42, 0.0  ;;  %v3816_v42 = vld [vmem:[#allocation2 + $0x60] sm:$0xff] }
 0x1c2   : > { %v3750_v41 = vadd.f32 %v3749_v38, %v3748_v43  ;;  %v3817_v38 = vld [vmem:[#allocation2 + $0x68] sm:$0xff] }
 0x1e2   : > { %v5053_v25 = vpop.f32.mrb[60].mxu1 }
 0x1e3   : > { %v5054_v12 = vpop.f32.mrb[61].mxu1 }
 0x1e4   : > { %v5055_v44 = vadd.f32 %v5054_v12, %v5053_v25  ;;  %v5056_v54 = vpop.f32.mrb[62].mxu1  ;;  %v3819_v25 = vld [vmem:[#allocation2 + $0x78] sm:$0xff] }
 0x1e5   : > { %v5057_v7 = vpop.f32.mrb[63].mxu1 }
 0x1e6   : > { %v3695_v45 = vadd.f32 %v5055_v44, %v5015_v33  ;;  %v5058_v46 = vadd.f32 %v5057_v7, %v5056_v54 }
 0x1e8   : > { %3708 = vst.msk [vmem:[#allocation2 + $0xf0] sm:$0xff] %vm833_vm4, %v3695_v45  ;;  %v3721_v19 = vsel %vm833_vm4, %v3695_v45, 0.0  ;;  %v3738_v52 = vmul.f32 %v3695_v45, %v3695_v45  ;;  %v3698_v53 = vadd.f32 %v5058_v46, %v5018_v37  ;;  %v3853_v45 = vld [vmem:[#allocation2 + $0x80] sm:$0xff]  ;;  %v3854_v46 = vld [vmem:[#allocation2 + $0x88] sm:$0xff] }
 0x1e9   : > { %v3722_v39 = vadd.f32 %v3721_v19, %v3720_v30  ;;  %v3855_v19 = vld [vmem:[#allocation2 + $0x90] sm:$0xff] }
 0x1ea   : > { %v3751_v55 = vsel %vm833_vm4, %v3738_v52, 0.0  ;;  %3709 = vst.msk [vmem:[#allocation2 + $0xf8] sm:$0xff] %vm833_vm4, %v3698_v53  ;;  %v3723_v56 = vsel %vm833_vm4, %v3698_v53, 0.0  ;;  %v3739_v49 = vmul.f32 %v3698_v53, %v3698_v53 }
 0x1eb   : > { %v3752_v50 = vadd.f32 %v3751_v55, %v3750_v41  ;;  %v3724_v61 = vadd.f32 %v3723_v56, %v3722_v39  ;;  %v3818_v41 = vld [vmem:[#allocation2 + $0x70] sm:$0xff]  ;;  %v3856_v56 = vld [vmem:[#allocation2 + $0x98] sm:$0xff] }
 0x1ec   : > { %v3753_v51 = vsel %vm833_vm4, %v3739_v49, 0.0  ;;  %v3857_v49 = vld [vmem:[#allocation2 + $0xa0] sm:$0xff] }
 0x1ed   : > { %v3725_v63 = vrot.slane %v3724_v61, 4  ;;  %v3754_v57 = vadd.f32 %v3753_v51, %v3752_v50  ;;  %v3858_v50 = vld [vmem:[#allocation2 + $0xa8] sm:$0xff] }
 0x1ef   : > { %v3726_v0 = vadd.f32 %v3725_v63, %v3724_v61  ;;  %v3755_v2 = vrot.slane %v3754_v57, 4 }
 0x1f1   : > { %v3727_v3 = vrot.slane %v3726_v0, 2  ;;  %v3756_v59 = vadd.f32 %v3755_v2, %v3754_v57  ;;  %v3860_v2 = vld [vmem:[#allocation2 + $0xb8] sm:$0xff] }
 0x1f3   : > { %v3728_v1 = vadd.f32 %v3727_v3, %v3726_v0  ;;  %v3757_v24 = vrot.slane %v3756_v59, 2  ;;  %v3859_v0 = vld [vmem:[#allocation2 + $0xb0] sm:$0xff]  ;;  %v3894_v3 = vld [vmem:[#allocation2 + $0xc0] sm:$0xff] }
 0x1f5   : > { %v3729_v4 = vrot.slane %v3728_v1, 1  ;;  %v3758_v5 = vadd.f32 %v3757_v24, %v3756_v59 }
 0x1f7   : > { %v3730_v6 = vadd.f32 %v3729_v4, %v3728_v1  ;;  %v3759_v8 = vrot.slane %v3758_v5, 1 }
 0x1f9   : > { %v3731_v60 = vadd.f32 %v3730_v6, %v6392_v17  ;;  %v3760_v9 = vadd.f32 %v3759_v8, %v3758_v5  ;;  %v3777_v17 = vld [vmem:[#allocation2 + $0x28] sm:$0xff]  ;;  %v3896_v6 = vld [vmem:[#allocation2 + $0xd0] sm:$0xff]  ;;  %v3897_v8 = vld [vmem:[#allocation2 + $0xd8] sm:$0xff] }
 0x1fa   : > { %v3895_v5 = vld [vmem:[#allocation2 + $0xc8] sm:$0xff] }
 0x1fb   : > { %v3761_v58 = vadd.f32 %v3760_v9, %v6395_v36  ;;  %v3763_v10 = vmul.f32 0.00390625, %v3731_v60  ;;  %v3901_v36 = vld [vmem:[#allocation2 + $0xf8] sm:$0xff] }
 0x1fd   : > { %v3764_v14 = vmul.f32 0.00390625, %v3761_v58  ;;  %v3765_v15 = vmul.f32 %v3763_v10, %v3763_v10  ;;  %v3770_v20 = vsub.f32 0.0, %v3763_v10 }
 0x1ff   : > { %v3766_v16 = vsub.f32 %v3764_v14, %v3765_v15  ;;  %v3898_v14 = vld [vmem:[#allocation2 + $0xe0] sm:$0xff]  ;;  %v3899_v15 = vld [vmem:[#allocation2 + $0xe8] sm:$0xff] }
 0x201   : > { %v3767_v48 = vmax.f32 %v3766_v16, 0.0  ;;  %v3900_v16 = vld [vmem:[#allocation2 + $0xf0] sm:$0xff] }
 0x203   : > { %v3768_v62 = vadd.f32 1e-05, %v3767_v48 }
 0x205   : > { %5325 = vrsqrt.f32 %v3768_v62 }
 0x20f   : > { %v6424_v32 = vpop.eup %5325 }
 0x210   : > { %v6431_v26 = vmul.f32 %v6424_v32, %v3770_v20  ;;  %v3909_v31 = vmul.f32 %v6424_v32, %v3901_v36  ;;  %v3780_v33 = vmul.f32 %v6424_v32, %v3772_v28  ;;  %v3781_v35 = vmul.f32 %v6424_v32, %v3773_v18 }
 0x211   : > { %v3782_v29 = vmul.f32 %v6424_v32, %v3774_v23  ;;  %v3783_v43 = vmul.f32 %v6424_v32, %v3775_v40  ;;  %v3784_v30 = vmul.f32 %v6424_v32, %v3776_v34  ;;  %v3785_v37 = vmul.f32 %v6424_v32, %v3777_v17 }
 0x212   : > { %v3917_v12 = vadd.f32 %v3909_v31, %v6431_v26  ;;  %v3786_v44 = vmul.f32 %v6424_v32, %v3778_v13  ;;  %v3787_v54 = vmul.f32 %v6424_v32, %v3779_v11  ;;  %v3820_v7 = vmul.f32 %v6424_v32, %v3812_v21 }
 0x213   : > { %v3821_v52 = vmul.f32 %v6424_v32, %v3813_v22  ;;  %v3822_v53 = vmul.f32 %v6424_v32, %v3814_v47  ;;  %v3823_v39 = vmul.f32 %v6424_v32, %v3815_v27  ;;  %v3824_v55 = vmul.f32 %v6424_v32, %v3816_v42 }
 0x214   : > { %v3925_v61 = vmax.f32 %v3917_v12, 0.0  ;;  %v3825_v51 = vmul.f32 %v6424_v32, %v3817_v38  ;;  %v3826_v63 = vmul.f32 %v6424_v32, %v3818_v41  ;;  %v3827_v57 = vmul.f32 %v6424_v32, %v3819_v25 }
 0x215   : > { %v6452_v59 = vmul.f32 %v6424_v32, %v3853_v45  ;;  %v6455_v1 = vmul.f32 %v6424_v32, %v3854_v46  ;;  %v6458_v24 = vmul.f32 %v6424_v32, %v3855_v19  ;;  %v6461_v4 = vmul.f32 %v6424_v32, %v3856_v56 }
 0x216   : > { %4732 = vst.msk [vmem:[%s6464_s26 + $0xf8] sm:$0xff] %vm833_vm4, %v3925_v61  ;;  %v6469_v60 = vmul.f32 %v6424_v32, %v3857_v49  ;;  %v6472_v9 = vmul.f32 %v6424_v32, %v3858_v50  ;;  %v6475_v58 = vmul.f32 %v6424_v32, %v3859_v0  ;;  %v6478_v10 = vmul.f32 %v6424_v32, %v3860_v2 }
 0x217   : > { %v6481_v48 = vmul.f32 %v6424_v32, %v3894_v3  ;;  %v6484_v62 = vmul.f32 %v6424_v32, %v3895_v5  ;;  %v6487_v28 = vmul.f32 %v6424_v32, %v3896_v6  ;;  %v6490_v18 = vmul.f32 %v6424_v32, %v3897_v8 }
 0x218   : > { %v6493_v23 = vmul.f32 %v6424_v32, %v3898_v14  ;;  %v6496_v40 = vmul.f32 %v6424_v32, %v3899_v15  ;;  %v6499_v34 = vmul.f32 %v6424_v32, %v3900_v16  ;;  %v3788_v20 = vadd.f32 %v3780_v33, %v6431_v26 }
 0x219   : > { %v3789_v17 = vadd.f32 %v3781_v35, %v6431_v26  ;;  %v3790_v13 = vadd.f32 %v3782_v29, %v6431_v26  ;;  %v3791_v36 = vadd.f32 %v3783_v43, %v6431_v26  ;;  %v3792_v11 = vadd.f32 %v3784_v30, %v6431_v26 }
 0x21a   : > { %v3793_v21 = vadd.f32 %v3785_v37, %v6431_v26  ;;  %v3794_v32 = vadd.f32 %v3786_v44, %v6431_v26  ;;  %v3795_v22 = vadd.f32 %v3787_v54, %v6431_v26  ;;  %v3796_v31 = vmax.f32 %v3788_v20, 0.0 }
 0x21b   : > { %v3797_v33 = vmax.f32 %v3789_v17, 0.0  ;;  %v3798_v47 = vmax.f32 %v3790_v13, 0.0  ;;  %v3799_v35 = vmax.f32 %v3791_v36, 0.0  ;;  %v3800_v27 = vmax.f32 %v3792_v11, 0.0 }
 0x21c   : > { %v3801_v42 = vmax.f32 %v3793_v21, 0.0  ;;  %v3802_v29 = vmax.f32 %v3794_v32, 0.0  ;;  %v3803_v43 = vmax.f32 %v3795_v22, 0.0  ;;  %3804 = vst.msk [vmem:[%s6464_s26] sm:$0xff] %vm833_vm4, %v3796_v31  ;;  %v3828_v30 = vadd.f32 %v3820_v7, %v6431_v26 }
 0x21d   : > { %3805 = vst.msk [vmem:[%s6464_s26 + $0x8] sm:$0xff] %vm833_vm4, %v3797_v33  ;;  %3806 = vst.msk [vmem:[%s6464_s26 + $0x10] sm:$0xff] %vm833_vm4, %v3798_v47  ;;  %v3829_v37 = vadd.f32 %v3821_v52, %v6431_v26  ;;  %v3830_v38 = vadd.f32 %v3822_v53, %v6431_v26  ;;  %v3831_v41 = vadd.f32 %v3823_v39, %v6431_v26 }
 0x21e   : > { %3807 = vst.msk [vmem:[%s6464_s26 + $0x18] sm:$0xff] %vm833_vm4, %v3799_v35  ;;  %3808 = vst.msk [vmem:[%s6464_s26 + $0x20] sm:$0xff] %vm833_vm4, %v3800_v27  ;;  %v3832_v25 = vadd.f32 %v3824_v55, %v6431_v26  ;;  %v3833_v12 = vadd.f32 %v3825_v51, %v6431_v26  ;;  %v3834_v44 = vadd.f32 %v3826_v63, %v6431_v26  ;;  %v3836_v7 = vmax.f32 %v3828_v30, 0.0 }
 0x21f   : > { %3809 = vst.msk [vmem:[%s6464_s26 + $0x28] sm:$0xff] %vm833_vm4, %v3801_v42  ;;  %3810 = vst.msk [vmem:[%s6464_s26 + $0x30] sm:$0xff] %vm833_vm4, %v3802_v29  ;;  %v3835_v54 = vadd.f32 %v3827_v57, %v6431_v26  ;;  %v3837_v45 = vmax.f32 %v3829_v37, 0.0  ;;  %v3838_v46 = vmax.f32 %v3830_v38, 0.0  ;;  %v3839_v19 = vmax.f32 %v3831_v41, 0.0 }
 0x220   : > { %3811 = vst.msk [vmem:[%s6464_s26 + $0x38] sm:$0xff] %vm833_vm4, %v3803_v43  ;;  %v3840_v52 = vmax.f32 %v3832_v25, 0.0  ;;  %v3841_v53 = vmax.f32 %v3833_v12, 0.0  ;;  %v3842_v39 = vmax.f32 %v3834_v44, 0.0  ;;  %4709 = vst.msk [vmem:[%s6464_s26 + $0x40] sm:$0xff] %vm833_vm4, %v3836_v7  ;;  %v3869_v56 = vadd.f32 %v6452_v59, %v6431_v26 }
 0x221   : > { %v3843_v55 = vmax.f32 %v3835_v54, 0.0  ;;  %4710 = vst.msk [vmem:[%s6464_s26 + $0x48] sm:$0xff] %vm833_vm4, %v3837_v45  ;;  %4711 = vst.msk [vmem:[%s6464_s26 + $0x50] sm:$0xff] %vm833_vm4, %v3838_v46  ;;  %v3870_v49 = vadd.f32 %v6455_v1, %v6431_v26  ;;  %v3871_v50 = vadd.f32 %v6458_v24, %v6431_v26  ;;  %v3872_v61 = vadd.f32 %v6461_v4, %v6431_v26 }
 0x222   : > { %4712 = vst.msk [vmem:[%s6464_s26 + $0x58] sm:$0xff] %vm833_vm4, %v3839_v19  ;;  %4713 = vst.msk [vmem:[%s6464_s26 + $0x60] sm:$0xff] %vm833_vm4, %v3840_v52  ;;  %v3873_v51 = vadd.f32 %v6469_v60, %v6431_v26  ;;  %v3874_v63 = vadd.f32 %v6472_v9, %v6431_v26  ;;  %v3875_v57 = vadd.f32 %v6475_v58, %v6431_v26  ;;  %v3877_v2 = vmax.f32 %v3869_v56, 0.0 }
 0x223   : > { %4714 = vst.msk [vmem:[%s6464_s26 + $0x68] sm:$0xff] %vm833_vm4, %v3841_v53  ;;  %4715 = vst.msk [vmem:[%s6464_s26 + $0x70] sm:$0xff] %vm833_vm4, %v3842_v39  ;;  %v3876_v0 = vadd.f32 %v6478_v10, %v6431_v26  ;;  %v3878_v3 = vmax.f32 %v3870_v49, 0.0  ;;  %v3879_v59 = vmax.f32 %v3871_v50, 0.0  ;;  %v3880_v1 = vmax.f32 %v3872_v61, 0.0 }
 0x224   : > { %4716 = vst.msk [vmem:[%s6464_s26 + $0x78] sm:$0xff] %vm833_vm4, %v3843_v55  ;;  %v3881_v24 = vmax.f32 %v3873_v51, 0.0  ;;  %v3882_v4 = vmax.f32 %v3874_v63, 0.0  ;;  %v3883_v5 = vmax.f32 %v3875_v57, 0.0  ;;  %4717 = vst.msk [vmem:[%s6464_s26 + $0x80] sm:$0xff] %vm833_vm4, %v3877_v2  ;;  %v3910_v8 = vadd.f32 %v6481_v48, %v6431_v26 }
 0x225   : > { %v3884_v6 = vmax.f32 %v3876_v0, 0.0  ;;  %4718 = vst.msk [vmem:[%s6464_s26 + $0x88] sm:$0xff] %vm833_vm4, %v3878_v3  ;;  %4719 = vst.msk [vmem:[%s6464_s26 + $0x90] sm:$0xff] %vm833_vm4, %v3879_v59  ;;  %v3911_v60 = vadd.f32 %v6484_v62, %v6431_v26  ;;  %v3912_v9 = vadd.f32 %v6487_v28, %v6431_v26  ;;  %v3913_v58 = vadd.f32 %v6490_v18, %v6431_v26 }
 0x226   : > { %4720 = vst.msk [vmem:[%s6464_s26 + $0x98] sm:$0xff] %vm833_vm4, %v3880_v1  ;;  %4721 = vst.msk [vmem:[%s6464_s26 + $0xa0] sm:$0xff] %vm833_vm4, %v3881_v24  ;;  %v3914_v10 = vadd.f32 %v6493_v23, %v6431_v26  ;;  %v3915_v14 = vadd.f32 %v6496_v40, %v6431_v26  ;;  %v3916_v15 = vadd.f32 %v6499_v34, %v6431_v26  ;;  %v3918_v16 = vmax.f32 %v3910_v8, 0.0 }
 0x227   : > { %4722 = vst.msk [vmem:[%s6464_s26 + $0xa8] sm:$0xff] %vm833_vm4, %v3882_v4  ;;  %4723 = vst.msk [vmem:[%s6464_s26 + $0xb0] sm:$0xff] %vm833_vm4, %v3883_v5  ;;  %v3919_v48 = vmax.f32 %v3911_v60, 0.0  ;;  %v3920_v62 = vmax.f32 %v3912_v9, 0.0  ;;  %v3921_v28 = vmax.f32 %v3913_v58, 0.0 }
 0x228   : > { %4724 = vst.msk [vmem:[%s6464_s26 + $0xb8] sm:$0xff] %vm833_vm4, %v3884_v6  ;;  %v3922_v18 = vmax.f32 %v3914_v10, 0.0  ;;  %v3923_v23 = vmax.f32 %v3915_v14, 0.0  ;;  %v3924_v40 = vmax.f32 %v3916_v15, 0.0  ;;  %4725 = vst.msk [vmem:[%s6464_s26 + $0xc0] sm:$0xff] %vm833_vm4, %v3918_v16 }
 0x229   : > { %4726 = vst.msk [vmem:[%s6464_s26 + $0xc8] sm:$0xff] %vm833_vm4, %v3919_v48  ;;  %4727 = vst.msk [vmem:[%s6464_s26 + $0xd0] sm:$0xff] %vm833_vm4, %v3920_v62 }
 0x22a   : > { %4728 = vst.msk [vmem:[%s6464_s26 + $0xd8] sm:$0xff] %vm833_vm4, %v3921_v28  ;;  %4729 = vst.msk [vmem:[%s6464_s26 + $0xe0] sm:$0xff] %vm833_vm4, %v3922_v18 }
 0x22b   : > { %4730 = vst.msk [vmem:[%s6464_s26 + $0xe8] sm:$0xff] %vm833_vm4, %v3923_v23  ;;  %4731 = vst.msk [vmem:[%s6464_s26 + $0xf0] sm:$0xff] %vm833_vm4, %v3924_v40 }
 0x22c   : > { %5340 = shalt.err (!%p5337_p5)
}
 0x22d   : > { %s5341_s15 = scalar_lea.hbm %s6600_s30, 4096  ;;  %s5345_s20 = scalar_lea.hbm %s6668_s2, 8192 }
 0x22e   : > { %p5342_p6 = scmp.ne.s32.totalorder %s6600_s30, %s5341_s15  ;;  %p5346_p10 = scmp.lt.u32.totalorder %s6600_s30, %s6668_s2 }
 0x22f   : > { %p5347_p11 = scmp.lt.u32.totalorder %s5345_s20, %s5341_s15  ;;  %p5349_p13 = scmp.lt.u32.totalorder %s5341_s15, %s6600_s30 }
 0x230   : > { %p5343_p7 = pnand %p5342_p6, %p5465_p4 }
 0x231   : > { %p5348_p12 = por %p5347_p11, %p5346_p10 }
 0x232   : > { %p5344_p9 = pneg %p5343_p7 }
 0x233   : > { %p5350_p0 = por %p5349_p13, %p5348_p12 }
 0x235   : > { %p5351_p1 = pnand %p5350_p0, %p5344_p9 }
 0x237   : > { %5354 = shalt.err (!%p5351_p1)
}
 0x238   : > { %s5408_s5 = smov 128   ;;  %s5409_s25 = smov 8  }
 0x239   : > { %5060 = dma.vmem_to_hbm [thread:$0]  (%p5465_p4), %s6602_s28, 4096, %s6600_s30, %s6620_s3, %s5408_s5, %s5408_s5, %s5409_s25  }
 0x23a PF: > { %p5066_p2 = scmp.ge.s32.totalorder %s5405_s14, 2  ;;  %s3965_s26 = sand.u32 1, %s5385_s9  }
 0x23b   : > { %s3966_s27 = scalar_lea.sflag [#allocation4], %s3965_s26 }
 0x23c   : > { %p5063_p3 = pnand %p5066_p2, %p5472_p8 }
 0x23e   : > { %5380 = dma.done.wait (!%p5063_p3), %s3966_s27, 4096  }
 0x23f   : > { %5382 = vsyncadd (!%p5063_p3), %s3966_s27, 4294963200  ;;  %s15_s14 = sadd.s32 1, %s5405_s14   ;;  %s6673_s9 = smov %s5389_s10 }
 0x240   : > { %p12_p5 = scmp.ge.s32.totalorder %s15_s14, 4   ;;  %s6674_s10 = smov %s5393_s11 }
 0x241   : > { %s6675_s11 = smov %s5478_s22  ;;  %s6676_s12 = smov %s5401_s13 }
 0x242   : > { %s6677_s13 = smov %s6679_s17  ;;  %14 = sbr.rel (!%p12_p5) target bundleno = 4 (0x4), region = 77 }
 0x249   :  { %3971 = vsyncpa [#allocation4], 1 }
 0x24a   :  { %3973 = vsyncpa [#allocation4 + $0x1], 1 }

</bundles_post_ra>
